<compile_context>
chip_gen: v7x
topology: tpu7x:2x2x1
jax: 0.10.0
libtpu: 0.0.40
codegen_flags: <defaults>
</compile_context>

<pallas_src>
import functools

import jax
import jax.numpy as jnp
from jax import lax
from jax.experimental import pallas as pl
from jax.experimental.pallas import tpu as pltpu


N_AGGR = 5   # mean, min, max, std, sum
LANE = 128   # TPU lane width; feature dim is padded to a multiple of this


# ----------------------------------------------------------------------------
# Pallas kernel: one PNAConv layer + BatchNorm + ReLU, grid over edge tiles.
# ----------------------------------------------------------------------------
def pna_layer_kernel(
    # scalar prefetch
    dst_idx_ref,  # [E_pad] int32 (SMEM): edge -> target node index
    # inputs
    x_ref,        # [N, Fp]   f32 node features (lane-padded, resident)
    ea_ref,       # [TE, De]  f32 edge attributes (tile)
    src_ref,      # [TE, N]   f32 one-hot of edge sources (x_j gather)
    dsto_ref,     # [TE, N]   f32 one-hot of edge targets (x_i gather)
    dstT_ref,     # [N, TE]   f32 pre-transposed target one-hot (scatter)
    deg_ref,      # [N, 1]    f32 in-degree (host precomputed)
    wpi_ref,      # [Fp, Fp]  pre_nn rows for x_i
    wpj_ref,      # [Fp, Fp]  pre_nn rows for x_j
    wef_ref,      # [De, Fp]  edge_encoder folded into pre_nn rows for edge_attr
    bpre_ref,     # [1, Fp]   fused pre bias
    wpost_ref,    # [16*Fp, Fp] post_nn folded with conv.lin (row blocks)
    bpost_ref,    # [1, Fp]   fused post bias
    bng_ref,      # [1, Fp]   BatchNorm gamma
    bnb_ref,      # [1, Fp]   BatchNorm beta
    # output
    o_ref,        # [N, Fp]
    # scratch
    pi_s,         # [N, Fp]       f32  x @ Wp_i
    pj_s,         # [N, Fp]       f32  x @ Wp_j
    msg_s,        # [TE//8, 8, Fp] f32 staged messages for per-edge min/max
    sum_s,        # [N, Fp]       f32  running sum
    sq_s,         # [N, Fp]       f32  running sum of squares
    min_s,        # [N, 1, Fp]    f32  running min (leading-dim dyn indexed)
    max_s,        # [N, 1, Fp]    f32  running max
    agg_s,        # [N, 5*Fp]     f32  fused aggregation block for finalize
    *,
    num_edges: int,
    tile_e: int,
    avg_deg_log: float,
    inv_avg_deg_log: float,
):
    f32 = jnp.float32
    e = pl.program_id(0)
    n_e = pl.num_programs(0)
    N, Fp = x_ref.shape
    BIG = float(jnp.finfo(jnp.float32).max)

    # ---- init accumulators + reassociated pre-nn projections (once) ----
    @pl.when(e == 0)
    def _init():
        x = x_ref[...]
        pi_s[...] = jnp.dot(x, wpi_ref[...], preferred_element_type=f32)
        pj_s[...] = jnp.dot(x, wpj_ref[...], preferred_element_type=f32)
        sum_s[...] = jnp.zeros_like(sum_s)
        sq_s[...] = jnp.zeros_like(sq_s)
        min_s[...] = jnp.full_like(min_s, BIG)
        max_s[...] = jnp.full_like(max_s, -BIG)

    # ---- messages for this edge tile (concat-free, edge_encoder folded) ----
    m = (jnp.dot(dsto_ref[...], pi_s[...], preferred_element_type=f32)
         + jnp.dot(src_ref[...], pj_s[...], preferred_element_type=f32)
         + jnp.dot(ea_ref[...], wef_ref[...], preferred_element_type=f32)
         + bpre_ref[...])                                   # [TE, Fp] f32

    # ---- scatter to targets: sum & sum-of-squares (f32 MXU, no transpose) ----
    sum_s[...] += jnp.dot(dstT_ref[...], m, preferred_element_type=f32)
    sq_s[...] += jnp.dot(dstT_ref[...], m * m, preferred_element_type=f32)

    # ---- segment min / max: O(TE*Fp) per-edge dynamic row updates ----
    # Stage the tile's messages with a tile-preserving reshape (sublane split),
    # then walk groups of 8 edges; dynamic indexing only on leading dims.
    msg_s[...] = m.reshape(tile_e // 8, 8, Fp)

    @pl.loop(0, tile_e // 8)
    def _minmax(g):
        rows = msg_s[g]                                     # [8, Fp]
        for r in range(8):                                  # static unroll
            gidx = e * tile_e + g * 8 + r

            @pl.when(gidx < num_edges)                      # skip padded edges
            def _upd():
                d = dst_idx_ref[gidx]                       # SMEM scalar
                row = rows[r:r + 1, :]                      # [1, Fp] static slice
                min_s[d] = jnp.minimum(min_s[d], row)
                max_s[d] = jnp.maximum(max_s[d], row)

    # ---- finalize: scalers, fused post/lin matmuls, BatchNorm, ReLU ----
    @pl.when(e == n_e - 1)
    def _finalize():
        deg_raw = deg_ref[...]                              # [N, 1]
        has_edge = deg_raw > 0.0
        deg = jnp.maximum(deg_raw, 1.0)
        inv_deg = pl.reciprocal(deg, approx=True)

        s_sum = sum_s[...]
        s_mean = s_sum * inv_deg
        var = jnp.maximum(sq_s[...] * inv_deg - s_mean * s_mean, 0.0)
        s_std = jnp.sqrt(var + 1e-5)
        s_min = jnp.where(has_edge, min_s[:, 0, :], 0.0)
        s_max = jnp.where(has_edge, max_s[:, 0, :], 0.0)

        # Assemble [N, 5*Fp] aggregation block (order: mean, min, max, std, sum).
        agg_s[:, pl.ds(0 * Fp, Fp)] = s_mean
        agg_s[:, pl.ds(1 * Fp, Fp)] = s_min
        agg_s[:, pl.ds(2 * Fp, Fp)] = s_max
        agg_s[:, pl.ds(3 * Fp, Fp)] = s_std
        agg_s[:, pl.ds(4 * Fp, Fp)] = s_sum

        log_deg = jnp.log(deg + 1.0)                        # [N, 1]
        amp = log_deg * inv_avg_deg_log
        att = avg_deg_log * pl.reciprocal(log_deg, approx=True)

        A = agg_s[...]                                      # [N, 5*Fp]
        x = x_ref[...]
        # Row-block order of the folded post weight:
        #   [x | (mean,min,max,std,sum) x identity | ... x amp | ... x att]
        out = (jnp.dot(x, wpost_ref[pl.ds(0, Fp), :],
                       preferred_element_type=f32)
               + jnp.dot(A, wpost_ref[pl.ds(Fp, N_AGGR * Fp), :],
                         preferred_element_type=f32)
               + jnp.dot(amp * A,
                         wpost_ref[pl.ds((1 + N_AGGR) * Fp, N_AGGR * Fp), :],
                         preferred_element_type=f32)
               + jnp.dot(att * A,
                         wpost_ref[pl.ds((1 + 2 * N_AGGR) * Fp, N_AGGR * Fp), :],
                         preferred_element_type=f32)
               + bpost_ref[...])

        # BatchNorm1d (training-mode batch stats, biased variance) + ReLU.
        mu = jnp.mean(out, axis=0, keepdims=True)
        var_bn = jnp.mean((out - mu) * (out - mu), axis=0, keepdims=True)
        y = (out - mu) * lax.rsqrt(var_bn + 1e-5) * bng_ref[...] + bnb_ref[...]
        o_ref[...] = jnp.maximum(y, 0.0).astype(o_ref.dtype)


# ----------------------------------------------------------------------------
# Wrapper: one layer
# ----------------------------------------------------------------------------
def pna_layer(x, edge_attr, src_oh, dst_oh, dst_oh_T, dst_idx, deg_col,
              prep, avg_deg_log, tile_e, num_edges):
    N, Fp = x.shape
    E_pad, De = edge_attr.shape
    assert E_pad % tile_e == 0 and tile_e % 8 == 0
    grid = (E_pad // tile_e,)

    def fixed(shape):
        nd = len(shape)
        return pl.BlockSpec(shape, lambda e, d, _nd=nd: (0,) * _nd)

    in_specs = [
        fixed((N, Fp)),                                       # x
        pl.BlockSpec((tile_e, De), lambda e, d: (e, 0)),      # edge_attr tile
        pl.BlockSpec((tile_e, N), lambda e, d: (e, 0)),       # src one-hot tile
        pl.BlockSpec((tile_e, N), lambda e, d: (e, 0)),       # dst one-hot tile
        pl.BlockSpec((N, tile_e), lambda e, d: (0, e)),       # dst one-hot^T tile
        fixed((N, 1)),                                        # deg
        fixed(prep["wpi"].shape), fixed(prep["wpj"].shape),
        fixed(prep["wef"].shape), fixed(prep["bpre"].shape),
        fixed(prep["wpost"].shape), fixed(prep["bpost"].shape),
        fixed(prep["bn_g"].shape), fixed(prep["bn_b"].shape),
    ]

    kernel = functools.partial(
        pna_layer_kernel,
        num_edges=int(num_edges),
        tile_e=int(tile_e),
        avg_deg_log=float(avg_deg_log),
        inv_avg_deg_log=float(1.0 / avg_deg_log),
    )

    grid_spec = pltpu.PrefetchScalarGridSpec(
        num_scalar_prefetch=1,                  # dst index array -> SMEM
        grid=grid,
        in_specs=in_specs,
        out_specs=pl.BlockSpec((N, Fp), lambda e, d: (0, 0)),
        scratch_shapes=[
            pltpu.VMEM((N, Fp), jnp.float32),             # x @ Wp_i
            pltpu.VMEM((N, Fp), jnp.float32),             # x @ Wp_j
            pltpu.VMEM((tile_e // 8, 8, Fp), jnp.float32),  # staged messages
            pltpu.VMEM((N, Fp), jnp.float32),             # sum
            pltpu.VMEM((N, Fp), jnp.float32),             # sum of squares
            pltpu.VMEM((N, 1, Fp), jnp.float32),          # min
            pltpu.VMEM((N, 1, Fp), jnp.float32),          # max
            pltpu.VMEM((N, N_AGGR * Fp), jnp.float32),    # fused agg block
        ],
    )

    return pl.pallas_call(
        kernel,
        grid_spec=grid_spec,
        out_shape=jax.ShapeDtypeStruct((N, Fp), jnp.float32),
        compiler_params=pltpu.CompilerParams(
            dimension_semantics=("arbitrary",),   # edge axis is a reduction
            vmem_limit_bytes=48 * 1024 * 1024,    # explicit budget (fits v7x 64MiB)
        ),
    )(dst_idx, x, edge_attr, src_oh, dst_oh, dst_oh_T, deg_col,
      prep["wpi"], prep["wpj"], prep["wef"], prep["bpre"],
      prep["wpost"], prep["bpost"], prep["bn_g"], prep["bn_b"])


# ----------------------------------------------------------------------------
# Host-side weight folding + lane padding (exact reassociation of the params)
# ----------------------------------------------------------------------------
def prepare_layer_params(p, F, Fp):
    def pad_cols(a):            # [r, F] -> [r, Fp]
        return jnp.pad(a, ((0, 0), (0, Fp - F)))

    def pad_sq(a):              # [F, F] -> [Fp, Fp]
        return jnp.pad(a, ((0, Fp - F), (0, Fp - F)))

    pre_w = p["pre_w"]                       # [3F, F]
    wpi = pad_sq(pre_w[0:F, :])              # rows for x_i
    wpj = pad_sq(pre_w[F:2 * F, :])          # rows for x_j
    wpe = pre_w[2 * F:3 * F, :]              # rows for encoded edge_attr
    wef = pad_cols(p["we_w"] @ wpe)          # [De, Fp] edge_encoder folded in
    bpre = pad_cols(p["pre_b"] + p["we_b"] @ wpe)          # [1, Fp]

    wpost_f = p["post_w"] @ p["lin_w"]       # [(5*3+1)F, F] post folded with lin
    n_blocks = wpost_f.shape[0] // F         # 16 row blocks
    wpost = jnp.concatenate(
        [pad_sq(wpost_f[b * F:(b + 1) * F, :]) for b in range(n_blocks)], axis=0)
    bpost = pad_cols(p["post_b"] @ p["lin_w"] + p["lin_b"])
    return dict(wpi=wpi, wpj=wpj, wef=wef, bpre=bpre,
                wpost=wpost, bpost=bpost,
                bn_g=pad_cols(p["bn_g"]), bn_b=pad_cols(p["bn_b"]))


# ----------------------------------------------------------------------------
# Full model: x <- relu(bn(PNAConv(x))) per layer
# ----------------------------------------------------------------------------
def pna_node_model(x, edge_index, edge_attr, layer_params, avg_deg_log,
                   tile_e=256):
    N, F = x.shape
    E = edge_index.shape[1]
    Fp = max(LANE, int(pl.cdiv(F, LANE)) * LANE)   # lane-pad feature dim
    src = edge_index[0]   # j (source)
    dst = edge_index[1]   # i (target)

    # Graph structure as f32 one-hots (exact; small-N MXU-friendly path).
    src_oh = jax.nn.one_hot(src, N, dtype=jnp.float32)     # [E, N]
    dst_oh = jax.nn.one_hot(dst, N, dtype=jnp.float32)     # [E, N]

    # In-degree (per target node), computed once host-side.
    deg_col = jnp.zeros((N,), jnp.float32).at[dst].add(1.0).reshape(N, 1)

    # Pad the edge axis to a multiple of the tile; padded rows are all-zero
    # one-hots (no sum/sq contribution) and are skipped by the min/max guard.
    E_pad = int(pl.cdiv(E, tile_e)) * tile_e
    pad_e = E_pad - E
    dst_idx = dst.astype(jnp.int32)
    if pad_e:
        src_oh = jnp.pad(src_oh, ((0, pad_e), (0, 0)))
        dst_oh = jnp.pad(dst_oh, ((0, pad_e), (0, 0)))
        edge_attr = jnp.pad(edge_attr, ((0, pad_e), (0, 0)))
        dst_idx = jnp.pad(dst_idx, (0, pad_e))
    dst_oh_T = dst_oh.T                                     # [N, E_pad]

    # Guard against degenerate avg_deg_log (edge-less graph) -> avoid inf/NaN.
    if not (avg_deg_log > 0.0):
        avg_deg_log = 1.0

    xp = jnp.pad(x.astype(jnp.float32), ((0, 0), (0, Fp - F)))
    edge_attr = edge_attr.astype(jnp.float32)

    for p in layer_params:
        prep = prepare_layer_params(p, F, Fp)
        xp = pna_layer(xp, edge_attr, src_oh, dst_oh, dst_oh_T, dst_idx,
                       deg_col, prep, avg_deg_log, tile_e, num_edges=E)
    return xp[:, :F]


# ----------------------------------------------------------------------------
# Deterministic parameter init (shapes follow PNAConv(towers=1, pre=1, post=1))
# ----------------------------------------------------------------------------
def init_layer_params(key, F, De, n_aggr=N_AGGR, n_scaler=3):
    ks = jax.random.split(key, 4)

    def lin(k, fan_in, fan_out):
        bound = 1.0 / jnp.sqrt(jnp.asarray(fan_in, jnp.float32))
        kw, kb = jax.random.split(k)
        w = jax.random.uniform(kw, (fan_in, fan_out), jnp.float32, -bound, bound)
        b = jax.random.uniform(kb, (1, fan_out), jnp.float32, -bound, bound)
        return w, b

    we_w, we_b = lin(ks[0], De, F)                                # edge_encoder
    pre_w, pre_b = lin(ks[1], 3 * F, F)                           # pre_nn
    post_w, post_b = lin(ks[2], (n_aggr * n_scaler + 1) * F, F)   # post_nn
    lin_w, lin_b = lin(ks[3], F, F)                               # conv.lin
    return dict(
        we_w=we_w, we_b=we_b,
        pre_w=pre_w, pre_b=pre_b,
        post_w=post_w, post_b=post_b,
        lin_w=lin_w, lin_b=lin_b,
        bn_g=jnp.ones((1, F), jnp.float32),
        bn_b=jnp.zeros((1, F), jnp.float32),
    )


# ----------------------------------------------------------------------------
if __name__ == "__main__":
    key = jax.random.PRNGKey(0)
    N, E, F, De = 32, 512, 32, 8     # nodes, edges, node feats, edge feats
    NUM_LAYERS = 2
    TILE_E = 256                     # MXU-sized edge tile -> 2 grid steps

    k_x, k_ea, k_src, k_dst, k_p = jax.random.split(key, 5)
    x = jax.random.normal(k_x, (N, F), jnp.float32)
    edge_attr = jax.random.normal(k_ea, (E, De), jnp.float32)
    src = jax.random.randint(k_src, (E,), 0, N)
    dst = jax.random.randint(k_dst, (E,), 0, N)
    edge_index = jnp.stack([src, dst], axis=0)               # [2, E], row 0 = src

    # run_cfg['dataset_indegree']: histogram of in-degrees -> avg_deg['log']
    in_deg = jnp.zeros((N,), jnp.int32).at[dst].add(1)
    deg_hist = jnp.bincount(in_deg, length=int(jnp.max(in_deg)) + 1).astype(jnp.float32)
    bins = jnp.arange(deg_hist.shape[0], dtype=jnp.float32)
    avg_deg_log = float(jnp.sum(jnp.log(bins + 1.0) * deg_hist) / jnp.sum(deg_hist))

    layer_params = [
        init_layer_params(k, F, De) for k in jax.random.split(k_p, NUM_LAYERS)
    ]

    out = pna_node_model(x, edge_index, edge_attr, layer_params, avg_deg_log,
                         tile_e=TILE_E)
    out = jax.block_until_ready(out)
    assert out.shape == (N, F) and out.dtype == jnp.float32
    assert bool(jnp.all(jnp.isfinite(out)))
    print("KERNEL_OK")
</pallas_src>

<mosaic_0001>
module attributes {stable_mosaic.version = 11 : i64} {
  func.func @pna_layer_kernel(%arg0: i32, %arg1: memref<512xi32, #tpu.memory_space<smem>>, %arg2: memref<32x128xf32, #tpu.memory_space<vmem>>, %arg3: memref<256x8xf32, #tpu.memory_space<vmem>>, %arg4: memref<256x32xf32, #tpu.memory_space<vmem>>, %arg5: memref<256x32xf32, #tpu.memory_space<vmem>>, %arg6: memref<32x256xf32, #tpu.memory_space<vmem>>, %arg7: memref<32x1xf32, #tpu.memory_space<vmem>>, %arg8: memref<128x128xf32, #tpu.memory_space<vmem>>, %arg9: memref<128x128xf32, #tpu.memory_space<vmem>>, %arg10: memref<8x128xf32, #tpu.memory_space<vmem>>, %arg11: memref<1x128xf32, #tpu.memory_space<vmem>>, %arg12: memref<2048x128xf32, #tpu.memory_space<vmem>>, %arg13: memref<1x128xf32, #tpu.memory_space<vmem>>, %arg14: memref<1x128xf32, #tpu.memory_space<vmem>>, %arg15: memref<1x128xf32, #tpu.memory_space<vmem>>, %arg16: memref<32x128xf32, #tpu.memory_space<vmem>>, %arg17: memref<32x128xf32, #tpu.memory_space<vmem>>, %arg18: memref<32x128xf32, #tpu.memory_space<vmem>>, %arg19: memref<32x8x128xf32, #tpu.memory_space<vmem>>, %arg20: memref<32x128xf32, #tpu.memory_space<vmem>>, %arg21: memref<32x128xf32, #tpu.memory_space<vmem>>, %arg22: memref<32x1x128xf32, #tpu.memory_space<vmem>>, %arg23: memref<32x1x128xf32, #tpu.memory_space<vmem>>, %arg24: memref<32x640xf32, #tpu.memory_space<vmem>>) attributes {dimension_semantics = [#tpu.dimension_semantics<arbitrary>], iteration_bounds = array<i64: 2>, scalar_prefetch = 1 : i64, scratch_operands = 8 : i64, tpu.core_type = #tpu.core_type<tc>, window_params = [{pipeline_mode = #tpu.pipeline_mode<synchronous>, transform_indices = @transform_0, window_bounds = array<i64: 32, 128>}, {transform_indices = @transform_1, window_bounds = array<i64: 256, 8>}, {transform_indices = @transform_2, window_bounds = array<i64: 256, 32>}, {transform_indices = @transform_3, window_bounds = array<i64: 256, 32>}, {transform_indices = @transform_4, window_bounds = array<i64: 32, 256>}, {pipeline_mode = #tpu.pipeline_mode<synchronous>, transform_indices = @transform_5, window_bounds = array<i64: 32, 1>}, {pipeline_mode = #tpu.pipeline_mode<synchronous>, transform_indices = @transform_6, window_bounds = array<i64: 128, 128>}, {pipeline_mode = #tpu.pipeline_mode<synchronous>, transform_indices = @transform_7, window_bounds = array<i64: 128, 128>}, {pipeline_mode = #tpu.pipeline_mode<synchronous>, transform_indices = @transform_8, window_bounds = array<i64: 8, 128>}, {pipeline_mode = #tpu.pipeline_mode<synchronous>, transform_indices = @transform_9, window_bounds = array<i64: 1, 128>}, {pipeline_mode = #tpu.pipeline_mode<synchronous>, transform_indices = @transform_10, window_bounds = array<i64: 2048, 128>}, {pipeline_mode = #tpu.pipeline_mode<synchronous>, transform_indices = @transform_11, window_bounds = array<i64: 1, 128>}, {pipeline_mode = #tpu.pipeline_mode<synchronous>, transform_indices = @transform_12, window_bounds = array<i64: 1, 128>}, {pipeline_mode = #tpu.pipeline_mode<synchronous>, transform_indices = @transform_13, window_bounds = array<i64: 1, 128>}, {pipeline_mode = #tpu.pipeline_mode<synchronous>, transform_indices = @transform_14, window_bounds = array<i64: 32, 128>}]} {
    %c0_i32 = arith.constant 0 : i32
    %0 = arith.cmpi eq, %arg0, %c0_i32 : i32
    %1 = arith.extui %0 : i1 to i32
    %c0_i32_0 = arith.constant 0 : i32
    %2 = arith.cmpi ne, %1, %c0_i32_0 : i32
    scf.if %2 {
      %c0_37 = arith.constant 0 : index
      %c0_38 = arith.constant 0 : index
      %34 = vector.load %arg2[%c0_37, %c0_38] : memref<32x128xf32, #tpu.memory_space<vmem>>, vector<32x128xf32>
      %c0_39 = arith.constant 0 : index
      %c0_40 = arith.constant 0 : index
      %35 = vector.load %arg8[%c0_39, %c0_40] : memref<128x128xf32, #tpu.memory_space<vmem>>, vector<128x128xf32>
      %cst_41 = arith.constant dense<0.000000e+00> : vector<32x128xf32>
      %36 = tpu.matmul %34, %35, %cst_41 {dimension_numbers = #tpu.dot_dimension_numbers<[1], [0], [0], [1], [0, 0, 1, 1], [], []>} : vector<32x128xf32>, vector<128x128xf32>, vector<32x128xf32> -> vector<32x128xf32>
      %c0_42 = arith.constant 0 : index
      %c0_43 = arith.constant 0 : index
      %37 = vector.load %arg17[%c0_42, %c0_43] : memref<32x128xf32, #tpu.memory_space<vmem>>, vector<32x128xf32>
      tpu.vector_store %arg17[%c0_42, %c0_43], %36 {strides = array<i32>} : memref<32x128xf32, #tpu.memory_space<vmem>>, vector<32x128xf32>,
      %c0_44 = arith.constant 0 : index
      %c0_45 = arith.constant 0 : index
      %38 = vector.load %arg9[%c0_44, %c0_45] : memref<128x128xf32, #tpu.memory_space<vmem>>, vector<128x128xf32>
      %cst_46 = arith.constant dense<0.000000e+00> : vector<32x128xf32>
      %39 = tpu.matmul %34, %38, %cst_46 {dimension_numbers = #tpu.dot_dimension_numbers<[1], [0], [0], [1], [0, 0, 1, 1], [], []>} : vector<32x128xf32>, vector<128x128xf32>, vector<32x128xf32> -> vector<32x128xf32>
      %c0_47 = arith.constant 0 : index
      %c0_48 = arith.constant 0 : index
      %40 = vector.load %arg18[%c0_47, %c0_48] : memref<32x128xf32, #tpu.memory_space<vmem>>, vector<32x128xf32>
      tpu.vector_store %arg18[%c0_47, %c0_48], %39 {strides = array<i32>} : memref<32x128xf32, #tpu.memory_space<vmem>>, vector<32x128xf32>,
      %cst_49 = arith.constant 0.000000e+00 : f32
      %41 = vector.broadcast %cst_49 : f32 to vector<32x128xf32>
      %c0_50 = arith.constant 0 : index
      %c0_51 = arith.constant 0 : index
      %42 = vector.load %arg20[%c0_50, %c0_51] : memref<32x128xf32, #tpu.memory_space<vmem>>, vector<32x128xf32>
      tpu.vector_store %arg20[%c0_50, %c0_51], %41 {strides = array<i32>} : memref<32x128xf32, #tpu.memory_space<vmem>>, vector<32x128xf32>,
      %cst_52 = arith.constant 0.000000e+00 : f32
      %43 = vector.broadcast %cst_52 : f32 to vector<32x128xf32>
      %c0_53 = arith.constant 0 : index
      %c0_54 = arith.constant 0 : index
      %44 = vector.load %arg21[%c0_53, %c0_54] : memref<32x128xf32, #tpu.memory_space<vmem>>, vector<32x128xf32>
      tpu.vector_store %arg21[%c0_53, %c0_54], %43 {strides = array<i32>} : memref<32x128xf32, #tpu.memory_space<vmem>>, vector<32x128xf32>,
      %cst_55 = arith.constant 3.40282347E+38 : f32
      %45 = vector.broadcast %cst_55 : f32 to vector<32x1x128xf32>
      %c0_56 = arith.constant 0 : index
      %c0_57 = arith.constant 0 : index
      %c0_58 = arith.constant 0 : index
      %46 = vector.load %arg22[%c0_56, %c0_57, %c0_58] : memref<32x1x128xf32, #tpu.memory_space<vmem>>, vector<32x1x128xf32>
      tpu.vector_store %arg22[%c0_56, %c0_57, %c0_58], %45 {strides = array<i32>} : memref<32x1x128xf32, #tpu.memory_space<vmem>>, vector<32x1x128xf32>,
      %cst_59 = arith.constant -3.40282347E+38 : f32
      %47 = vector.broadcast %cst_59 : f32 to vector<32x1x128xf32>
      %c0_60 = arith.constant 0 : index
      %c0_61 = arith.constant 0 : index
      %c0_62 = arith.constant 0 : index
      %48 = vector.load %arg23[%c0_60, %c0_61, %c0_62] : memref<32x1x128xf32, #tpu.memory_space<vmem>>, vector<32x1x128xf32>
      tpu.vector_store %arg23[%c0_60, %c0_61, %c0_62], %47 {strides = array<i32>} : memref<32x1x128xf32, #tpu.memory_space<vmem>>, vector<32x1x128xf32>,
    } else {
    }
    %c0 = arith.constant 0 : index
    %c0_1 = arith.constant 0 : index
    %3 = vector.load %arg5[%c0, %c0_1] : memref<256x32xf32, #tpu.memory_space<vmem>>, vector<256x32xf32>
    %c0_2 = arith.constant 0 : index
    %c0_3 = arith.constant 0 : index
    %4 = vector.load %arg17[%c0_2, %c0_3] : memref<32x128xf32, #tpu.memory_space<vmem>>, vector<32x128xf32>
    %cst = arith.constant dense<0.000000e+00> : vector<256x128xf32>
    %5 = tpu.matmul %3, %4, %cst {dimension_numbers = #tpu.dot_dimension_numbers<[1], [0], [0], [1], [0, 0, 1, 1], [], []>} : vector<256x32xf32>, vector<32x128xf32>, vector<256x128xf32> -> vector<256x128xf32>
    %c0_4 = arith.constant 0 : index
    %c0_5 = arith.constant 0 : index
    %6 = vector.load %arg4[%c0_4, %c0_5] : memref<256x32xf32, #tpu.memory_space<vmem>>, vector<256x32xf32>
    %c0_6 = arith.constant 0 : index
    %c0_7 = arith.constant 0 : index
    %7 = vector.load %arg18[%c0_6, %c0_7] : memref<32x128xf32, #tpu.memory_space<vmem>>, vector<32x128xf32>
    %cst_8 = arith.constant dense<0.000000e+00> : vector<256x128xf32>
    %8 = tpu.matmul %6, %7, %cst_8 {dimension_numbers = #tpu.dot_dimension_numbers<[1], [0], [0], [1], [0, 0, 1, 1], [], []>} : vector<256x32xf32>, vector<32x128xf32>, vector<256x128xf32> -> vector<256x128xf32>
    %9 = arith.addf %5, %8 : vector<256x128xf32>
    %c0_9 = arith.constant 0 : index
    %c0_10 = arith.constant 0 : index
    %10 = vector.load %arg3[%c0_9, %c0_10] : memref<256x8xf32, #tpu.memory_space<vmem>>, vector<256x8xf32>
    %c0_11 = arith.constant 0 : index
    %c0_12 = arith.constant 0 : index
    %11 = vector.load %arg10[%c0_11, %c0_12] : memref<8x128xf32, #tpu.memory_space<vmem>>, vector<8x128xf32>
    %cst_13 = arith.constant dense<0.000000e+00> : vector<256x128xf32>
    %12 = tpu.matmul %10, %11, %cst_13 {dimension_numbers = #tpu.dot_dimension_numbers<[1], [0], [0], [1], [0, 0, 1, 1], [], []>} : vector<256x8xf32>, vector<8x128xf32>, vector<256x128xf32> -> vector<256x128xf32>
    %13 = arith.addf %9, %12 : vector<256x128xf32>
    %c0_14 = arith.constant 0 : index
    %c0_15 = arith.constant 0 : index
    %14 = vector.load %arg11[%c0_14, %c0_15] : memref<1x128xf32, #tpu.memory_space<vmem>>, vector<1x128xf32>
    %15 = vector.broadcast %14 : vector<1x128xf32> to vector<256x128xf32>
    %16 = arith.addf %13, %15 : vector<256x128xf32>
    %c0_16 = arith.constant 0 : index
    %c0_17 = arith.constant 0 : index
    %17 = vector.load %arg20[%c0_16, %c0_17] : memref<32x128xf32, #tpu.memory_space<vmem>>, vector<32x128xf32>
    %c0_18 = arith.constant 0 : index
    %c0_19 = arith.constant 0 : index
    %18 = vector.load %arg6[%c0_18, %c0_19] : memref<32x256xf32, #tpu.memory_space<vmem>>, vector<32x256xf32>
    %cst_20 = arith.constant dense<0.000000e+00> : vector<32x128xf32>
    %19 = tpu.matmul %18, %16, %cst_20 {dimension_numbers = #tpu.dot_dimension_numbers<[1], [0], [0], [1], [0, 0, 1, 1], [], []>} : vector<32x256xf32>, vector<256x128xf32>, vector<32x128xf32> -> vector<32x128xf32>
    %20 = arith.addf %17, %19 : vector<32x128xf32>
    %c0_21 = arith.constant 0 : index
    %c0_22 = arith.constant 0 : index
    %21 = vector.load %arg20[%c0_21, %c0_22] : memref<32x128xf32, #tpu.memory_space<vmem>>, vector<32x128xf32>
    tpu.vector_store %arg20[%c0_21, %c0_22], %20 {strides = array<i32>} : memref<32x128xf32, #tpu.memory_space<vmem>>, vector<32x128xf32>,
    %c0_23 = arith.constant 0 : index
    %c0_24 = arith.constant 0 : index
    %22 = vector.load %arg21[%c0_23, %c0_24] : memref<32x128xf32, #tpu.memory_space<vmem>>, vector<32x128xf32>
    %c0_25 = arith.constant 0 : index
    %c0_26 = arith.constant 0 : index
    %23 = vector.load %arg6[%c0_25, %c0_26] : memref<32x256xf32, #tpu.memory_space<vmem>>, vector<32x256xf32>
    %24 = arith.mulf %16, %16 : vector<256x128xf32>
    %cst_27 = arith.constant dense<0.000000e+00> : vector<32x128xf32>
    %25 = tpu.matmul %23, %24, %cst_27 {dimension_numbers = #tpu.dot_dimension_numbers<[1], [0], [0], [1], [0, 0, 1, 1], [], []>} : vector<32x256xf32>, vector<256x128xf32>, vector<32x128xf32> -> vector<32x128xf32>
    %26 = arith.addf %22, %25 : vector<32x128xf32>
    %c0_28 = arith.constant 0 : index
    %c0_29 = arith.constant 0 : index
    %27 = vector.load %arg21[%c0_28, %c0_29] : memref<32x128xf32, #tpu.memory_space<vmem>>, vector<32x128xf32>
    tpu.vector_store %arg21[%c0_28, %c0_29], %26 {strides = array<i32>} : memref<32x128xf32, #tpu.memory_space<vmem>>, vector<32x128xf32>,
    %28 = vector.shape_cast %16 : vector<256x128xf32> to vector<32x8x128xf32>
    %c0_30 = arith.constant 0 : index
    %c0_31 = arith.constant 0 : index
    %c0_32 = arith.constant 0 : index
    %29 = vector.load %arg19[%c0_30, %c0_31, %c0_32] : memref<32x8x128xf32, #tpu.memory_space<vmem>>, vector<32x8x128xf32>
    tpu.vector_store %arg19[%c0_30, %c0_31, %c0_32], %28 {strides = array<i32>} : memref<32x8x128xf32, #tpu.memory_space<vmem>>, vector<32x8x128xf32>,
    %c0_i32_33 = arith.constant 0 : i32
    %c32_i32 = arith.constant 32 : i32
    %30 = arith.addi %c0_i32_33, %c32_i32 : i32
    %c1_i32 = arith.constant 1 : i32
    scf.for %arg25 = %c0_i32_33 to %30 step %c1_i32  : i32 {
      %c1_i32_37 = arith.constant 1 : i32
      %34 = arith.muli %arg25, %c1_i32_37 : i32
      %c0_i32_38 = arith.constant 0 : i32
      %35 = arith.addi %c0_i32_38, %34 : i32
      %36 = arith.index_cast %35 : i32 to index
      %c0_39 = arith.constant 0 : index
      %c0_40 = arith.constant 0 : index
      %37 = vector.load %arg19[%36, %c0_39, %c0_40] : memref<32x8x128xf32, #tpu.memory_space<vmem>>, vector<1x8x128xf32>
      %38 = vector.shape_cast %37 : vector<1x8x128xf32> to vector<8x128xf32>
      %c256_i32 = arith.constant 256 : i32
      %39 = arith.muli %arg0, %c256_i32 : i32
      %c8_i32 = arith.constant 8 : i32
      %40 = arith.muli %35, %c8_i32 : i32
      %41 = arith.addi %39, %40 : i32
      %c0_i32_41 = arith.constant 0 : i32
      %42 = arith.addi %41, %c0_i32_41 : i32
      %c512_i32 = arith.constant 512 : i32
      %43 = arith.cmpi slt, %42, %c512_i32 : i32
      %44 = arith.extui %43 : i1 to i32
      %c0_i32_42 = arith.constant 0 : i32
      %45 = arith.cmpi ne, %44, %c0_i32_42 : i32
      scf.if %45 {
        %95 = arith.index_cast %42 : i32 to index
        %96 = memref.load %arg1[%95] : memref<512xi32, #tpu.memory_space<smem>>
        %97 = vector.extract_strided_slice %38 {offsets = [0, 0], sizes = [1, 128], strides = [1, 1]} : vector<8x128xf32> to vector<1x128xf32>
        %98 = arith.index_cast %96 : i32 to index
        %c0_72 = arith.constant 0 : index
        %c0_73 = arith.constant 0 : index
        %99 = vector.load %arg22[%98, %c0_72, %c0_73] : memref<32x1x128xf32, #tpu.memory_space<vmem>>, vector<1x1x128xf32>
        %100 = vector.shape_cast %99 : vector<1x1x128xf32> to vector<1x128xf32>
        %101 = arith.minimumf %100, %97 : vector<1x128xf32>
        %102 = arith.index_cast %96 : i32 to index
        %c0_74 = arith.constant 0 : index
        %c0_75 = arith.constant 0 : index
        %103 = vector.load %arg22[%102, %c0_74, %c0_75] : memref<32x1x128xf32, #tpu.memory_space<vmem>>, vector<1x1x128xf32>
        %104 = vector.shape_cast %103 : vector<1x1x128xf32> to vector<1x128xf32>
        %105 = vector.shape_cast %101 : vector<1x128xf32> to vector<1x1x128xf32>
        tpu.vector_store %arg22[%102, %c0_74, %c0_75], %105 {strides = array<i32>} : memref<32x1x128xf32, #tpu.memory_space<vmem>>, vector<1x1x128xf32>,
        %106 = arith.index_cast %96 : i32 to index
        %c0_76 = arith.constant 0 : index
        %c0_77 = arith.constant 0 : index
        %107 = vector.load %arg23[%106, %c0_76, %c0_77] : memref<32x1x128xf32, #tpu.memory_space<vmem>>, vector<1x1x128xf32>
        %108 = vector.shape_cast %107 : vector<1x1x128xf32> to vector<1x128xf32>
        %109 = arith.maximumf %108, %97 : vector<1x128xf32>
        %110 = arith.index_cast %96 : i32 to index
        %c0_78 = arith.constant 0 : index
        %c0_79 = arith.constant 0 : index
        %111 = vector.load %arg23[%110, %c0_78, %c0_79] : memref<32x1x128xf32, #tpu.memory_space<vmem>>, vector<1x1x128xf32>
        %112 = vector.shape_cast %111 : vector<1x1x128xf32> to vector<1x128xf32>
        %113 = vector.shape_cast %109 : vector<1x128xf32> to vector<1x1x128xf32>
        tpu.vector_store %arg23[%110, %c0_78, %c0_79], %113 {strides = array<i32>} : memref<32x1x128xf32, #tpu.memory_space<vmem>>, vector<1x1x128xf32>,
      } else {
      }
      %c256_i32_43 = arith.constant 256 : i32
      %46 = arith.muli %arg0, %c256_i32_43 : i32
      %c8_i32_44 = arith.constant 8 : i32
      %47 = arith.muli %35, %c8_i32_44 : i32
      %48 = arith.addi %46, %47 : i32
      %c1_i32_45 = arith.constant 1 : i32
      %49 = arith.addi %48, %c1_i32_45 : i32
      %c512_i32_46 = arith.constant 512 : i32
      %50 = arith.cmpi slt, %49, %c512_i32_46 : i32
      %51 = arith.extui %50 : i1 to i32
      %c0_i32_47 = arith.constant 0 : i32
      %52 = arith.cmpi ne, %51, %c0_i32_47 : i32
      scf.if %52 {
        %95 = arith.index_cast %49 : i32 to index
        %96 = memref.load %arg1[%95] : memref<512xi32, #tpu.memory_space<smem>>
        %97 = vector.extract_strided_slice %38 {offsets = [1, 0], sizes = [1, 128], strides = [1, 1]} : vector<8x128xf32> to vector<1x128xf32>
        %98 = arith.index_cast %96 : i32 to index
        %c0_72 = arith.constant 0 : index
        %c0_73 = arith.constant 0 : index
        %99 = vector.load %arg22[%98, %c0_72, %c0_73] : memref<32x1x128xf32, #tpu.memory_space<vmem>>, vector<1x1x128xf32>
        %100 = vector.shape_cast %99 : vector<1x1x128xf32> to vector<1x128xf32>
        %101 = arith.minimumf %100, %97 : vector<1x128xf32>
        %102 = arith.index_cast %96 : i32 to index
        %c0_74 = arith.constant 0 : index
        %c0_75 = arith.constant 0 : index
        %103 = vector.load %arg22[%102, %c0_74, %c0_75] : memref<32x1x128xf32, #tpu.memory_space<vmem>>, vector<1x1x128xf32>
        %104 = vector.shape_cast %103 : vector<1x1x128xf32> to vector<1x128xf32>
        %105 = vector.shape_cast %101 : vector<1x128xf32> to vector<1x1x128xf32>
        tpu.vector_store %arg22[%102, %c0_74, %c0_75], %105 {strides = array<i32>} : memref<32x1x128xf32, #tpu.memory_space<vmem>>, vector<1x1x128xf32>,
        %106 = arith.index_cast %96 : i32 to index
        %c0_76 = arith.constant 0 : index
        %c0_77 = arith.constant 0 : index
        %107 = vector.load %arg23[%106, %c0_76, %c0_77] : memref<32x1x128xf32, #tpu.memory_space<vmem>>, vector<1x1x128xf32>
        %108 = vector.shape_cast %107 : vector<1x1x128xf32> to vector<1x128xf32>
        %109 = arith.maximumf %108, %97 : vector<1x128xf32>
        %110 = arith.index_cast %96 : i32 to index
        %c0_78 = arith.constant 0 : index
        %c0_79 = arith.constant 0 : index
        %111 = vector.load %arg23[%110, %c0_78, %c0_79] : memref<32x1x128xf32, #tpu.memory_space<vmem>>, vector<1x1x128xf32>
        %112 = vector.shape_cast %111 : vector<1x1x128xf32> to vector<1x128xf32>
        %113 = vector.shape_cast %109 : vector<1x128xf32> to vector<1x1x128xf32>
        tpu.vector_store %arg23[%110, %c0_78, %c0_79], %113 {strides = array<i32>} : memref<32x1x128xf32, #tpu.memory_space<vmem>>, vector<1x1x128xf32>,
      } else {
      }
      %c256_i32_48 = arith.constant 256 : i32
      %53 = arith.muli %arg0, %c256_i32_48 : i32
      %c8_i32_49 = arith.constant 8 : i32
      %54 = arith.muli %35, %c8_i32_49 : i32
      %55 = arith.addi %53, %54 : i32
      %c2_i32 = arith.constant 2 : i32
      %56 = arith.addi %55, %c2_i32 : i32
      %c512_i32_50 = arith.constant 512 : i32
      %57 = arith.cmpi slt, %56, %c512_i32_50 : i32
      %58 = arith.extui %57 : i1 to i32
      %c0_i32_51 = arith.constant 0 : i32
      %59 = arith.cmpi ne, %58, %c0_i32_51 : i32
      scf.if %59 {
        %95 = arith.index_cast %56 : i32 to index
        %96 = memref.load %arg1[%95] : memref<512xi32, #tpu.memory_space<smem>>
        %97 = vector.extract_strided_slice %38 {offsets = [2, 0], sizes = [1, 128], strides = [1, 1]} : vector<8x128xf32> to vector<1x128xf32>
        %98 = arith.index_cast %96 : i32 to index
        %c0_72 = arith.constant 0 : index
        %c0_73 = arith.constant 0 : index
        %99 = vector.load %arg22[%98, %c0_72, %c0_73] : memref<32x1x128xf32, #tpu.memory_space<vmem>>, vector<1x1x128xf32>
        %100 = vector.shape_cast %99 : vector<1x1x128xf32> to vector<1x128xf32>
        %101 = arith.minimumf %100, %97 : vector<1x128xf32>
        %102 = arith.index_cast %96 : i32 to index
        %c0_74 = arith.constant 0 : index
        %c0_75 = arith.constant 0 : index
        %103 = vector.load %arg22[%102, %c0_74, %c0_75] : memref<32x1x128xf32, #tpu.memory_space<vmem>>, vector<1x1x128xf32>
        %104 = vector.shape_cast %103 : vector<1x1x128xf32> to vector<1x128xf32>
        %105 = vector.shape_cast %101 : vector<1x128xf32> to vector<1x1x128xf32>
        tpu.vector_store %arg22[%102, %c0_74, %c0_75], %105 {strides = array<i32>} : memref<32x1x128xf32, #tpu.memory_space<vmem>>, vector<1x1x128xf32>,
        %106 = arith.index_cast %96 : i32 to index
        %c0_76 = arith.constant 0 : index
        %c0_77 = arith.constant 0 : index
        %107 = vector.load %arg23[%106, %c0_76, %c0_77] : memref<32x1x128xf32, #tpu.memory_space<vmem>>, vector<1x1x128xf32>
        %108 = vector.shape_cast %107 : vector<1x1x128xf32> to vector<1x128xf32>
        %109 = arith.maximumf %108, %97 : vector<1x128xf32>
        %110 = arith.index_cast %96 : i32 to index
        %c0_78 = arith.constant 0 : index
        %c0_79 = arith.constant 0 : index
        %111 = vector.load %arg23[%110, %c0_78, %c0_79] : memref<32x1x128xf32, #tpu.memory_space<vmem>>, vector<1x1x128xf32>
        %112 = vector.shape_cast %111 : vector<1x1x128xf32> to vector<1x128xf32>
        %113 = vector.shape_cast %109 : vector<1x128xf32> to vector<1x1x128xf32>
        tpu.vector_store %arg23[%110, %c0_78, %c0_79], %113 {strides = array<i32>} : memref<32x1x128xf32, #tpu.memory_space<vmem>>, vector<1x1x128xf32>,
      } else {
      }
      %c256_i32_52 = arith.constant 256 : i32
      %60 = arith.muli %arg0, %c256_i32_52 : i32
      %c8_i32_53 = arith.constant 8 : i32
      %61 = arith.muli %35, %c8_i32_53 : i32
      %62 = arith.addi %60, %61 : i32
      %c3_i32 = arith.constant 3 : i32
      %63 = arith.addi %62, %c3_i32 : i32
      %c512_i32_54 = arith.constant 512 : i32
      %64 = arith.cmpi slt, %63, %c512_i32_54 : i32
      %65 = arith.extui %64 : i1 to i32
      %c0_i32_55 = arith.constant 0 : i32
      %66 = arith.cmpi ne, %65, %c0_i32_55 : i32
      scf.if %66 {
        %95 = arith.index_cast %63 : i32 to index
        %96 = memref.load %arg1[%95] : memref<512xi32, #tpu.memory_space<smem>>
        %97 = vector.extract_strided_slice %38 {offsets = [3, 0], sizes = [1, 128], strides = [1, 1]} : vector<8x128xf32> to vector<1x128xf32>
        %98 = arith.index_cast %96 : i32 to index
        %c0_72 = arith.constant 0 : index
        %c0_73 = arith.constant 0 : index
        %99 = vector.load %arg22[%98, %c0_72, %c0_73] : memref<32x1x128xf32, #tpu.memory_space<vmem>>, vector<1x1x128xf32>
        %100 = vector.shape_cast %99 : vector<1x1x128xf32> to vector<1x128xf32>
        %101 = arith.minimumf %100, %97 : vector<1x128xf32>
        %102 = arith.index_cast %96 : i32 to index
        %c0_74 = arith.constant 0 : index
        %c0_75 = arith.constant 0 : index
        %103 = vector.load %arg22[%102, %c0_74, %c0_75] : memref<32x1x128xf32, #tpu.memory_space<vmem>>, vector<1x1x128xf32>
        %104 = vector.shape_cast %103 : vector<1x1x128xf32> to vector<1x128xf32>
        %105 = vector.shape_cast %101 : vector<1x128xf32> to vector<1x1x128xf32>
        tpu.vector_store %arg22[%102, %c0_74, %c0_75], %105 {strides = array<i32>} : memref<32x1x128xf32, #tpu.memory_space<vmem>>, vector<1x1x128xf32>,
        %106 = arith.index_cast %96 : i32 to index
        %c0_76 = arith.constant 0 : index
        %c0_77 = arith.constant 0 : index
        %107 = vector.load %arg23[%106, %c0_76, %c0_77] : memref<32x1x128xf32, #tpu.memory_space<vmem>>, vector<1x1x128xf32>
        %108 = vector.shape_cast %107 : vector<1x1x128xf32> to vector<1x128xf32>
        %109 = arith.maximumf %108, %97 : vector<1x128xf32>
        %110 = arith.index_cast %96 : i32 to index
        %c0_78 = arith.constant 0 : index
        %c0_79 = arith.constant 0 : index
        %111 = vector.load %arg23[%110, %c0_78, %c0_79] : memref<32x1x128xf32, #tpu.memory_space<vmem>>, vector<1x1x128xf32>
        %112 = vector.shape_cast %111 : vector<1x1x128xf32> to vector<1x128xf32>
        %113 = vector.shape_cast %109 : vector<1x128xf32> to vector<1x1x128xf32>
        tpu.vector_store %arg23[%110, %c0_78, %c0_79], %113 {strides = array<i32>} : memref<32x1x128xf32, #tpu.memory_space<vmem>>, vector<1x1x128xf32>,
      } else {
      }
      %c256_i32_56 = arith.constant 256 : i32
      %67 = arith.muli %arg0, %c256_i32_56 : i32
      %c8_i32_57 = arith.constant 8 : i32
      %68 = arith.muli %35, %c8_i32_57 : i32
      %69 = arith.addi %67, %68 : i32
      %c4_i32 = arith.constant 4 : i32
      %70 = arith.addi %69, %c4_i32 : i32
      %c512_i32_58 = arith.constant 512 : i32
      %71 = arith.cmpi slt, %70, %c512_i32_58 : i32
      %72 = arith.extui %71 : i1 to i32
      %c0_i32_59 = arith.constant 0 : i32
      %73 = arith.cmpi ne, %72, %c0_i32_59 : i32
      scf.if %73 {
        %95 = arith.index_cast %70 : i32 to index
        %96 = memref.load %arg1[%95] : memref<512xi32, #tpu.memory_space<smem>>
        %97 = vector.extract_strided_slice %38 {offsets = [4, 0], sizes = [1, 128], strides = [1, 1]} : vector<8x128xf32> to vector<1x128xf32>
        %98 = arith.index_cast %96 : i32 to index
        %c0_72 = arith.constant 0 : index
        %c0_73 = arith.constant 0 : index
        %99 = vector.load %arg22[%98, %c0_72, %c0_73] : memref<32x1x128xf32, #tpu.memory_space<vmem>>, vector<1x1x128xf32>
        %100 = vector.shape_cast %99 : vector<1x1x128xf32> to vector<1x128xf32>
        %101 = arith.minimumf %100, %97 : vector<1x128xf32>
        %102 = arith.index_cast %96 : i32 to index
        %c0_74 = arith.constant 0 : index
        %c0_75 = arith.constant 0 : index
        %103 = vector.load %arg22[%102, %c0_74, %c0_75] : memref<32x1x128xf32, #tpu.memory_space<vmem>>, vector<1x1x128xf32>
        %104 = vector.shape_cast %103 : vector<1x1x128xf32> to vector<1x128xf32>
        %105 = vector.shape_cast %101 : vector<1x128xf32> to vector<1x1x128xf32>
        tpu.vector_store %arg22[%102, %c0_74, %c0_75], %105 {strides = array<i32>} : memref<32x1x128xf32, #tpu.memory_space<vmem>>, vector<1x1x128xf32>,
        %106 = arith.index_cast %96 : i32 to index
        %c0_76 = arith.constant 0 : index
        %c0_77 = arith.constant 0 : index
        %107 = vector.load %arg23[%106, %c0_76, %c0_77] : memref<32x1x128xf32, #tpu.memory_space<vmem>>, vector<1x1x128xf32>
        %108 = vector.shape_cast %107 : vector<1x1x128xf32> to vector<1x128xf32>
        %109 = arith.maximumf %108, %97 : vector<1x128xf32>
        %110 = arith.index_cast %96 : i32 to index
        %c0_78 = arith.constant 0 : index
        %c0_79 = arith.constant 0 : index
        %111 = vector.load %arg23[%110, %c0_78, %c0_79] : memref<32x1x128xf32, #tpu.memory_space<vmem>>, vector<1x1x128xf32>
        %112 = vector.shape_cast %111 : vector<1x1x128xf32> to vector<1x128xf32>
        %113 = vector.shape_cast %109 : vector<1x128xf32> to vector<1x1x128xf32>
        tpu.vector_store %arg23[%110, %c0_78, %c0_79], %113 {strides = array<i32>} : memref<32x1x128xf32, #tpu.memory_space<vmem>>, vector<1x1x128xf32>,
      } else {
      }
      %c256_i32_60 = arith.constant 256 : i32
      %74 = arith.muli %arg0, %c256_i32_60 : i32
      %c8_i32_61 = arith.constant 8 : i32
      %75 = arith.muli %35, %c8_i32_61 : i32
      %76 = arith.addi %74, %75 : i32
      %c5_i32 = arith.constant 5 : i32
      %77 = arith.addi %76, %c5_i32 : i32
      %c512_i32_62 = arith.constant 512 : i32
      %78 = arith.cmpi slt, %77, %c512_i32_62 : i32
      %79 = arith.extui %78 : i1 to i32
      %c0_i32_63 = arith.constant 0 : i32
      %80 = arith.cmpi ne, %79, %c0_i32_63 : i32
      scf.if %80 {
        %95 = arith.index_cast %77 : i32 to index
        %96 = memref.load %arg1[%95] : memref<512xi32, #tpu.memory_space<smem>>
        %97 = vector.extract_strided_slice %38 {offsets = [5, 0], sizes = [1, 128], strides = [1, 1]} : vector<8x128xf32> to vector<1x128xf32>
        %98 = arith.index_cast %96 : i32 to index
        %c0_72 = arith.constant 0 : index
        %c0_73 = arith.constant 0 : index
        %99 = vector.load %arg22[%98, %c0_72, %c0_73] : memref<32x1x128xf32, #tpu.memory_space<vmem>>, vector<1x1x128xf32>
        %100 = vector.shape_cast %99 : vector<1x1x128xf32> to vector<1x128xf32>
        %101 = arith.minimumf %100, %97 : vector<1x128xf32>
        %102 = arith.index_cast %96 : i32 to index
        %c0_74 = arith.constant 0 : index
        %c0_75 = arith.constant 0 : index
        %103 = vector.load %arg22[%102, %c0_74, %c0_75] : memref<32x1x128xf32, #tpu.memory_space<vmem>>, vector<1x1x128xf32>
        %104 = vector.shape_cast %103 : vector<1x1x128xf32> to vector<1x128xf32>
        %105 = vector.shape_cast %101 : vector<1x128xf32> to vector<1x1x128xf32>
        tpu.vector_store %arg22[%102, %c0_74, %c0_75], %105 {strides = array<i32>} : memref<32x1x128xf32, #tpu.memory_space<vmem>>, vector<1x1x128xf32>,
        %106 = arith.index_cast %96 : i32 to index
        %c0_76 = arith.constant 0 : index
        %c0_77 = arith.constant 0 : index
        %107 = vector.load %arg23[%106, %c0_76, %c0_77] : memref<32x1x128xf32, #tpu.memory_space<vmem>>, vector<1x1x128xf32>
        %108 = vector.shape_cast %107 : vector<1x1x128xf32> to vector<1x128xf32>
        %109 = arith.maximumf %108, %97 : vector<1x128xf32>
        %110 = arith.index_cast %96 : i32 to index
        %c0_78 = arith.constant 0 : index
        %c0_79 = arith.constant 0 : index
        %111 = vector.load %arg23[%110, %c0_78, %c0_79] : memref<32x1x128xf32, #tpu.memory_space<vmem>>, vector<1x1x128xf32>
        %112 = vector.shape_cast %111 : vector<1x1x128xf32> to vector<1x128xf32>
        %113 = vector.shape_cast %109 : vector<1x128xf32> to vector<1x1x128xf32>
        tpu.vector_store %arg23[%110, %c0_78, %c0_79], %113 {strides = array<i32>} : memref<32x1x128xf32, #tpu.memory_space<vmem>>, vector<1x1x128xf32>,
      } else {
      }
      %c256_i32_64 = arith.constant 256 : i32
      %81 = arith.muli %arg0, %c256_i32_64 : i32
      %c8_i32_65 = arith.constant 8 : i32
      %82 = arith.muli %35, %c8_i32_65 : i32
      %83 = arith.addi %81, %82 : i32
      %c6_i32 = arith.constant 6 : i32
      %84 = arith.addi %83, %c6_i32 : i32
      %c512_i32_66 = arith.constant 512 : i32
      %85 = arith.cmpi slt, %84, %c512_i32_66 : i32
      %86 = arith.extui %85 : i1 to i32
      %c0_i32_67 = arith.constant 0 : i32
      %87 = arith.cmpi ne, %86, %c0_i32_67 : i32
      scf.if %87 {
        %95 = arith.index_cast %84 : i32 to index
        %96 = memref.load %arg1[%95] : memref<512xi32, #tpu.memory_space<smem>>
        %97 = vector.extract_strided_slice %38 {offsets = [6, 0], sizes = [1, 128], strides = [1, 1]} : vector<8x128xf32> to vector<1x128xf32>
        %98 = arith.index_cast %96 : i32 to index
        %c0_72 = arith.constant 0 : index
        %c0_73 = arith.constant 0 : index
        %99 = vector.load %arg22[%98, %c0_72, %c0_73] : memref<32x1x128xf32, #tpu.memory_space<vmem>>, vector<1x1x128xf32>
        %100 = vector.shape_cast %99 : vector<1x1x128xf32> to vector<1x128xf32>
        %101 = arith.minimumf %100, %97 : vector<1x128xf32>
        %102 = arith.index_cast %96 : i32 to index
        %c0_74 = arith.constant 0 : index
        %c0_75 = arith.constant 0 : index
        %103 = vector.load %arg22[%102, %c0_74, %c0_75] : memref<32x1x128xf32, #tpu.memory_space<vmem>>, vector<1x1x128xf32>
        %104 = vector.shape_cast %103 : vector<1x1x128xf32> to vector<1x128xf32>
        %105 = vector.shape_cast %101 : vector<1x128xf32> to vector<1x1x128xf32>
        tpu.vector_store %arg22[%102, %c0_74, %c0_75], %105 {strides = array<i32>} : memref<32x1x128xf32, #tpu.memory_space<vmem>>, vector<1x1x128xf32>,
        %106 = arith.index_cast %96 : i32 to index
        %c0_76 = arith.constant 0 : index
        %c0_77 = arith.constant 0 : index
        %107 = vector.load %arg23[%106, %c0_76, %c0_77] : memref<32x1x128xf32, #tpu.memory_space<vmem>>, vector<1x1x128xf32>
        %108 = vector.shape_cast %107 : vector<1x1x128xf32> to vector<1x128xf32>
        %109 = arith.maximumf %108, %97 : vector<1x128xf32>
        %110 = arith.index_cast %96 : i32 to index
        %c0_78 = arith.constant 0 : index
        %c0_79 = arith.constant 0 : index
        %111 = vector.load %arg23[%110, %c0_78, %c0_79] : memref<32x1x128xf32, #tpu.memory_space<vmem>>, vector<1x1x128xf32>
        %112 = vector.shape_cast %111 : vector<1x1x128xf32> to vector<1x128xf32>
        %113 = vector.shape_cast %109 : vector<1x128xf32> to vector<1x1x128xf32>
        tpu.vector_store %arg23[%110, %c0_78, %c0_79], %113 {strides = array<i32>} : memref<32x1x128xf32, #tpu.memory_space<vmem>>, vector<1x1x128xf32>,
      } else {
      }
      %c256_i32_68 = arith.constant 256 : i32
      %88 = arith.muli %arg0, %c256_i32_68 : i32
      %c8_i32_69 = arith.constant 8 : i32
      %89 = arith.muli %35, %c8_i32_69 : i32
      %90 = arith.addi %88, %89 : i32
      %c7_i32 = arith.constant 7 : i32
      %91 = arith.addi %90, %c7_i32 : i32
      %c512_i32_70 = arith.constant 512 : i32
      %92 = arith.cmpi slt, %91, %c512_i32_70 : i32
      %93 = arith.extui %92 : i1 to i32
      %c0_i32_71 = arith.constant 0 : i32
      %94 = arith.cmpi ne, %93, %c0_i32_71 : i32
      scf.if %94 {
        %95 = arith.index_cast %91 : i32 to index
        %96 = memref.load %arg1[%95] : memref<512xi32, #tpu.memory_space<smem>>
        %97 = vector.extract_strided_slice %38 {offsets = [7, 0], sizes = [1, 128], strides = [1, 1]} : vector<8x128xf32> to vector<1x128xf32>
        %98 = arith.index_cast %96 : i32 to index
        %c0_72 = arith.constant 0 : index
        %c0_73 = arith.constant 0 : index
        %99 = vector.load %arg22[%98, %c0_72, %c0_73] : memref<32x1x128xf32, #tpu.memory_space<vmem>>, vector<1x1x128xf32>
        %100 = vector.shape_cast %99 : vector<1x1x128xf32> to vector<1x128xf32>
        %101 = arith.minimumf %100, %97 : vector<1x128xf32>
        %102 = arith.index_cast %96 : i32 to index
        %c0_74 = arith.constant 0 : index
        %c0_75 = arith.constant 0 : index
        %103 = vector.load %arg22[%102, %c0_74, %c0_75] : memref<32x1x128xf32, #tpu.memory_space<vmem>>, vector<1x1x128xf32>
        %104 = vector.shape_cast %103 : vector<1x1x128xf32> to vector<1x128xf32>
        %105 = vector.shape_cast %101 : vector<1x128xf32> to vector<1x1x128xf32>
        tpu.vector_store %arg22[%102, %c0_74, %c0_75], %105 {strides = array<i32>} : memref<32x1x128xf32, #tpu.memory_space<vmem>>, vector<1x1x128xf32>,
        %106 = arith.index_cast %96 : i32 to index
        %c0_76 = arith.constant 0 : index
        %c0_77 = arith.constant 0 : index
        %107 = vector.load %arg23[%106, %c0_76, %c0_77] : memref<32x1x128xf32, #tpu.memory_space<vmem>>, vector<1x1x128xf32>
        %108 = vector.shape_cast %107 : vector<1x1x128xf32> to vector<1x128xf32>
        %109 = arith.maximumf %108, %97 : vector<1x128xf32>
        %110 = arith.index_cast %96 : i32 to index
        %c0_78 = arith.constant 0 : index
        %c0_79 = arith.constant 0 : index
        %111 = vector.load %arg23[%110, %c0_78, %c0_79] : memref<32x1x128xf32, #tpu.memory_space<vmem>>, vector<1x1x128xf32>
        %112 = vector.shape_cast %111 : vector<1x1x128xf32> to vector<1x128xf32>
        %113 = vector.shape_cast %109 : vector<1x128xf32> to vector<1x1x128xf32>
        tpu.vector_store %arg23[%110, %c0_78, %c0_79], %113 {strides = array<i32>} : memref<32x1x128xf32, #tpu.memory_space<vmem>>, vector<1x1x128xf32>,
      } else {
      }
    }
    %c32_i32_34 = arith.constant 32 : i32
    %c1_i32_35 = arith.constant 1 : i32
    %31 = arith.cmpi eq, %arg0, %c1_i32_35 : i32
    %32 = arith.extui %31 : i1 to i32
    %c0_i32_36 = arith.constant 0 : i32
    %33 = arith.cmpi ne, %32, %c0_i32_36 : i32
    scf.if %33 {
      %c0_37 = arith.constant 0 : index
      %c0_38 = arith.constant 0 : index
      %34 = vector.load %arg7[%c0_37, %c0_38] : memref<32x1xf32, #tpu.memory_space<vmem>>, vector<32x1xf32>
      %cst_39 = arith.constant 0.000000e+00 : f32
      %35 = vector.broadcast %cst_39 : f32 to vector<32x1xf32>
      %36 = arith.cmpf ogt, %34, %35 : vector<32x1xf32>
      %cst_40 = arith.constant 1.000000e+00 : f32
      %37 = vector.broadcast %cst_40 : f32 to vector<32x1xf32>
      %38 = arith.maximumf %34, %37 : vector<32x1xf32>
      %39 = tpu.reciprocal %38 {approx = true} : vector<32x1xf32> -> vector<32x1xf32>
      %c0_41 = arith.constant 0 : index
      %c0_42 = arith.constant 0 : index
      %40 = vector.load %arg20[%c0_41, %c0_42] : memref<32x128xf32, #tpu.memory_space<vmem>>, vector<32x128xf32>
      %41 = vector.broadcast %39 : vector<32x1xf32> to vector<32x128xf32>
      %42 = arith.mulf %40, %41 : vector<32x128xf32>
      %c0_43 = arith.constant 0 : index
      %c0_44 = arith.constant 0 : index
      %43 = vector.load %arg21[%c0_43, %c0_44] : memref<32x128xf32, #tpu.memory_space<vmem>>, vector<32x128xf32>
      %44 = vector.broadcast %39 : vector<32x1xf32> to vector<32x128xf32>
      %45 = arith.mulf %43, %44 : vector<32x128xf32>
      %46 = arith.mulf %42, %42 : vector<32x128xf32>
      %47 = arith.subf %45, %46 : vector<32x128xf32>
      %cst_45 = arith.constant 0.000000e+00 : f32
      %48 = vector.broadcast %cst_45 : f32 to vector<32x128xf32>
      %49 = arith.maximumf %47, %48 : vector<32x128xf32>
      %cst_46 = arith.constant 9.99999974E-6 : f32
      %50 = vector.broadcast %cst_46 : f32 to vector<32x128xf32>
      %51 = arith.addf %49, %50 : vector<32x128xf32>
      %52 = math.sqrt %51 : vector<32x128xf32>
      %c0_47 = arith.constant 0 : index
      %c0_48 = arith.constant 0 : index
      %c0_49 = arith.constant 0 : index
      %53 = vector.load %arg22[%c0_47, %c0_48, %c0_49] : memref<32x1x128xf32, #tpu.memory_space<vmem>>, vector<32x1x128xf32>
      %54 = vector.shape_cast %53 : vector<32x1x128xf32> to vector<32x128xf32>
      %cst_50 = arith.constant 0.000000e+00 : f32
      %55 = vector.shape_cast %36 : vector<32x1xi1> to vector<32x1xi1>
      %56 = vector.broadcast %55 : vector<32x1xi1> to vector<32x128xi1>
      %57 = vector.broadcast %cst_50 : f32 to vector<32x128xf32>
      %58 = arith.select %56, %54, %57 : vector<32x128xi1>, vector<32x128xf32>
      %c0_51 = arith.constant 0 : index
      %c0_52 = arith.constant 0 : index
      %c0_53 = arith.constant 0 : index
      %59 = vector.load %arg23[%c0_51, %c0_52, %c0_53] : memref<32x1x128xf32, #tpu.memory_space<vmem>>, vector<32x1x128xf32>
      %60 = vector.shape_cast %59 : vector<32x1x128xf32> to vector<32x128xf32>
      %cst_54 = arith.constant 0.000000e+00 : f32
      %61 = vector.shape_cast %36 : vector<32x1xi1> to vector<32x1xi1>
      %62 = vector.broadcast %61 : vector<32x1xi1> to vector<32x128xi1>
      %63 = vector.broadcast %cst_54 : f32 to vector<32x128xf32>
      %64 = arith.select %62, %60, %63 : vector<32x128xi1>, vector<32x128xf32>
      %c0_55 = arith.constant 0 : index
      %c0_56 = arith.constant 0 : index
      %65 = vector.load %arg24[%c0_55, %c0_56] : memref<32x640xf32, #tpu.memory_space<vmem>>, vector<32x128xf32>
      tpu.vector_store %arg24[%c0_55, %c0_56], %42 {strides = array<i32>} : memref<32x640xf32, #tpu.memory_space<vmem>>, vector<32x128xf32>,
      %c0_57 = arith.constant 0 : index
      %c128 = arith.constant 128 : index
      %66 = vector.load %arg24[%c0_57, %c128] : memref<32x640xf32, #tpu.memory_space<vmem>>, vector<32x128xf32>
      tpu.vector_store %arg24[%c0_57, %c128], %58 {strides = array<i32>} : memref<32x640xf32, #tpu.memory_space<vmem>>, vector<32x128xf32>,
      %c0_58 = arith.constant 0 : index
      %c256 = arith.constant 256 : index
      %67 = vector.load %arg24[%c0_58, %c256] : memref<32x640xf32, #tpu.memory_space<vmem>>, vector<32x128xf32>
      tpu.vector_store %arg24[%c0_58, %c256], %64 {strides = array<i32>} : memref<32x640xf32, #tpu.memory_space<vmem>>, vector<32x128xf32>,
      %c0_59 = arith.constant 0 : index
      %c384 = arith.constant 384 : index
      %68 = vector.load %arg24[%c0_59, %c384] : memref<32x640xf32, #tpu.memory_space<vmem>>, vector<32x128xf32>
      tpu.vector_store %arg24[%c0_59, %c384], %52 {strides = array<i32>} : memref<32x640xf32, #tpu.memory_space<vmem>>, vector<32x128xf32>,
      %c0_60 = arith.constant 0 : index
      %c512 = arith.constant 512 : index
      %69 = vector.load %arg24[%c0_60, %c512] : memref<32x640xf32, #tpu.memory_space<vmem>>, vector<32x128xf32>
      tpu.vector_store %arg24[%c0_60, %c512], %40 {strides = array<i32>} : memref<32x640xf32, #tpu.memory_space<vmem>>, vector<32x128xf32>,
      %cst_61 = arith.constant 1.000000e+00 : f32
      %70 = vector.broadcast %cst_61 : f32 to vector<32x1xf32>
      %71 = arith.addf %38, %70 : vector<32x1xf32>
      %72 = math.log %71 : vector<32x1xf32>
      %cst_62 = arith.constant 0.355950594 : f32
      %73 = vector.broadcast %cst_62 : f32 to vector<32x1xf32>
      %74 = arith.mulf %72, %73 : vector<32x1xf32>
      %75 = tpu.reciprocal %72 {approx = true} : vector<32x1xf32> -> vector<32x1xf32>
      %cst_63 = arith.constant 2.80937862 : f32
      %76 = vector.broadcast %cst_63 : f32 to vector<32x1xf32>
      %77 = arith.mulf %76, %75 : vector<32x1xf32>
      %c0_64 = arith.constant 0 : index
      %c0_65 = arith.constant 0 : index
      %78 = vector.load %arg24[%c0_64, %c0_65] : memref<32x640xf32, #tpu.memory_space<vmem>>, vector<32x640xf32>
      %c0_66 = arith.constant 0 : index
      %c0_67 = arith.constant 0 : index
      %79 = vector.load %arg2[%c0_66, %c0_67] : memref<32x128xf32, #tpu.memory_space<vmem>>, vector<32x128xf32>
      %c0_68 = arith.constant 0 : index
      %c0_69 = arith.constant 0 : index
      %80 = vector.load %arg12[%c0_68, %c0_69] : memref<2048x128xf32, #tpu.memory_space<vmem>>, vector<128x128xf32>
      %cst_70 = arith.constant dense<0.000000e+00> : vector<32x128xf32>
      %81 = tpu.matmul %79, %80, %cst_70 {dimension_numbers = #tpu.dot_dimension_numbers<[1], [0], [0], [1], [0, 0, 1, 1], [], []>} : vector<32x128xf32>, vector<128x128xf32>, vector<32x128xf32> -> vector<32x128xf32>
      %c128_71 = arith.constant 128 : index
      %c0_72 = arith.constant 0 : index
      %82 = vector.load %arg12[%c128_71, %c0_72] : memref<2048x128xf32, #tpu.memory_space<vmem>>, vector<640x128xf32>
      %cst_73 = arith.constant dense<0.000000e+00> : vector<32x128xf32>
      %83 = tpu.matmul %78, %82, %cst_73 {dimension_numbers = #tpu.dot_dimension_numbers<[1], [0], [0], [1], [0, 0, 1, 1], [], []>} : vector<32x640xf32>, vector<640x128xf32>, vector<32x128xf32> -> vector<32x128xf32>
      %84 = arith.addf %81, %83 : vector<32x128xf32>
      %85 = vector.broadcast %74 : vector<32x1xf32> to vector<32x640xf32>
      %86 = arith.mulf %85, %78 : vector<32x640xf32>
      %c768 = arith.constant 768 : index
      %c0_74 = arith.constant 0 : index
      %87 = vector.load %arg12[%c768, %c0_74] : memref<2048x128xf32, #tpu.memory_space<vmem>>, vector<640x128xf32>
      %cst_75 = arith.constant dense<0.000000e+00> : vector<32x128xf32>
      %88 = tpu.matmul %86, %87, %cst_75 {dimension_numbers = #tpu.dot_dimension_numbers<[1], [0], [0], [1], [0, 0, 1, 1], [], []>} : vector<32x640xf32>, vector<640x128xf32>, vector<32x128xf32> -> vector<32x128xf32>
      %89 = arith.addf %84, %88 : vector<32x128xf32>
      %90 = vector.broadcast %77 : vector<32x1xf32> to vector<32x640xf32>
      %91 = arith.mulf %90, %78 : vector<32x640xf32>
      %c1408 = arith.constant 1408 : index
      %c0_76 = arith.constant 0 : index
      %92 = vector.load %arg12[%c1408, %c0_76] : memref<2048x128xf32, #tpu.memory_space<vmem>>, vector<640x128xf32>
      %cst_77 = arith.constant dense<0.000000e+00> : vector<32x128xf32>
      %93 = tpu.matmul %91, %92, %cst_77 {dimension_numbers = #tpu.dot_dimension_numbers<[1], [0], [0], [1], [0, 0, 1, 1], [], []>} : vector<32x640xf32>, vector<640x128xf32>, vector<32x128xf32> -> vector<32x128xf32>
      %94 = arith.addf %89, %93 : vector<32x128xf32>
      %c0_78 = arith.constant 0 : index
      %c0_79 = arith.constant 0 : index
      %95 = vector.load %arg13[%c0_78, %c0_79] : memref<1x128xf32, #tpu.memory_space<vmem>>, vector<1x128xf32>
      %96 = vector.broadcast %95 : vector<1x128xf32> to vector<32x128xf32>
      %97 = arith.addf %94, %96 : vector<32x128xf32>
      %cst_80 = arith.constant dense<0.000000e+00> : vector<128xf32>
      %98 = vector.multi_reduction <add>, %97, %cst_80 [0] : vector<32x128xf32> to vector<128xf32>
      %99 = vector.shape_cast %98 : vector<128xf32> to vector<1x128xf32>
      %cst_81 = arith.constant 3.200000e+01 : f32
      %100 = vector.broadcast %cst_81 : f32 to vector<1x128xf32>
      %101 = arith.divf %99, %100 : vector<1x128xf32>
      %102 = vector.broadcast %101 : vector<1x128xf32> to vector<32x128xf32>
      %103 = arith.subf %97, %102 : vector<32x128xf32>
      %104 = vector.broadcast %101 : vector<1x128xf32> to vector<32x128xf32>
      %105 = arith.subf %97, %104 : vector<32x128xf32>
      %106 = arith.mulf %103, %105 : vector<32x128xf32>
      %cst_82 = arith.constant dense<0.000000e+00> : vector<128xf32>
      %107 = vector.multi_reduction <add>, %106, %cst_82 [0] : vector<32x128xf32> to vector<128xf32>
      %108 = vector.shape_cast %107 : vector<128xf32> to vector<1x128xf32>
      %cst_83 = arith.constant 3.200000e+01 : f32
      %109 = vector.broadcast %cst_83 : f32 to vector<1x128xf32>
      %110 = arith.divf %108, %109 : vector<1x128xf32>
      %111 = vector.broadcast %101 : vector<1x128xf32> to vector<32x128xf32>
      %112 = arith.subf %97, %111 : vector<32x128xf32>
      %cst_84 = arith.constant 9.99999974E-6 : f32
      %113 = vector.broadcast %cst_84 : f32 to vector<1x128xf32>
      %114 = arith.addf %110, %113 : vector<1x128xf32>
      %115 = math.rsqrt %114 : vector<1x128xf32>
      %116 = vector.broadcast %115 : vector<1x128xf32> to vector<32x128xf32>
      %117 = arith.mulf %112, %116 : vector<32x128xf32>
      %c0_85 = arith.constant 0 : index
      %c0_86 = arith.constant 0 : index
      %118 = vector.load %arg14[%c0_85, %c0_86] : memref<1x128xf32, #tpu.memory_space<vmem>>, vector<1x128xf32>
      %119 = vector.broadcast %118 : vector<1x128xf32> to vector<32x128xf32>
      %120 = arith.mulf %117, %119 : vector<32x128xf32>
      %c0_87 = arith.constant 0 : index
      %c0_88 = arith.constant 0 : index
      %121 = vector.load %arg15[%c0_87, %c0_88] : memref<1x128xf32, #tpu.memory_space<vmem>>, vector<1x128xf32>
      %122 = vector.broadcast %121 : vector<1x128xf32> to vector<32x128xf32>
      %123 = arith.addf %120, %122 : vector<32x128xf32>
      %cst_89 = arith.constant 0.000000e+00 : f32
      %124 = vector.broadcast %cst_89 : f32 to vector<32x128xf32>
      %125 = arith.maximumf %123, %124 : vector<32x128xf32>
      %c0_90 = arith.constant 0 : index
      %c0_91 = arith.constant 0 : index
      %126 = vector.load %arg16[%c0_90, %c0_91] : memref<32x128xf32, #tpu.memory_space<vmem>>, vector<32x128xf32>
      tpu.vector_store %arg16[%c0_90, %c0_91], %125 {strides = array<i32>} : memref<32x128xf32, #tpu.memory_space<vmem>>, vector<32x128xf32>,
    } else {
    }
    return
  }
  func.func @transform_0(%arg0: i32, %arg1: memref<512xi32, #tpu.memory_space<smem>>) -> (i32, i32) {
    %c0_i32 = arith.constant 0 : i32
    %c0_i32_0 = arith.constant 0 : i32
    %c0_i32_1 = arith.constant 0 : i32
    return %c0_i32, %c0_i32_0 : i32, i32
  }
  func.func @transform_1(%arg0: i32, %arg1: memref<512xi32, #tpu.memory_space<smem>>) -> (i32, i32) {
    %c0_i32 = arith.constant 0 : i32
    %c0_i32_0 = arith.constant 0 : i32
    return %arg0, %c0_i32 : i32, i32
  }
  func.func @transform_2(%arg0: i32, %arg1: memref<512xi32, #tpu.memory_space<smem>>) -> (i32, i32) {
    %c0_i32 = arith.constant 0 : i32
    %c0_i32_0 = arith.constant 0 : i32
    return %arg0, %c0_i32 : i32, i32
  }
  func.func @transform_3(%arg0: i32, %arg1: memref<512xi32, #tpu.memory_space<smem>>) -> (i32, i32) {
    %c0_i32 = arith.constant 0 : i32
    %c0_i32_0 = arith.constant 0 : i32
    return %arg0, %c0_i32 : i32, i32
  }
  func.func @transform_4(%arg0: i32, %arg1: memref<512xi32, #tpu.memory_space<smem>>) -> (i32, i32) {
    %c0_i32 = arith.constant 0 : i32
    %c0_i32_0 = arith.constant 0 : i32
    return %c0_i32, %arg0 : i32, i32
  }
  func.func @transform_5(%arg0: i32, %arg1: memref<512xi32, #tpu.memory_space<smem>>) -> (i32, i32) {
    %c0_i32 = arith.constant 0 : i32
    %c0_i32_0 = arith.constant 0 : i32
    %c0_i32_1 = arith.constant 0 : i32
    return %c0_i32, %c0_i32_0 : i32, i32
  }
  func.func @transform_6(%arg0: i32, %arg1: memref<512xi32, #tpu.memory_space<smem>>) -> (i32, i32) {
    %c0_i32 = arith.constant 0 : i32
    %c0_i32_0 = arith.constant 0 : i32
    %c0_i32_1 = arith.constant 0 : i32
    return %c0_i32, %c0_i32_0 : i32, i32
  }
  func.func @transform_7(%arg0: i32, %arg1: memref<512xi32, #tpu.memory_space<smem>>) -> (i32, i32) {
    %c0_i32 = arith.constant 0 : i32
    %c0_i32_0 = arith.constant 0 : i32
    %c0_i32_1 = arith.constant 0 : i32
    return %c0_i32, %c0_i32_0 : i32, i32
  }
  func.func @transform_8(%arg0: i32, %arg1: memref<512xi32, #tpu.memory_space<smem>>) -> (i32, i32) {
    %c0_i32 = arith.constant 0 : i32
    %c0_i32_0 = arith.constant 0 : i32
    %c0_i32_1 = arith.constant 0 : i32
    return %c0_i32, %c0_i32_0 : i32, i32
  }
  func.func @transform_9(%arg0: i32, %arg1: memref<512xi32, #tpu.memory_space<smem>>) -> (i32, i32) {
    %c0_i32 = arith.constant 0 : i32
    %c0_i32_0 = arith.constant 0 : i32
    %c0_i32_1 = arith.constant 0 : i32
    return %c0_i32, %c0_i32_0 : i32, i32
  }
  func.func @transform_10(%arg0: i32, %arg1: memref<512xi32, #tpu.memory_space<smem>>) -> (i32, i32) {
    %c0_i32 = arith.constant 0 : i32
    %c0_i32_0 = arith.constant 0 : i32
    %c0_i32_1 = arith.constant 0 : i32
    return %c0_i32, %c0_i32_0 : i32, i32
  }
  func.func @transform_11(%arg0: i32, %arg1: memref<512xi32, #tpu.memory_space<smem>>) -> (i32, i32) {
    %c0_i32 = arith.constant 0 : i32
    %c0_i32_0 = arith.constant 0 : i32
    %c0_i32_1 = arith.constant 0 : i32
    return %c0_i32, %c0_i32_0 : i32, i32
  }
  func.func @transform_12(%arg0: i32, %arg1: memref<512xi32, #tpu.memory_space<smem>>) -> (i32, i32) {
    %c0_i32 = arith.constant 0 : i32
    %c0_i32_0 = arith.constant 0 : i32
    %c0_i32_1 = arith.constant 0 : i32
    return %c0_i32, %c0_i32_0 : i32, i32
  }
  func.func @transform_13(%arg0: i32, %arg1: memref<512xi32, #tpu.memory_space<smem>>) -> (i32, i32) {
    %c0_i32 = arith.constant 0 : i32
    %c0_i32_0 = arith.constant 0 : i32
    %c0_i32_1 = arith.constant 0 : i32
    return %c0_i32, %c0_i32_0 : i32, i32
  }
  func.func @transform_14(%arg0: i32, %arg1: memref<512xi32, #tpu.memory_space<smem>>) -> (i32, i32) {
    %c0_i32 = arith.constant 0 : i32
    %c0_i32_0 = arith.constant 0 : i32
    %c0_i32_1 = arith.constant 0 : i32
    return %c0_i32, %c0_i32_0 : i32, i32
  }
}

</mosaic_0001>

<bundles_post_ra>
// kernel: tpu_custom_call.1
= control target key start
LH: loop header
LB: loop body
LE: loop exit
PB: predicated region body
PF: predicated region fallthrough
CT: control target
= control target key end

     0   :  { %s7959_s0 = inlined_call_operand.vmem [shape: s32[512], index: 0, kind: input, shape index: {}]   ;;  %s7960_s1 = inlined_call_operand.vmem [shape: f32[32,128], index: 1, kind: input, shape index: {}]   ;;  %s7961_s2 = inlined_call_operand.vmem [shape: f32[512,8], index: 2, kind: input, shape index: {}]   ;;  %s7962_s3 = inlined_call_operand.vmem [shape: f32[512,32], index: 3, kind: input, shape index: {}]   ;;  %s7963_s4 = inlined_call_operand.vmem [shape: f32[512,32], index: 4, kind: input, shape index: {}]   ;;  %s7964_s5 = inlined_call_operand.vmem [shape: f32[32,512], index: 5, kind: input, shape index: {}]   ;;  %s7965_s6 = inlined_call_operand.vmem [shape: f32[32,1], index: 6, kind: input, shape index: {}]   ;;  %s7966_s7 = inlined_call_operand.vmem [shape: f32[128,128], index: 7, kind: input, shape index: {}]   ;;  %s7967_s8 = inlined_call_operand.vmem [shape: f32[128,128], index: 8, kind: input, shape index: {}]   ;;  %s7968_s9 = inlined_call_operand.vmem [shape: f32[8,128], index: 9, kind: input, shape index: {}]   ;;  %s7969_s10 = inlined_call_operand.vmem [shape: f32[1,128], index: 10, kind: input, shape index: {}]   ;;  %s7970_s11 = inlined_call_operand.hbm [shape: f32[2048,128], index: 11, kind: input, shape index: {}]   ;;  %s7971_s12 = inlined_call_operand.vmem [shape: f32[1,128], index: 12, kind: input, shape index: {}]   ;;  %s7972_s13 = inlined_call_operand.vmem [shape: f32[1,128], index: 13, kind: input, shape index: {}]   ;;  %s7973_s14 = inlined_call_operand.vmem [shape: f32[1,128], index: 14, kind: input, shape index: {}]   ;;  %s7974_s15 = inlined_call_operand.hbm [shape: f32[32,128], index: 15, kind: output, shape index: {}]  }
   0x1   :  { %7984 = sst [smem:[#allocation33_spill]] %s7973_s14  ;;  %s20_s20 = sshll.u32 %s7959_s0, 4  ;;  %s21_s20 = int_to_ptr.vmem [resolvable:$true] %s20_s20 }
   0x2   :  { %7985 = sst [smem:[#allocation34_spill]] %s7974_s15  ;;  %s6414_s21 = scalar_lea.vmem %s21_s20, 64 }
   0x3   :  { %p6415_p0 = scmp.ne.s32.totalorder %s21_s20, %s6414_s21  ;;  %p6419_p1 = scmp.lt.s32.totalorder %s21_s20, %s21_s20 }
   0x4   :  { %p6420_p2 = scmp.lt.s32.totalorder %s6414_s21, %s6414_s21 }
   0x6   :  { %p6421_p3 = por %p6420_p2, %p6419_p1 }
   0x8   :  { %p6422_p4 = pnand %p6421_p3, %p6415_p0 }
   0xa   :  { %6425 = shalt.err (!%p6422_p4)  }
   0xb   :  { %s6522_s22 = smov [#allocation11]  }
   0xc   :  { %23 = dma.vmem_to_smem %s21_s20, 64, %s6522_s22, [#allocation10] }
   0xd   :  { %6496 = dma.done.wait [#allocation10], 64 }
   0xe   :  { %6497 = vsyncadd [#allocation10], 4294967232 }
   0xf   :  { %25 = sfence }
  0x10   :  { %26 = vsyncpa [#allocation14], 0 }
  0x11   :  { %27 = vsyncpa [#allocation15], 0  ;;  %s6624_s23 = smov 0   ;;  %s6626_s24 = smov 0  }
  0x12   :  { %s6628_s0 = smov 0  }
  0x13 LB: > { %s6640_s25 = sadd.s32 4294967295, %s6516_s0   ;;  %s6643_s26 = sadd.s32 1, %s6516_s0   ;;  %s6516_s0 = sphi %s6628_s0, %s8040_s0   ;;  %s6512_s24 = sphi %s6626_s24, %s8043_s24   ;;  %s6508_s23 = sphi %s6624_s23, %s8042_s23  }
  0x14   : > { %7986 = sst [smem:[#allocation20_spill]] %s6643_s26  ;;  %s136_s27 = ssub.s32 %s6516_s0, %s6643_s26 }
  0x15   : > { %s139_s28 = sadd.s32 1, %s6512_s24  ;;  %p137_p5 = scmp.eq.s32.totalorder %s136_s27, 0 }
  0x16   : > { %p146_p6 = scmp.ne.s32.totalorder %s6512_s24, %s6508_s23  ;;  %p147_p7 = scmp.eq.s32.totalorder %s6516_s0, 0 }
  0x17   : > { %p4648_p8 = scmp.ge.s32.totalorder %s6516_s0, 1  ;;  %p373_p10 = scmp.lt.s32.totalorder %s6516_s0, 3 }
  0x18   : > { %s6653_s29 = scalar_select %p137_p5, %s6512_s24, %s139_s28  }
  0x19   : > { %p6655_p9 = por %p147_p7, %p146_p6  ;;  %p7977_p12 = scmp.eq.s32.totalorder %s6640_s25, 0 }
  0x1a   : > { %7987 = sst [smem:[#allocation21_spill]] %s6653_s29  ;;  %p6662_p13 = pnand %p4648_p8, %p373_p10 }
  0x1b   : > { %s7988_s30 = scalar_select %p6655_p9, 1, 0 }
  0x1c   : > { %s7989_s16 = scalar_select %p6662_p13, 1, 0 }
  0x1d   : > { %s6523_s17 = smov [#allocation13]   ;;  %p6315_p0 = pneg %p6662_p13 }
  0x1e   : > { %s403_s18 = sshll.u32 %s6523_s17, 4  ;;  %s6426_s22 = scalar_lea.hbm %s7970_s11, 32768  ;;  %s404_s18 = int_to_ptr.vmem [resolvable:$true] %s403_s18 }
  0x1f   : > { %p6670_p1 = pnand %p7977_p12, %p6315_p0  ;;  %p6427_p2 = scmp.ne.s32.totalorder %s7970_s11, %s6426_s22 }
  0x20   : > { %p6433_p6 = scmp.lt.u32.totalorder %s6426_s22, %s7970_s11 }
  0x21   : > { %p6428_p3 = pneg %p6670_p1 }
  0x23   : > { %p6429_p4 = pnand %p6428_p3, %p6427_p2 }
  0x25   : > { %p6430_p5 = pneg %p6429_p4 }
  0x27   : > { %p6435_p7 = pnand %p6433_p6, %p6430_p5 }
  0x29   : > { %6438 = shalt.err (!%p6435_p7)
}
  0x2a   : > { %s6439_s26 = scalar_lea.vmem %s404_s18, 32768  ;;  %p6447_p11 = scmp.lt.s32.totalorder %s404_s18, %s404_s18 }
  0x2b   : > { %p6440_p8 = scmp.ne.s32.totalorder %s404_s18, %s6439_s26  ;;  %p6448_p12 = scmp.lt.s32.totalorder %s6439_s26, %s6439_s26 }
  0x2d   : > { %p6442_p10 = pnand %p6440_p8, %p6428_p3  ;;  %p6449_p13 = por %p6448_p12, %p6447_p11 }
  0x2f   : > { %p6443_p0 = pneg %p6442_p10 }
  0x31   : > { %p6450_p9 = pnand %p6449_p13, %p6443_p0 }
  0x33   : > { %6453 = shalt.err (!%p6450_p9)
}
  0x34   : > { %s6524_s20 = smov 128   ;;  %s6525_s21 = smov 8  }
  0x35   : > { %6318 = dma.hbm_to_vmem [thread:$0]  (!%p6670_p1), %s7970_s11, 32768, %s404_s18, [#allocation14], %s6524_s20, %s6524_s20, %s6525_s21  }
  0x36   : > { %p4650_p2 = scmp.ge.s32.totalorder %s6516_s0, 2 }
  0x37   : > { %p7991_p4 = scmp.ne.s32.totalorder (!%p4650_p2), %s7988_s30, 0 }
  0x38   : > { %422 = sbr.rel (%p4650_p2) target bundleno = 71 (0x47), region = 56 }
  0x3f   : > { %452 = sbr.rel (!%p7991_p4) target bundleno = 71 (0x47), region = 72  ;;  %s454_s26 = sand.u32 (%p7991_p4), 1, %s6512_s24  }
  0x40   : > { %s4779_s29 = sshll.u32 (%p7991_p4), %s6516_s0, 4  ;;  %s4651_s22 = sshll.u32 (%p7991_p4), %s454_s26, 6 }
  0x41   : > { %s459_s14 = scalar_lea.vmem (%p7991_p4), %s7964_s5, %s4779_s29  ;;  %s456_s19 = scalar_lea.vmem (%p7991_p4), [#allocation12], %s4651_s22 }
  0x42   : > { %v472_v0 = vld [vmem:[%s459_s14] sm:$0xff] (%p7991_p4)  ;;  %v474_v1 = vld [vmem:[%s459_s14 + $0x8] sm:$0xff] (%p7991_p4) }
  0x43   : > { %v476_v2 = vld [vmem:[%s459_s14 + $0x20] sm:$0xff] (%p7991_p4)  ;;  %473 = vst [vmem:[%s456_s19] sm:$0xff] (%p7991_p4), %v472_v0  ;;  %475 = vst [vmem:[%s456_s19 + $0x8] sm:$0xff] (%p7991_p4), %v474_v1  ;;  %v478_v3 = vld [vmem:[%s459_s14 + $0x28] sm:$0xff] (%p7991_p4) }
  0x44   : > { %477 = vst [vmem:[%s456_s19 + $0x10] sm:$0xff] (%p7991_p4), %v476_v2  ;;  %v480_v4 = vld [vmem:[%s459_s14 + $0x40] sm:$0xff] (%p7991_p4)  ;;  %v482_v5 = vld [vmem:[%s459_s14 + $0x48] sm:$0xff] (%p7991_p4)  ;;  %479 = vst [vmem:[%s456_s19 + $0x18] sm:$0xff] (%p7991_p4), %v478_v3 }
  0x45   : > { %481 = vst [vmem:[%s456_s19 + $0x20] sm:$0xff] (%p7991_p4), %v480_v4  ;;  %483 = vst [vmem:[%s456_s19 + $0x28] sm:$0xff] (%p7991_p4), %v482_v5  ;;  %v484_v6 = vld [vmem:[%s459_s14 + $0x60] sm:$0xff] (%p7991_p4)  ;;  %v486_v7 = vld [vmem:[%s459_s14 + $0x68] sm:$0xff] (%p7991_p4) }
  0x46   : > { %485 = vst [vmem:[%s456_s19 + $0x30] sm:$0xff] %v484_v6  ;;  %487 = vst [vmem:[%s456_s19 + $0x38] sm:$0xff] %v486_v7 }
  0x47 PF: > { %p7992_p9 = scmp.ne.s32.totalorder %s7989_s16, 0 }
  0x48   : > { %s499_s15 = sand.u32 (!%p7992_p9), 1, %s6508_s23   ;;  %p7993_p11 = scmp.eq.s32.totalorder (!%p7992_p9), %s6640_s25, 0 }
  0x49   : > { %496 = sbr.rel (%p7992_p9) target bundleno = 1725 (0x6bd), region = 95  ;;  %s4655_s0 = sshll.u32 (!%p7992_p9), %s499_s15, 6 }
  0x4a   : > { %s6701_s30 = scalar_lea.vmem (!%p7992_p9), [#allocation12], %s4655_s0 }
  0x50   : > { %6499 = dma.done.wait (%p7993_p11), [#allocation14], 32768   ;;  %p7994_p12 = pmov %p7993_p11 }
  0x51   : > { %s4657_s14 = sshll.u32 %s6640_s25, 5  ;;  %p7995_p1 = scmp.ne.s32.totalorder %s6640_s25, 0 }
  0x52   : > { %6501 = vsyncadd (%p7994_p12), [#allocation14], 4294934528  ;;  %p559_p13 = scmp.lt.s32.totalorder %s4657_s14, 63  ;;  %v585_v8 = vld [vmem:[%s7966_s7] sm:$0xff] (!%p7995_p1)  ;;  %v586_v9 = vld [vmem:[%s7966_s7 + $0x8] sm:$0xff] (!%p7995_p1)  ;;  %v6526_v60 = vmov (!%p7995_p1), 0.0  }
  0x53   : > { %580 = sbr.rel (%p7995_p1) target bundleno = 336 (0x150), region = 107  ;;  %v690_v10 = vld [vmem:[%s7967_s8] sm:$0xff] (!%p7995_p1)  ;;  %v5755_v11 = vpack.c.bf16 (!%p7995_p1), %v586_v9, %v585_v8  ;;  %v691_v12 = vld [vmem:[%s7967_s8 + $0x8] sm:$0xff] (!%p7995_p1)  ;;  %v587_v13 = vld [vmem:[%s7966_s7 + $0x10] sm:$0xff] (!%p7995_p1)  ;;  %795 = vst [vmem:[#allocation5] sm:$0xff] (!%p7995_p1), %v6526_v60 }
  0x54   : > { %s8045_s14 = smov (!%p559_p13, %s4657_s14), 63  ;;  %v588_v14 = vld [vmem:[%s7966_s7 + $0x18] sm:$0xff] (!%p7995_p1)  ;;  %v5787_v15 = vpack.c.bf16 (!%p7995_p1), %v691_v12, %v690_v10  ;;  %v692_v17 = vld [vmem:[%s7967_s8 + $0x10] sm:$0xff] (!%p7995_p1)  ;;  %v589_v19 = vld [vmem:[%s7966_s7 + $0x20] sm:$0xff] (!%p7995_p1)  ;;  %796 = vst [vmem:[#allocation5 + $0x8] sm:$0xff] (!%p7995_p1), %v6526_v60 }
  0x55   : > { %s4658_s18 = sshll.u32 %s8045_s14, 3  ;;  %v5759_v16 = vpack.c.bf16 (!%p7995_p1), %v588_v14, %v587_v13  ;;  %v693_v18 = vld [vmem:[%s7967_s8 + $0x18] sm:$0xff] (!%p7995_p1)  ;;  %5756 = vmatprep.subr.bf16.mxu0 (!%p7995_p1), %v5755_v11  ;;  %v590_v21 = vld [vmem:[%s7966_s7 + $0x28] sm:$0xff] (!%p7995_p1)  ;;  %v694_v22 = vld [vmem:[%s7967_s8 + $0x20] sm:$0xff] (!%p7995_p1)  ;;  %797 = vst [vmem:[#allocation5 + $0x10] sm:$0xff] (!%p7995_p1), %v6526_v60 }
  0x56   : > { %s6711_s16 = scalar_lea.vmem %s7961_s2, %s4658_s18  ;;  %s6716_s28 = scalar_lea.vmem %s7962_s3, %s4658_s18  ;;  %v5791_v20 = vpack.c.bf16 (!%p7995_p1), %v693_v18, %v692_v17  ;;  %v695_v23 = vld [vmem:[%s7967_s8 + $0x28] sm:$0xff] (!%p7995_p1)  ;;  %5788 = vmatprep.subr.bf16.mxu1 (!%p7995_p1), %v5787_v15  ;;  %5758 = vmatpush3.bf16.msra.mxu0 (!%p7995_p1), %v5755_v11  ;;  %v5763_v24 = vpack.c.bf16 (!%p7995_p1), %v590_v21, %v589_v19  ;;  %v591_v26 = vld [vmem:[%s7966_s7 + $0x30] sm:$0xff] (!%p7995_p1)  ;;  %v592_v27 = vld [vmem:[%s7966_s7 + $0x38] sm:$0xff] (!%p7995_p1)  ;;  %798 = vst [vmem:[#allocation5 + $0x18] sm:$0xff] (!%p7995_p1), %v6526_v60  ;;  %v6527_v61 = vmov (!%p7995_p1), 3.4028235e+38  }
  0x57   : > { %s6721_s22 = scalar_lea.vmem %s7963_s4, %s4658_s18  ;;  %5790 = vmatpush3.bf16.msra.mxu1 (!%p7995_p1), %v5787_v15  ;;  %5760 = vmatprep.subr.bf16.mxu0 (!%p7995_p1), %v5759_v16  ;;  %v5795_v25 = vpack.c.bf16 (!%p7995_p1), %v695_v23, %v694_v22  ;;  %v696_v28 = vld [vmem:[%s7967_s8 + $0x30] sm:$0xff] (!%p7995_p1)  ;;  %v697_v29 = vld [vmem:[%s7967_s8 + $0x38] sm:$0xff] (!%p7995_p1)  ;;  %v5767_v30 = vpack.c.bf16 (!%p7995_p1), %v592_v27, %v591_v26  ;;  %v593_v32 = vld [vmem:[%s7966_s7 + $0x40] sm:$0xff] (!%p7995_p1)  ;;  %799 = vst [vmem:[#allocation6] sm:$0xff] (!%p7995_p1), %v6526_v60  ;;  %v6528_v62 = vmov (!%p7995_p1), -3.4028235e+38  }
  0x58   : > { %5792 = vmatprep.subr.bf16.mxu1 (!%p7995_p1), %v5791_v20  ;;  %v5799_v31 = vpack.c.bf16 (!%p7995_p1), %v697_v29, %v696_v28  ;;  %v594_v33 = vld [vmem:[%s7966_s7 + $0x48] sm:$0xff] (!%p7995_p1)  ;;  %v581_v34 = vld [vmem:[%s7960_s1] sm:$0xff] (!%p7995_p1)  ;;  %v595_v39 = vld [vmem:[%s7966_s7 + $0x50] sm:$0xff] (!%p7995_p1)  ;;  %800 = vst [vmem:[#allocation6 + $0x8] sm:$0xff] (!%p7995_p1), %v6526_v60 }
  0x59   : > { %v698_v35 = vld [vmem:[%s7967_s8 + $0x40] sm:$0xff] (!%p7995_p1)  ;;  %v699_v36 = vld [vmem:[%s7967_s8 + $0x48] sm:$0xff] (!%p7995_p1)  ;;  %5397 = vmatprep.mubr.f32.mxu0 (!%p7995_p1), %v581_v34  ;;  %5435 = vmatprep.mubr.f32.mxu1 (!%p7995_p1), %v581_v34  ;;  %v5771_v37 = vpack.c.bf16 (!%p7995_p1), %v594_v33, %v593_v32  ;;  %v596_v40 = vld [vmem:[%s7966_s7 + $0x58] sm:$0xff] (!%p7995_p1)  ;;  %801 = vst [vmem:[#allocation6 + $0x10] sm:$0xff] (!%p7995_p1), %v6526_v60 }
  0x5a   : > { %5762 = vmatpush3.bf16.msra.mxu0 %v5759_v16  ;;  %v5803_v38 = vpack.c.bf16 %v699_v36, %v698_v35  ;;  %v700_v41 = vld [vmem:[%s7967_s8 + $0x50] sm:$0xff]  ;;  %v701_v42 = vld [vmem:[%s7967_s8 + $0x58] sm:$0xff]  ;;  %v5775_v43 = vpack.c.bf16 %v596_v40, %v595_v39  ;;  %v597_v45 = vld [vmem:[%s7966_s7 + $0x60] sm:$0xff]  ;;  %802 = vst [vmem:[#allocation6 + $0x18] sm:$0xff] %v6526_v60 }
  0x5b   : > { %5794 = vmatpush3.bf16.msra.mxu1 %v5791_v20  ;;  %5764 = vmatprep.subr.bf16.mxu0 %v5763_v24  ;;  %v5807_v44 = vpack.c.bf16 %v701_v42, %v700_v41  ;;  %v598_v46 = vld [vmem:[%s7966_s7 + $0x68] sm:$0xff]  ;;  %v702_v47 = vld [vmem:[%s7967_s8 + $0x60] sm:$0xff]  ;;  %v599_v51 = vld [vmem:[%s7966_s7 + $0x70] sm:$0xff]  ;;  %803 = vst [vmem:[#allocation7] sm:$0x1] %v6527_v61 }
  0x5c   : > { %5796 = vmatprep.subr.bf16.mxu1 %v5795_v25  ;;  %v703_v48 = vld [vmem:[%s7967_s8 + $0x68] sm:$0xff]  ;;  %v5779_v49 = vpack.c.bf16 %v598_v46, %v597_v45  ;;  %v600_v52 = vld [vmem:[%s7966_s7 + $0x78] sm:$0xff]  ;;  %v704_v53 = vld [vmem:[%s7967_s8 + $0x70] sm:$0xff]  ;;  %804 = vst [vmem:[#allocation7 + $0x1] sm:$0x1] %v6527_v61 }
  0x5d   : > { %v5811_v50 = vpack.c.bf16 %v703_v48, %v702_v47  ;;  %v705_v54 = vld [vmem:[%s7967_s8 + $0x78] sm:$0xff]  ;;  %v5783_v55 = vpack.c.bf16 %v600_v52, %v599_v51  ;;  %v582_v57 = vld [vmem:[%s7960_s1 + $0x8] sm:$0xff]  ;;  %v583_v58 = vld [vmem:[%s7960_s1 + $0x10] sm:$0xff]  ;;  %805 = vst [vmem:[#allocation7 + $0x2] sm:$0x1] %v6527_v61 }
  0x5e   : > { %5766 = vmatpush3.bf16.msra.mxu0 %v5763_v24  ;;  %v5815_v56 = vpack.c.bf16 %v705_v54, %v704_v53  ;;  %v584_v59 = vld [vmem:[%s7960_s1 + $0x18] sm:$0xff]  ;;  %806 = vst [vmem:[#allocation7 + $0x3] sm:$0x1] %v6527_v61  ;;  %807 = vst [vmem:[#allocation7 + $0x4] sm:$0x1] %v6527_v61 }
  0x5f   : > { %5798 = vmatpush3.bf16.msra.mxu1 %v5795_v25  ;;  %5768 = vmatprep.subr.bf16.mxu0 %v5767_v30  ;;  %808 = vst [vmem:[#allocation7 + $0x5] sm:$0x1] %v6527_v61  ;;  %809 = vst [vmem:[#allocation7 + $0x6] sm:$0x1] %v6527_v61 }
  0x60   : > { %5800 = vmatprep.subr.bf16.mxu1 %v5799_v31  ;;  %810 = vst [vmem:[#allocation7 + $0x7] sm:$0x1] %v6527_v61  ;;  %811 = vst [vmem:[#allocation7 + $0x8] sm:$0x1] %v6527_v61 }
  0x61   : > { %812 = vst [vmem:[#allocation7 + $0x9] sm:$0x1] %v6527_v61  ;;  %813 = vst [vmem:[#allocation7 + $0xa] sm:$0x1] %v6527_v61 }
  0x62   : > { %5770 = vmatpush3.bf16.msra.mxu0 %v5767_v30  ;;  %814 = vst [vmem:[#allocation7 + $0xb] sm:$0x1] %v6527_v61  ;;  %815 = vst [vmem:[#allocation7 + $0xc] sm:$0x1] %v6527_v61 }
  0x63   : > { %5802 = vmatpush3.bf16.msra.mxu1 %v5799_v31  ;;  %5772 = vmatprep.subr.bf16.mxu0 %v5771_v37  ;;  %816 = vst [vmem:[#allocation7 + $0xd] sm:$0x1] %v6527_v61  ;;  %817 = vst [vmem:[#allocation7 + $0xe] sm:$0x1] %v6527_v61 }
  0x64   : > { %5804 = vmatprep.subr.bf16.mxu1 %v5803_v38  ;;  %818 = vst [vmem:[#allocation7 + $0xf] sm:$0x1] %v6527_v61  ;;  %819 = vst [vmem:[#allocation7 + $0x10] sm:$0x1] %v6527_v61 }
  0x65   : > { %820 = vst [vmem:[#allocation7 + $0x11] sm:$0x1] %v6527_v61  ;;  %821 = vst [vmem:[#allocation7 + $0x12] sm:$0x1] %v6527_v61 }
  0x66   : > { %5774 = vmatpush3.bf16.msra.mxu0 %v5771_v37  ;;  %822 = vst [vmem:[#allocation7 + $0x13] sm:$0x1] %v6527_v61  ;;  %823 = vst [vmem:[#allocation7 + $0x14] sm:$0x1] %v6527_v61 }
  0x67   : > { %5806 = vmatpush3.bf16.msra.mxu1 %v5803_v38  ;;  %5776 = vmatprep.subr.bf16.mxu0 %v5775_v43  ;;  %824 = vst [vmem:[#allocation7 + $0x15] sm:$0x1] %v6527_v61  ;;  %825 = vst [vmem:[#allocation7 + $0x16] sm:$0x1] %v6527_v61 }
  0x68   : > { %5808 = vmatprep.subr.bf16.mxu1 %v5807_v44  ;;  %826 = vst [vmem:[#allocation7 + $0x17] sm:$0x1] %v6527_v61  ;;  %827 = vst [vmem:[#allocation7 + $0x18] sm:$0x1] %v6527_v61 }
  0x69   : > { %828 = vst [vmem:[#allocation7 + $0x19] sm:$0x1] %v6527_v61  ;;  %829 = vst [vmem:[#allocation7 + $0x1a] sm:$0x1] %v6527_v61 }
  0x6a   : > { %5778 = vmatpush3.bf16.msra.mxu0 %v5775_v43  ;;  %830 = vst [vmem:[#allocation7 + $0x1b] sm:$0x1] %v6527_v61  ;;  %831 = vst [vmem:[#allocation7 + $0x1c] sm:$0x1] %v6527_v61 }
  0x6b   : > { %5810 = vmatpush3.bf16.msra.mxu1 %v5807_v44  ;;  %5780 = vmatprep.subr.bf16.mxu0 %v5779_v49  ;;  %832 = vst [vmem:[#allocation7 + $0x1d] sm:$0x1] %v6527_v61  ;;  %833 = vst [vmem:[#allocation7 + $0x1e] sm:$0x1] %v6527_v61 }
  0x6c   : > { %5812 = vmatprep.subr.bf16.mxu1 %v5811_v50  ;;  %834 = vst [vmem:[#allocation7 + $0x1f] sm:$0x1] %v6527_v61  ;;  %835 = vst [vmem:[#allocation8] sm:$0x1] %v6528_v62 }
  0x6d   : > { %836 = vst [vmem:[#allocation8 + $0x1] sm:$0x1] %v6528_v62  ;;  %837 = vst [vmem:[#allocation8 + $0x2] sm:$0x1] %v6528_v62 }
  0x6e   : > { %5782 = vmatpush3.bf16.msra.mxu0 %v5779_v49  ;;  %838 = vst [vmem:[#allocation8 + $0x3] sm:$0x1] %v6528_v62  ;;  %839 = vst [vmem:[#allocation8 + $0x4] sm:$0x1] %v6528_v62 }
  0x6f   : > { %5814 = vmatpush3.bf16.msra.mxu1 %v5811_v50  ;;  %5784 = vmatprep.subr.bf16.mxu0 %v5783_v55  ;;  %840 = vst [vmem:[#allocation8 + $0x5] sm:$0x1] %v6528_v62  ;;  %841 = vst [vmem:[#allocation8 + $0x6] sm:$0x1] %v6528_v62 }
  0x70   : > { %5816 = vmatprep.subr.bf16.mxu1 %v5815_v56  ;;  %842 = vst [vmem:[#allocation8 + $0x7] sm:$0x1] %v6528_v62  ;;  %843 = vst [vmem:[#allocation8 + $0x8] sm:$0x1] %v6528_v62 }
  0x71   : > { %844 = vst [vmem:[#allocation8 + $0x9] sm:$0x1] %v6528_v62  ;;  %845 = vst [vmem:[#allocation8 + $0xa] sm:$0x1] %v6528_v62 }
  0x72   : > { %5786 = vmatpush3.bf16.msra.mxu0 %v5783_v55  ;;  %846 = vst [vmem:[#allocation8 + $0xb] sm:$0x1] %v6528_v62  ;;  %847 = vst [vmem:[#allocation8 + $0xc] sm:$0x1] %v6528_v62 }
  0x73   : > { %5818 = vmatpush3.bf16.msra.mxu1 %v5815_v56  ;;  %848 = vst [vmem:[#allocation8 + $0xd] sm:$0x1] %v6528_v62  ;;  %849 = vst [vmem:[#allocation8 + $0xe] sm:$0x1] %v6528_v62 }
  0x74   : > { %850 = vst [vmem:[#allocation8 + $0xf] sm:$0x1] %v6528_v62  ;;  %851 = vst [vmem:[#allocation8 + $0x10] sm:$0x1] %v6528_v62 }
  0x75   : > { %5398 = vmatmul.mubr.f32.vlgmr.msra.gmra.mrb[0].mxu0 %v582_v57  ;;  %852 = vst [vmem:[#allocation8 + $0x11] sm:$0x1] %v6528_v62  ;;  %853 = vst [vmem:[#allocation8 + $0x12] sm:$0x1] %v6528_v62 }
  0x76   : > { %5436 = vmatmul.mubr.f32.vlgmr.msra.gmra.mrb[0].mxu1 %v582_v57  ;;  %5400 = vmatprep.mubr.f32.mxu0 %v583_v58  ;;  %854 = vst [vmem:[#allocation8 + $0x13] sm:$0x1] %v6528_v62  ;;  %855 = vst [vmem:[#allocation8 + $0x14] sm:$0x1] %v6528_v62 }
  0x77   : > { %5438 = vmatprep.mubr.f32.mxu1 %v583_v58  ;;  %856 = vst [vmem:[#allocation8 + $0x15] sm:$0x1] %v6528_v62  ;;  %857 = vst [vmem:[#allocation8 + $0x16] sm:$0x1] %v6528_v62 }
  0x78   : > { %858 = vst [vmem:[#allocation8 + $0x17] sm:$0x1] %v6528_v62  ;;  %859 = vst [vmem:[#allocation8 + $0x18] sm:$0x1] %v6528_v62 }
  0x79   : > { %5401 = vmatmul.mubr.f32.gmra.mrb[2].mxu0 %v584_v59  ;;  %860 = vst [vmem:[#allocation8 + $0x19] sm:$0x1] %v6528_v62  ;;  %861 = vst [vmem:[#allocation8 + $0x1a] sm:$0x1] %v6528_v62 }
  0x7a   : > { %5439 = vmatmul.mubr.f32.gmra.mrb[2].mxu1 %v584_v59  ;;  %862 = vst [vmem:[#allocation8 + $0x1b] sm:$0x1] %v6528_v62  ;;  %863 = vst [vmem:[#allocation8 + $0x1c] sm:$0x1] %v6528_v62 }
  0x7b   : > { %864 = vst [vmem:[#allocation8 + $0x1d] sm:$0x1] %v6528_v62  ;;  %865 = vst [vmem:[#allocation8 + $0x1e] sm:$0x1] %v6528_v62 }
  0x7c   : > { %866 = vst [vmem:[#allocation8 + $0x1f] sm:$0x1] %v6528_v62 }
 0x148   : > { %v5399_v63 = vpop.f32.mrb[0].mxu0 }
 0x149   : > { %687 = vst [vmem:[#allocation2 + $0x8] sm:$0xff] %v5399_v63  ;;  %v5437_v0 = vpop.f32.mrb[0].mxu1  ;;  %v667_v1 = vpop.f32.mrb[1].mxu0 }
 0x14a   : > { %792 = vst [vmem:[#allocation3 + $0x8] sm:$0xff] %v5437_v0  ;;  %686 = vst [vmem:[#allocation2] sm:$0xff] %v667_v1  ;;  %v772_v2 = vpop.f32.mrb[1].mxu1 }
 0x14b   : > { %791 = vst [vmem:[#allocation3] sm:$0xff] %v772_v2 }
 0x14c   : > { %v5402_v3 = vpop.f32.mrb[2].mxu0 }
 0x14d   : > { %689 = vst [vmem:[#allocation2 + $0x18] sm:$0xff] %v5402_v3  ;;  %v5440_v4 = vpop.f32.mrb[2].mxu1  ;;  %v677_v5 = vpop.f32.mrb[3].mxu0 }
 0x14e   : > { %794 = vst [vmem:[#allocation3 + $0x18] sm:$0xff] %v5440_v4  ;;  %688 = vst [vmem:[#allocation2 + $0x10] sm:$0xff] %v677_v5  ;;  %v782_v6 = vpop.f32.mrb[3].mxu1 }
 0x14f   : > { %793 = vst [vmem:[#allocation3 + $0x10] sm:$0xff] %v782_v6 }
 0x150 PF: > { %v900_v8 = vld [vmem:[#allocation2 + $0x8] sm:$0xff]  ;;  %vm939_vm0 = vcmask 261120   ;;  %v867_v12 = vld [vmem:[%s6721_s22] sm:$0xff]  ;;  %v869_v16 = vld [vmem:[%s6721_s22 + $0x10] sm:$0xff]  ;;  %vm1615_vm1 = vcmask 64512  }
 0x151   : > { %v899_v7 = vld [vmem:[#allocation2] sm:$0xff]  ;;  %5505 = vmatprep.mubr.msk.f32.mxu0 %vm939_vm0, %v867_v12  ;;  %v868_v15 = vld [vmem:[%s6721_s22 + $0x8] sm:$0xff]  ;;  %v870_v19 = vld [vmem:[%s6721_s22 + $0x18] sm:$0xff] }
 0x152   : > { %v5827_v10 = vpack.c.bf16 %v900_v8, %v899_v7  ;;  %v1614_v14 = vld [vmem:[%s7968_s9] sm:$0xff]  ;;  %v936_v18 = vld [vmem:[#allocation3 + $0x8] sm:$0xff]  ;;  %v873_v27 = vld [vmem:[%s6721_s22 + $0x30] sm:$0xff] }
 0x153   : > { %v935_v17 = vld [vmem:[#allocation3] sm:$0xff]  ;;  %v872_v26 = vld [vmem:[%s6721_s22 + $0x28] sm:$0xff]  ;;  %v874_v29 = vld [vmem:[%s6721_s22 + $0x38] sm:$0xff] }
 0x154   : > { %v902_v11 = vld [vmem:[#allocation2 + $0x18] sm:$0xff]  ;;  %5828 = vmatprep.subr.bf16.mxu0 %v5827_v10  ;;  %v5819_v20 = vpack.c.bf16 %v936_v18, %v935_v17  ;;  %v871_v23 = vld [vmem:[%s6721_s22 + $0x20] sm:$0xff]  ;;  %v904_v28 = vld [vmem:[%s6716_s28 + $0x8] sm:$0xff] }
 0x155   : > { %v901_v9 = vld [vmem:[#allocation2 + $0x10] sm:$0xff]  ;;  %5830 = vmatpush3.bf16.msra.mxu0 %v5827_v10  ;;  %v938_v22 = vld [vmem:[#allocation3 + $0x18] sm:$0xff]  ;;  %v903_v25 = vld [vmem:[%s6716_s28] sm:$0xff] }
 0x156   : > { %v5831_v13 = vpack.c.bf16 %v902_v11, %v901_v9  ;;  %v937_v21 = vld [vmem:[#allocation3 + $0x10] sm:$0xff]  ;;  %5820 = vmatprep.subr.bf16.mxu1 %v5819_v20  ;;  %5449 = vmatprep.mubr.msk.f32.mxu1 %vm939_vm0, %v903_v25  ;;  %v875_v31 = vld [vmem:[%s6721_s22 + $0x40] sm:$0xff]  ;;  %v906_v32 = vld [vmem:[%s6716_s28 + $0x18] sm:$0xff] }
 0x157   : > { %v5823_v24 = vpack.c.bf16 %v938_v22, %v937_v21  ;;  %5822 = vmatpush3.bf16.msra.mxu1 %v5819_v20  ;;  %v905_v30 = vld [vmem:[%s6716_s28 + $0x10] sm:$0xff]  ;;  %v876_v33 = vld [vmem:[%s6721_s22 + $0x48] sm:$0xff]  ;;  %v907_v34 = vld [vmem:[%s6716_s28 + $0x20] sm:$0xff] }
 0x158   : > { %5832 = vmatprep.subr.bf16.mxu0 %v5831_v13  ;;  %v877_v35 = vld [vmem:[%s6721_s22 + $0x50] sm:$0xff]  ;;  %v908_v36 = vld [vmem:[%s6716_s28 + $0x28] sm:$0xff]  ;;  %v878_v37 = vld [vmem:[%s6721_s22 + $0x58] sm:$0xff] }
 0x159   : > { %5834 = vmatpush3.bf16.msra.mxu0 %v5831_v13  ;;  %5824 = vmatprep.subr.bf16.mxu1 %v5823_v24  ;;  %v909_v38 = vld [vmem:[%s6716_s28 + $0x30] sm:$0xff]  ;;  %v879_v39 = vld [vmem:[%s6721_s22 + $0x60] sm:$0xff]  ;;  %v910_v40 = vld [vmem:[%s6716_s28 + $0x38] sm:$0xff] }
 0x15a   : > { %5553 = vmatprep.subr.mxu0 %v1614_v14  ;;  %v880_v41 = vld [vmem:[%s6721_s22 + $0x68] sm:$0xff]  ;;  %v911_v42 = vld [vmem:[%s6716_s28 + $0x40] sm:$0xff]  ;;  %v881_v43 = vld [vmem:[%s6721_s22 + $0x70] sm:$0xff] }
 0x15b   : > { %5826 = vmatpush3.bf16.msra.mxu1 %v5823_v24  ;;  %v912_v44 = vld [vmem:[%s6716_s28 + $0x48] sm:$0xff]  ;;  %v882_v45 = vld [vmem:[%s6721_s22 + $0x78] sm:$0xff]  ;;  %v913_v46 = vld [vmem:[%s6716_s28 + $0x50] sm:$0xff] }
 0x15c   : > { %5506 = vmatmul.mubr.msk.f32.vlgmr.msra.gmra.mrb[0].mxu0 %vm939_vm0, %v868_v15  ;;  %v883_v47 = vld [vmem:[%s6721_s22 + $0x80] sm:$0xff]  ;;  %v914_v48 = vld [vmem:[%s6716_s28 + $0x58] sm:$0xff]  ;;  %v884_v49 = vld [vmem:[%s6721_s22 + $0x88] sm:$0xff] }
 0x15d   : > { %5508 = vmatprep.mubr.msk.f32.mxu0 %vm939_vm0, %v869_v16  ;;  %5554 = vmatpush3.msra.mxu0 %v1614_v14  ;;  %v915_v50 = vld [vmem:[%s6716_s28 + $0x60] sm:$0xff]  ;;  %v885_v51 = vld [vmem:[%s6721_s22 + $0x90] sm:$0xff]  ;;  %v916_v52 = vld [vmem:[%s6716_s28 + $0x68] sm:$0xff] }
 0x15e   : > { %5450 = vmatmul.mubr.msk.f32.vlgmr.msra.gmra.mrb[0].mxu1 %vm939_vm0, %v904_v28  ;;  %v886_v53 = vld [vmem:[%s6721_s22 + $0x98] sm:$0xff]  ;;  %v917_v54 = vld [vmem:[%s6716_s28 + $0x70] sm:$0xff]  ;;  %v887_v55 = vld [vmem:[%s6721_s22 + $0xa0] sm:$0xff] }
 0x15f   : > { %5452 = vmatprep.mubr.msk.f32.mxu1 %vm939_vm0, %v905_v30  ;;  %v918_v56 = vld [vmem:[%s6716_s28 + $0x78] sm:$0xff]  ;;  %v888_v57 = vld [vmem:[%s6721_s22 + $0xa8] sm:$0xff]  ;;  %v919_v58 = vld [vmem:[%s6716_s28 + $0x80] sm:$0xff] }
 0x160   : > { %5509 = vmatmul.mubr.msk.f32.gmra.mrb[2].mxu0 %vm939_vm0, %v870_v19  ;;  %v889_v59 = vld [vmem:[%s6721_s22 + $0xb0] sm:$0xff]  ;;  %v920_v60 = vld [vmem:[%s6716_s28 + $0x88] sm:$0xff]  ;;  %v890_v61 = vld [vmem:[%s6721_s22 + $0xb8] sm:$0xff] }
 0x161   : > { %5511 = vmatprep.mubr.msk.f32.mxu0 %vm939_vm0, %v871_v23  ;;  %v921_v62 = vld [vmem:[%s6716_s28 + $0x90] sm:$0xff]  ;;  %v891_v63 = vld [vmem:[%s6721_s22 + $0xc0] sm:$0xff]  ;;  %v922_v0 = vld [vmem:[%s6716_s28 + $0x98] sm:$0xff] }
 0x162   : > { %5453 = vmatmul.mubr.msk.f32.gmra.mrb[2].mxu1 %vm939_vm0, %v906_v32  ;;  %v892_v1 = vld [vmem:[%s6721_s22 + $0xc8] sm:$0xff]  ;;  %v923_v2 = vld [vmem:[%s6716_s28 + $0xa0] sm:$0xff]  ;;  %v893_v3 = vld [vmem:[%s6721_s22 + $0xd0] sm:$0xff] }
 0x163   : > { %5455 = vmatprep.mubr.msk.f32.mxu1 %vm939_vm0, %v907_v34  ;;  %v924_v4 = vld [vmem:[%s6716_s28 + $0xa8] sm:$0xff]  ;;  %v894_v5 = vld [vmem:[%s6721_s22 + $0xd8] sm:$0xff]  ;;  %v925_v6 = vld [vmem:[%s6716_s28 + $0xb0] sm:$0xff] }
 0x164   : > { %5512 = vmatmul.mubr.msk.f32.gmra.mrb[4].mxu0 %vm939_vm0, %v872_v26  ;;  %v895_v7 = vld [vmem:[%s6721_s22 + $0xe0] sm:$0xff]  ;;  %v926_v8 = vld [vmem:[%s6716_s28 + $0xb8] sm:$0xff]  ;;  %v896_v9 = vld [vmem:[%s6721_s22 + $0xe8] sm:$0xff] }
 0x165   : > { %5514 = vmatprep.mubr.msk.f32.mxu0 %vm939_vm0, %v873_v27  ;;  %v927_v10 = vld [vmem:[%s6716_s28 + $0xc0] sm:$0xff]  ;;  %v897_v11 = vld [vmem:[%s6721_s22 + $0xf0] sm:$0xff]  ;;  %v928_v12 = vld [vmem:[%s6716_s28 + $0xc8] sm:$0xff] }
 0x166   : > { %5456 = vmatmul.mubr.msk.f32.gmra.mrb[4].mxu1 %vm939_vm0, %v908_v36  ;;  %v898_v13 = vld [vmem:[%s6721_s22 + $0xf8] sm:$0xff]  ;;  %v929_v14 = vld [vmem:[%s6716_s28 + $0xd0] sm:$0xff]  ;;  %v1582_v15 = vld [vmem:[%s6711_s16] sm:$0xff] }
 0x167   : > { %5458 = vmatprep.mubr.msk.f32.mxu1 %vm939_vm0, %v909_v38  ;;  %v930_v16 = vld [vmem:[%s6716_s28 + $0xd8] sm:$0xff]  ;;  %v1583_v17 = vld [vmem:[%s6711_s16 + $0x8] sm:$0xff]  ;;  %v931_v18 = vld [vmem:[%s6716_s28 + $0xe0] sm:$0xff] }
 0x168   : > { %5515 = vmatmul.mubr.msk.f32.gmra.mrb[6].mxu0 %vm939_vm0, %v874_v29  ;;  %v1584_v19 = vld [vmem:[%s6711_s16 + $0x10] sm:$0xff]  ;;  %v932_v20 = vld [vmem:[%s6716_s28 + $0xe8] sm:$0xff]  ;;  %v1585_v21 = vld [vmem:[%s6711_s16 + $0x18] sm:$0xff] }
 0x169   : > { %5517 = vmatprep.mubr.msk.f32.mxu0 %vm939_vm0, %v875_v31  ;;  %v933_v22 = vld [vmem:[%s6716_s28 + $0xf0] sm:$0xff]  ;;  %v1586_v23 = vld [vmem:[%s6711_s16 + $0x20] sm:$0xff]  ;;  %v934_v24 = vld [vmem:[%s6716_s28 + $0xf8] sm:$0xff] }
 0x16a   : > { %5459 = vmatmul.mubr.msk.f32.gmra.mrb[6].mxu1 %vm939_vm0, %v910_v40  ;;  %v1587_v25 = vld [vmem:[%s6711_s16 + $0x28] sm:$0xff]  ;;  %v1588_v26 = vld [vmem:[%s6711_s16 + $0x30] sm:$0xff]  ;;  %v1589_v27 = vld [vmem:[%s6711_s16 + $0x38] sm:$0xff] }
 0x16b   : > { %5461 = vmatprep.mubr.msk.f32.mxu1 %vm939_vm0, %v911_v42  ;;  %v1590_v28 = vld [vmem:[%s6711_s16 + $0x40] sm:$0xff]  ;;  %v1591_v29 = vld [vmem:[%s6711_s16 + $0x48] sm:$0xff]  ;;  %v1592_v30 = vld [vmem:[%s6711_s16 + $0x50] sm:$0xff] }
 0x16c   : > { %5518 = vmatmul.mubr.msk.f32.gmra.mrb[8].mxu0 %vm939_vm0, %v876_v33  ;;  %v1593_v31 = vld [vmem:[%s6711_s16 + $0x58] sm:$0xff]  ;;  %v1594_v32 = vld [vmem:[%s6711_s16 + $0x60] sm:$0xff]  ;;  %v1595_v33 = vld [vmem:[%s6711_s16 + $0x68] sm:$0xff] }
 0x16d   : > { %5520 = vmatprep.mubr.msk.f32.mxu0 %vm939_vm0, %v877_v35  ;;  %v1596_v34 = vld [vmem:[%s6711_s16 + $0x70] sm:$0xff]  ;;  %v1597_v35 = vld [vmem:[%s6711_s16 + $0x78] sm:$0xff]  ;;  %v1598_v36 = vld [vmem:[%s6711_s16 + $0x80] sm:$0xff] }
 0x16e   : > { %5462 = vmatmul.mubr.msk.f32.gmra.mrb[8].mxu1 %vm939_vm0, %v912_v44  ;;  %v1600_v38 = vld [vmem:[%s6711_s16 + $0x90] sm:$0xff]  ;;  %v1602_v40 = vld [vmem:[%s6711_s16 + $0xa0] sm:$0xff] }
 0x16f   : > { %5464 = vmatprep.mubr.msk.f32.mxu1 %vm939_vm0, %v913_v46  ;;  %v1604_v42 = vld [vmem:[%s6711_s16 + $0xb0] sm:$0xff]  ;;  %v1606_v44 = vld [vmem:[%s6711_s16 + $0xc0] sm:$0xff] }
 0x170   : > { %5521 = vmatmul.mubr.msk.f32.gmra.mrb[10].mxu0 %vm939_vm0, %v878_v37  ;;  %v1599_v37 = vld [vmem:[%s6711_s16 + $0x88] sm:$0xff]  ;;  %v1608_v46 = vld [vmem:[%s6711_s16 + $0xd0] sm:$0xff] }
 0x171   : > { %5523 = vmatprep.mubr.msk.f32.mxu0 %vm939_vm0, %v879_v39  ;;  %v1601_v39 = vld [vmem:[%s6711_s16 + $0x98] sm:$0xff] }
 0x172   : > { %5465 = vmatmul.mubr.msk.f32.gmra.mrb[10].mxu1 %vm939_vm0, %v914_v48  ;;  %v1610_v48 = vld [vmem:[%s6711_s16 + $0xe0] sm:$0xff] }
 0x173   : > { %5467 = vmatprep.mubr.msk.f32.mxu1 %vm939_vm0, %v915_v50  ;;  %v1612_v50 = vld [vmem:[%s6711_s16 + $0xf0] sm:$0xff] }
 0x174   : > { %5524 = vmatmul.mubr.msk.f32.gmra.mrb[12].mxu0 %vm939_vm0, %v880_v41  ;;  %v1603_v41 = vld [vmem:[%s6711_s16 + $0xa8] sm:$0xff] }
 0x175   : > { %5526 = vmatprep.mubr.msk.f32.mxu0 %vm939_vm0, %v881_v43  ;;  %v1605_v43 = vld [vmem:[%s6711_s16 + $0xb8] sm:$0xff] }
 0x176   : > { %5468 = vmatmul.mubr.msk.f32.gmra.mrb[12].mxu1 %vm939_vm0, %v916_v52  ;;  %v7029_v52 = vld [vmem:[%s6701_s30 + $0x8] sm:$0xff] }
 0x177   : > { %5470 = vmatprep.mubr.msk.f32.mxu1 %vm939_vm0, %v917_v54 }
 0x178   : > { %5527 = vmatmul.mubr.msk.f32.gmra.mrb[14].mxu0 %vm939_vm0, %v882_v45  ;;  %v1607_v45 = vld [vmem:[%s6711_s16 + $0xc8] sm:$0xff] }
 0x179   : > { %5529 = vmatprep.mubr.msk.f32.mxu0 %vm939_vm0, %v883_v47  ;;  %v1609_v47 = vld [vmem:[%s6711_s16 + $0xd8] sm:$0xff] }
 0x17a   : > { %5471 = vmatmul.mubr.msk.f32.gmra.mrb[14].mxu1 %vm939_vm0, %v918_v56 }
 0x17b   : > { %5473 = vmatprep.mubr.msk.f32.mxu1 %vm939_vm0, %v919_v58 }
 0x17c   : > { %5530 = vmatmul.mubr.msk.f32.gmra.mrb[16].mxu0 %vm939_vm0, %v884_v49  ;;  %v1611_v49 = vld [vmem:[%s6711_s16 + $0xe8] sm:$0xff] }
 0x17d   : > { %5532 = vmatprep.mubr.msk.f32.mxu0 %vm939_vm0, %v885_v51  ;;  %v1613_v51 = vld [vmem:[%s6711_s16 + $0xf8] sm:$0xff] }
 0x17e   : > { %5474 = vmatmul.mubr.msk.f32.gmra.mrb[16].mxu1 %vm939_vm0, %v920_v60 }
 0x17f   : > { %5476 = vmatprep.mubr.msk.f32.mxu1 %vm939_vm0, %v921_v62 }
 0x180   : > { %5533 = vmatmul.mubr.msk.f32.gmra.mrb[18].mxu0 %vm939_vm0, %v886_v53 }
 0x181   : > { %5535 = vmatprep.mubr.msk.f32.mxu0 %vm939_vm0, %v887_v55 }
 0x182   : > { %5477 = vmatmul.mubr.msk.f32.gmra.mrb[18].mxu1 %vm939_vm0, %v922_v0 }
 0x183   : > { %5479 = vmatprep.mubr.msk.f32.mxu1 %vm939_vm0, %v923_v2 }
 0x184   : > { %5536 = vmatmul.mubr.msk.f32.gmra.mrb[20].mxu0 %vm939_vm0, %v888_v57 }
 0x185   : > { %5538 = vmatprep.mubr.msk.f32.mxu0 %vm939_vm0, %v889_v59 }
 0x186   : > { %5480 = vmatmul.mubr.msk.f32.gmra.mrb[20].mxu1 %vm939_vm0, %v924_v4 }
 0x187   : > { %5482 = vmatprep.mubr.msk.f32.mxu1 %vm939_vm0, %v925_v6 }
 0x188   : > { %5539 = vmatmul.mubr.msk.f32.gmra.mrb[22].mxu0 %vm939_vm0, %v890_v61 }
 0x189   : > { %5541 = vmatprep.mubr.msk.f32.mxu0 %vm939_vm0, %v891_v63 }
 0x18a   : > { %5483 = vmatmul.mubr.msk.f32.gmra.mrb[22].mxu1 %vm939_vm0, %v926_v8 }
 0x18b   : > { %5485 = vmatprep.mubr.msk.f32.mxu1 %vm939_vm0, %v927_v10 }
 0x18c   : > { %5542 = vmatmul.mubr.msk.f32.gmra.mrb[24].mxu0 %vm939_vm0, %v892_v1 }
 0x18d   : > { %5544 = vmatprep.mubr.msk.f32.mxu0 %vm939_vm0, %v893_v3 }
 0x18e   : > { %5486 = vmatmul.mubr.msk.f32.gmra.mrb[24].mxu1 %vm939_vm0, %v928_v12 }
 0x18f   : > { %5488 = vmatprep.mubr.msk.f32.mxu1 %vm939_vm0, %v929_v14 }
 0x190   : > { %5545 = vmatmul.mubr.msk.f32.gmra.mrb[26].mxu0 %vm939_vm0, %v894_v5 }
 0x191   : > { %5547 = vmatprep.mubr.msk.f32.mxu0 %vm939_vm0, %v895_v7 }
 0x192   : > { %5489 = vmatmul.mubr.msk.f32.gmra.mrb[26].mxu1 %vm939_vm0, %v930_v16 }
 0x193   : > { %5491 = vmatprep.mubr.msk.f32.mxu1 %vm939_vm0, %v931_v18 }
 0x194   : > { %5548 = vmatmul.mubr.msk.f32.gmra.mrb[28].mxu0 %vm939_vm0, %v896_v9 }
 0x195   : > { %5550 = vmatprep.mubr.msk.f32.mxu0 %vm939_vm0, %v897_v11 }
 0x196   : > { %5492 = vmatmul.mubr.msk.f32.gmra.mrb[28].mxu1 %vm939_vm0, %v932_v20 }
 0x197   : > { %5494 = vmatprep.mubr.msk.f32.mxu1 %vm939_vm0, %v933_v22 }
 0x198   : > { %5551 = vmatmul.mubr.msk.f32.gmra.mrb[30].mxu0 %vm939_vm0, %v898_v13 }
 0x199   : > { %5555 = vmatprep.mubr.msk.f32.mxu0 %vm1615_vm1, %v1582_v15 }
 0x19a   : > { %5495 = vmatmul.mubr.msk.f32.gmra.mrb[30].mxu1 %vm939_vm0, %v934_v24 }
 0x19b   : > { %2084 = vmatprep.mubr.f32.mxu1 %v7029_v52 }
 0x19c   : > { %5556 = vmatmul.mubr.msk.f32.vlgmr.msra.gmra.mrb[0].mxu0 %vm1615_vm1, %v1583_v17  ;;  %v7075_v17 = vld [vmem:[%s7969_s10] ss:$0 sm:$0xff] }
 0x19d   : > { %5558 = vmatprep.mubr.msk.f32.mxu0 %vm1615_vm1, %v1584_v19 }
 0x1a0   : > { %5559 = vmatmul.mubr.msk.f32.gmra.mrb[2].mxu0 %vm1615_vm1, %v1585_v21 }
 0x1a1   : > { %5561 = vmatprep.mubr.msk.f32.mxu0 %vm1615_vm1, %v1586_v23 }
 0x1a4   : > { %5562 = vmatmul.mubr.msk.f32.gmra.mrb[4].mxu0 %vm1615_vm1, %v1587_v25 }
 0x1a5   : > { %5564 = vmatprep.mubr.msk.f32.mxu0 %vm1615_vm1, %v1588_v26 }
 0x1a8   : > { %5565 = vmatmul.mubr.msk.f32.gmra.mrb[6].mxu0 %vm1615_vm1, %v1589_v27 }
 0x1a9   : > { %5567 = vmatprep.mubr.msk.f32.mxu0 %vm1615_vm1, %v1590_v28 }
 0x1ac   : > { %5568 = vmatmul.mubr.msk.f32.gmra.mrb[8].mxu0 %vm1615_vm1, %v1591_v29 }
 0x1ad   : > { %5570 = vmatprep.mubr.msk.f32.mxu0 %vm1615_vm1, %v1592_v30 }
 0x1b0   : > { %5571 = vmatmul.mubr.msk.f32.gmra.mrb[10].mxu0 %vm1615_vm1, %v1593_v31 }
 0x1b1   : > { %5573 = vmatprep.mubr.msk.f32.mxu0 %vm1615_vm1, %v1594_v32 }
 0x1b4   : > { %5574 = vmatmul.mubr.msk.f32.gmra.mrb[12].mxu0 %vm1615_vm1, %v1595_v33 }
 0x1b5   : > { %5576 = vmatprep.mubr.msk.f32.mxu0 %vm1615_vm1, %v1596_v34 }
 0x1b8   : > { %5577 = vmatmul.mubr.msk.f32.gmra.mrb[14].mxu0 %vm1615_vm1, %v1597_v35 }
 0x1b9   : > { %5579 = vmatprep.mubr.msk.f32.mxu0 %vm1615_vm1, %v1598_v36 }
 0x1bc   : > { %5580 = vmatmul.mubr.msk.f32.gmra.mrb[16].mxu0 %vm1615_vm1, %v1599_v37 }
 0x1bd   : > { %5582 = vmatprep.mubr.msk.f32.mxu0 %vm1615_vm1, %v1600_v38 }
 0x1c0   : > { %5583 = vmatmul.mubr.msk.f32.gmra.mrb[18].mxu0 %vm1615_vm1, %v1601_v39 }
 0x1c1   : > { %5585 = vmatprep.mubr.msk.f32.mxu0 %vm1615_vm1, %v1602_v40 }
 0x1c4   : > { %5586 = vmatmul.mubr.msk.f32.gmra.mrb[20].mxu0 %vm1615_vm1, %v1603_v41 }
 0x1c5   : > { %5588 = vmatprep.mubr.msk.f32.mxu0 %vm1615_vm1, %v1604_v42 }
 0x1c8   : > { %5589 = vmatmul.mubr.msk.f32.gmra.mrb[22].mxu0 %vm1615_vm1, %v1605_v43 }
 0x1c9   : > { %5591 = vmatprep.mubr.msk.f32.mxu0 %vm1615_vm1, %v1606_v44 }
 0x1cc   : > { %5592 = vmatmul.mubr.msk.f32.gmra.mrb[24].mxu0 %vm1615_vm1, %v1607_v45 }
 0x1cd   : > { %5594 = vmatprep.mubr.msk.f32.mxu0 %vm1615_vm1, %v1608_v46 }
 0x1d0   : > { %5595 = vmatmul.mubr.msk.f32.gmra.mrb[26].mxu0 %vm1615_vm1, %v1609_v47 }
 0x1d1   : > { %5597 = vmatprep.mubr.msk.f32.mxu0 %vm1615_vm1, %v1610_v48 }
 0x1d4   : > { %5598 = vmatmul.mubr.msk.f32.gmra.mrb[28].mxu0 %vm1615_vm1, %v1611_v49 }
 0x1d5   : > { %5600 = vmatprep.mubr.msk.f32.mxu0 %vm1615_vm1, %v1612_v50 }
 0x1d8   : > { %5601 = vmatmul.mubr.msk.f32.gmra.mrb[30].mxu0 %vm1615_vm1, %v1613_v51 }
 0x231   : > { %v5451_v53 = vpop.f32.mrb[0].mxu1 }
 0x232   : > { %v1102_v54 = vpop.f32.mrb[1].mxu1 }
 0x235   : > { %v5454_v55 = vpop.f32.mrb[2].mxu1 }
 0x236   : > { %v1112_v56 = vpop.f32.mrb[3].mxu1 }
 0x239   : > { %v5457_v57 = vpop.f32.mrb[4].mxu1 }
 0x23a   : > { %v1122_v58 = vpop.f32.mrb[5].mxu1 }
 0x23d   : > { %v5460_v59 = vpop.f32.mrb[6].mxu1 }
 0x23e   : > { %v7032_v60 = vpop.f32.mrb[7].mxu1 }
 0x241   : > { %v7034_v61 = vpop.f32.mrb[8].mxu1 }
 0x242   : > { %v7036_v62 = vpop.f32.mrb[9].mxu1 }
 0x245   : > { %v7038_v63 = vpop.f32.mrb[10].mxu1 }
 0x246   : > { %v7040_v0 = vpop.f32.mrb[11].mxu1 }
 0x249   : > { %v7042_v1 = vpop.f32.mrb[12].mxu1 }
 0x24a   : > { %v7044_v2 = vpop.f32.mrb[13].mxu1 }
 0x24d   : > { %v7046_v3 = vpop.f32.mrb[14].mxu1 }
 0x24e   : > { %v7048_v4 = vpop.f32.mrb[15].mxu1 }
 0x251   : > { %v7050_v5 = vpop.f32.mrb[16].mxu1 }
 0x252   : > { %v7052_v6 = vpop.f32.mrb[17].mxu1 }
 0x255   : > { %v7054_v7 = vpop.f32.mrb[18].mxu1 }
 0x256   : > { %v7056_v8 = vpop.f32.mrb[19].mxu1 }
 0x259   : > { %v7058_v9 = vpop.f32.mrb[20].mxu1 }
 0x25a   : > { %v7060_v10 = vpop.f32.mrb[21].mxu1 }
 0x25d   : > { %v7062_v11 = vpop.f32.mrb[22].mxu1 }
 0x25e   : > { %v7064_v12 = vpop.f32.mrb[23].mxu1 }
 0x261   : > { %v7066_v13 = vpop.f32.mrb[24].mxu1 }
 0x262   : > { %v7068_v14 = vpop.f32.mrb[25].mxu1 }
 0x265   : > { %v7070_v15 = vpop.f32.mrb[26].mxu1 }
 0x266   : > { %v7077_v18 = vpop.f32.mrb[27].mxu1 }
 0x269   : > { %v7082_v23 = vpop.f32.mrb[28].mxu1 }
 0x26a   : > { %v7087_v26 = vpop.f32.mrb[29].mxu1 }
 0x26d   : > { %v7104_v34 = vpop.f32.mrb[30].mxu1 }
 0x26e   : > { %v7109_v37 = vpop.f32.mrb[31].mxu1 }
 0x26f   : > { %v5557_v16 = vpop.f32.mrb[0].mxu0 }
 0x270   : > { %v6219_v19 = vadd.f32 %v5557_v16, %v5451_v53  ;;  %v1778_v20 = vpop.f32.mrb[1].mxu0 }
 0x271   : > { %v6220_v21 = vadd.f32 %v1778_v20, %v1102_v54 }
 0x272   : > { %v7080_v22 = vadd.f32 %v6219_v19, %v7075_v17 }
 0x273   : > { %v7085_v24 = vadd.f32 %v6220_v21, %v7075_v17  ;;  %v5560_v25 = vpop.f32.mrb[2].mxu0 }
 0x274   : > { %v7091_v27 = vmul.f32 %v7080_v22, %v7080_v22  ;;  %2251 = vst [vmem:[#allocation4 + $0x8] sm:$0xff] %v7080_v22  ;;  %v6221_v28 = vadd.f32 %v5560_v25, %v5454_v55  ;;  %v1788_v29 = vpop.f32.mrb[3].mxu0 }
 0x275   : > { %v5837_v30 = vpack.c.bf16 %v7080_v22, %v7085_v24  ;;  %v7098_v31 = vmul.f32 %v7085_v24, %v7085_v24  ;;  %2250 = vst [vmem:[#allocation4] sm:$0xff] %v7085_v24  ;;  %v6222_v32 = vadd.f32 %v1788_v29, %v1112_v56 }
 0x276   : > { %v7102_v33 = vadd.f32 %v6221_v28, %v7075_v17 }
 0x277   : > { %v7107_v35 = vadd.f32 %v6222_v32, %v7075_v17  ;;  %v5563_v36 = vpop.f32.mrb[4].mxu0 }
 0x278   : > { %v7115_v39 = vmul.f32 %v7102_v33, %v7102_v33  ;;  %2253 = vst [vmem:[#allocation4 + $0x18] sm:$0xff] %v7102_v33  ;;  %v6223_v40 = vadd.f32 %v5563_v36, %v5457_v57  ;;  %v1798_v41 = vpop.f32.mrb[5].mxu0 }
 0x279   : > { %v5841_v42 = vpack.c.bf16 %v7102_v33, %v7107_v35  ;;  %v7122_v43 = vmul.f32 %v7107_v35, %v7107_v35  ;;  %2252 = vst [vmem:[#allocation4 + $0x10] sm:$0xff] %v7107_v35  ;;  %v6224_v44 = vadd.f32 %v1798_v41, %v1122_v58 }
 0x27a   : > { %v7126_v45 = vadd.f32 %v6223_v40, %v7075_v17 }
 0x27b   : > { %v7129_v46 = vadd.f32 %v6224_v44, %v7075_v17  ;;  %v5566_v47 = vpop.f32.mrb[6].mxu0 }
 0x27c   : > { %v7135_v49 = vmul.f32 %v7126_v45, %v7126_v45  ;;  %2255 = vst [vmem:[#allocation4 + $0x28] sm:$0xff] %v7126_v45  ;;  %v6225_v50 = vadd.f32 %v5566_v47, %v5460_v59  ;;  %v1808_v51 = vpop.f32.mrb[7].mxu0 }
 0x27d   : > { %v7142_v54 = vmul.f32 %v7129_v46, %v7129_v46  ;;  %2254 = vst [vmem:[#allocation4 + $0x20] sm:$0xff] %v7129_v46  ;;  %v6226_v55 = vadd.f32 %v1808_v51, %v7032_v60 }
 0x27e   : > { %v7147_v56 = vadd.f32 %v6225_v50, %v7075_v17 }
 0x27f   : > { %v7150_v57 = vadd.f32 %v6226_v55, %v7075_v17  ;;  %v5569_v58 = vpop.f32.mrb[8].mxu0 }
 0x280   : > { %v7156_v16 = vmul.f32 %v7147_v56, %v7147_v56  ;;  %2257 = vst [vmem:[#allocation4 + $0x38] sm:$0xff] %v7147_v56  ;;  %v6227_v19 = vadd.f32 %v5569_v58, %v7034_v61  ;;  %v1818_v20 = vpop.f32.mrb[9].mxu0 }
 0x281   : > { %v7164_v21 = vmul.f32 %v7150_v57, %v7150_v57  ;;  %2256 = vst [vmem:[#allocation4 + $0x30] sm:$0xff] %v7150_v57  ;;  %v6228_v25 = vadd.f32 %v1818_v20, %v7036_v62 }
 0x282   : > { %v7169_v28 = vadd.f32 %v6227_v19, %v7075_v17 }
 0x283   : > { %v7172_v29 = vadd.f32 %v6228_v25, %v7075_v17  ;;  %v5572_v32 = vpop.f32.mrb[10].mxu0 }
 0x284   : > { %v7178_v36 = vmul.f32 %v7169_v28, %v7169_v28  ;;  %2259 = vst [vmem:[#allocation4 + $0x48] sm:$0xff] %v7169_v28  ;;  %v6229_v40 = vadd.f32 %v5572_v32, %v7038_v63  ;;  %v1828_v41 = vpop.f32.mrb[11].mxu0 }
 0x285   : > { %v7186_v44 = vmul.f32 %v7172_v29, %v7172_v29  ;;  %2258 = vst [vmem:[#allocation4 + $0x40] sm:$0xff] %v7172_v29  ;;  %v6230_v47 = vadd.f32 %v1828_v41, %v7040_v0 }
 0x286   : > { %v7191_v50 = vadd.f32 %v6229_v40, %v7075_v17 }
 0x287   : > { %v7194_v51 = vadd.f32 %v6230_v47, %v7075_v17  ;;  %v5575_v55 = vpop.f32.mrb[12].mxu0 }
 0x288   : > { %v7200_v58 = vmul.f32 %v7191_v50, %v7191_v50  ;;  %2261 = vst [vmem:[#allocation4 + $0x58] sm:$0xff] %v7191_v50  ;;  %v6231_v19 = vadd.f32 %v5575_v55, %v7042_v1  ;;  %v1838_v20 = vpop.f32.mrb[13].mxu0 }
 0x289   : > { %v7208_v25 = vmul.f32 %v7194_v51, %v7194_v51  ;;  %2260 = vst [vmem:[#allocation4 + $0x50] sm:$0xff] %v7194_v51  ;;  %v6232_v32 = vadd.f32 %v1838_v20, %v7044_v2 }
 0x28a   : > { %v7213_v40 = vadd.f32 %v6231_v19, %v7075_v17 }
 0x28b   : > { %v7216_v41 = vadd.f32 %v6232_v32, %v7075_v17  ;;  %v5578_v47 = vpop.f32.mrb[14].mxu0 }
 0x28c   : > { %v7222_v55 = vmul.f32 %v7213_v40, %v7213_v40  ;;  %2263 = vst [vmem:[#allocation4 + $0x68] sm:$0xff] %v7213_v40  ;;  %v6233_v63 = vadd.f32 %v5578_v47, %v7046_v3  ;;  %v1848_v61 = vpop.f32.mrb[15].mxu0 }
 0x28d   : > { %v7230_v19 = vmul.f32 %v7216_v41, %v7216_v41  ;;  %2262 = vst [vmem:[#allocation4 + $0x60] sm:$0xff] %v7216_v41  ;;  %v6234_v20 = vadd.f32 %v1848_v61, %v7048_v4 }
 0x28e   : > { %v7235_v32 = vadd.f32 %v6233_v63, %v7075_v17 }
 0x28f   : > { %v7238_v1 = vadd.f32 %v6234_v20, %v7075_v17  ;;  %v5581_v59 = vpop.f32.mrb[16].mxu0 }
 0x290   : > { %v7244_v47 = vmul.f32 %v7235_v32, %v7235_v32  ;;  %2265 = vst [vmem:[#allocation4 + $0x78] sm:$0xff] %v7235_v32  ;;  %v6235_v48 = vadd.f32 %v5581_v59, %v7050_v5  ;;  %v1858_v38 = vpop.f32.mrb[17].mxu0 }
 0x291   : > { %v7252_v61 = vmul.f32 %v7238_v1, %v7238_v1  ;;  %2264 = vst [vmem:[#allocation4 + $0x70] sm:$0xff] %v7238_v1  ;;  %v6236_v63 = vadd.f32 %v1858_v38, %v7052_v6 }
 0x292   : > { %v1993_v20 = vadd.f32 %v6235_v48, %v7075_v17 }
 0x293   : > { %v1992_v3 = vadd.f32 %v6236_v63, %v7075_v17  ;;  %v5584_v2 = vpop.f32.mrb[18].mxu0  ;;  %v5897_v5 = vpack.c.bf16 %v7244_v47, %v7252_v61  ;;  %v2010_v61 = vld [vmem:[#allocation5 + $0x10] sm:$0xff] }
 0x294   : > { %2267 = vst [vmem:[#allocation4 + $0x88] sm:$0xff] %v1993_v20  ;;  %v6237_v59 = vadd.f32 %v5584_v2, %v7054_v7  ;;  %v1868_v4 = vpop.f32.mrb[19].mxu0  ;;  %v7261_v0 = vmul.f32 %v1993_v20, %v1993_v20 }
 0x295   : > { %2266 = vst [vmem:[#allocation4 + $0x80] sm:$0xff] %v1992_v3  ;;  %v6238_v62 = vadd.f32 %v1868_v4, %v7056_v8  ;;  %v5835_v60 = vpack.c.bf16 %v1993_v20, %v1992_v3  ;;  %v7264_v53 = vmul.f32 %v1992_v3, %v1992_v3 }
 0x296   : > { %v1995_v6 = vadd.f32 %v6237_v59, %v7075_v17 }
 0x297   : > { %v1994_v38 = vadd.f32 %v6238_v62, %v7075_v17  ;;  %v5587_v48 = vpop.f32.mrb[20].mxu0  ;;  %5836 = vmatprep.subr.bf16.mxu1 %v5835_v60  ;;  %v5867_v63 = vpack.c.bf16 %v7261_v0, %v7264_v53  ;;  %v2016_v53 = vld [vmem:[%s6701_s30 + $0x20] sm:$0xff]  ;;  %v2018_v0 = vld [vmem:[%s6701_s30 + $0x30] sm:$0xff] }
 0x298   : > { %2269 = vst [vmem:[#allocation4 + $0x98] sm:$0xff] %v1995_v6  ;;  %v6239_v7 = vadd.f32 %v5587_v48, %v7058_v9  ;;  %v1878_v2 = vpop.f32.mrb[21].mxu0  ;;  %5838 = vmatpush3.bf16.msra.mxu1 %v5837_v30  ;;  %v7274_v8 = vmul.f32 %v1995_v6, %v1995_v6 }
 0x299   : > { %2268 = vst [vmem:[#allocation4 + $0x90] sm:$0xff] %v1994_v38  ;;  %v6240_v3 = vadd.f32 %v1878_v2, %v7060_v10  ;;  %v5839_v4 = vpack.c.bf16 %v1995_v6, %v1994_v38  ;;  %v7277_v62 = vmul.f32 %v1994_v38, %v1994_v38 }
 0x29a   : > { %v1997_v60 = vadd.f32 %v6239_v7, %v7075_v17 }
 0x29b   : > { %v1996_v20 = vadd.f32 %v6240_v3, %v7075_v17  ;;  %v5590_v59 = vpop.f32.mrb[22].mxu0  ;;  %5840 = vmatprep.subr.bf16.mxu1 %v5839_v4  ;;  %v5871_v9 = vpack.c.bf16 %v7274_v8, %v7277_v62 }
 0x29c   : > { %2271 = vst [vmem:[#allocation4 + $0xa8] sm:$0xff] %v1997_v60  ;;  %v6241_v22 = vadd.f32 %v5590_v59, %v7062_v11  ;;  %v1888_v24 = vpop.f32.mrb[23].mxu0  ;;  %5842 = vmatpush3.bf16.msra.mxu1 %v5841_v42  ;;  %v7287_v10 = vmul.f32 %v1997_v60, %v1997_v60  ;;  %v7996_v42 = vpack.c.bf16 %v7126_v45, %v7129_v46 }
 0x29d   : > { %2270 = vst [vmem:[#allocation4 + $0xa0] sm:$0xff] %v1996_v20  ;;  %v6242_v30 = vadd.f32 %v1888_v24, %v7064_v12  ;;  %v5843_v6 = vpack.c.bf16 %v1997_v60, %v1996_v20  ;;  %v7290_v38 = vmul.f32 %v1996_v20, %v1996_v20  ;;  %v7997_v24 = vpack.c.bf16 %v7147_v56, %v7150_v57 }
 0x29e   : > { %v1999_v48 = vadd.f32 %v6241_v22, %v7075_v17 }
 0x29f   : > { %v1998_v7 = vadd.f32 %v6242_v30, %v7075_v17  ;;  %v5593_v2 = vpop.f32.mrb[24].mxu0  ;;  %5844 = vmatprep.subr.bf16.mxu1 %v5843_v6  ;;  %v5875_v11 = vpack.c.bf16 %v7287_v10, %v7290_v38  ;;  %v2011_v10 = vld [vmem:[#allocation5 + $0x18] sm:$0xff] }
 0x2a0   : > { %2273 = vst [vmem:[#allocation4 + $0xb8] sm:$0xff] %v1999_v48  ;;  %v6243_v33 = vadd.f32 %v5593_v2, %v7066_v13  ;;  %v1898_v35 = vpop.f32.mrb[25].mxu0  ;;  %5846 = vmatpush3.bf16.msra.mxu1 %v7996_v42  ;;  %v7300_v12 = vmul.f32 %v1999_v48, %v1999_v48 }
 0x2a1   : > { %2272 = vst [vmem:[#allocation4 + $0xb0] sm:$0xff] %v1998_v7  ;;  %v6244_v3 = vadd.f32 %v1898_v35, %v7068_v14  ;;  %v5847_v4 = vpack.c.bf16 %v1999_v48, %v1998_v7  ;;  %v7303_v60 = vmul.f32 %v1998_v7, %v1998_v7  ;;  %v7998_v35 = vpack.c.bf16 %v7169_v28, %v7172_v29 }
 0x2a2   : > { %v2001_v20 = vadd.f32 %v6243_v33, %v7075_v17  ;;  %v7999_v28 = vpack.c.bf16 %v7191_v50, %v7194_v51 }
 0x2a3   : > { %v2000_v59 = vadd.f32 %v6244_v3, %v7075_v17  ;;  %v5596_v22 = vpop.f32.mrb[26].mxu0  ;;  %5848 = vmatprep.subr.bf16.mxu1 %v5847_v4  ;;  %v5879_v13 = vpack.c.bf16 %v7300_v12, %v7303_v60 }
 0x2a4   : > { %2275 = vst [vmem:[#allocation4 + $0xc8] sm:$0xff] %v2001_v20  ;;  %v6245_v45 = vadd.f32 %v5596_v22, %v7070_v15  ;;  %v1908_v46 = vpop.f32.mrb[27].mxu0  ;;  %5850 = vmatpush3.bf16.msra.mxu1 %v7997_v24  ;;  %v7313_v14 = vmul.f32 %v2001_v20, %v2001_v20 }
 0x2a5   : > { %2274 = vst [vmem:[#allocation4 + $0xc0] sm:$0xff] %v2000_v59  ;;  %v6246_v30 = vadd.f32 %v1908_v46, %v7077_v18  ;;  %v5851_v6 = vpack.c.bf16 %v2001_v20, %v2000_v59  ;;  %v7316_v48 = vmul.f32 %v2000_v59, %v2000_v59 }
 0x2a6   : > { %v2003_v7 = vadd.f32 %v6245_v45, %v7075_v17 }
 0x2a7   : > { %v2002_v2 = vadd.f32 %v6246_v30, %v7075_v17  ;;  %v5599_v33 = vpop.f32.mrb[28].mxu0  ;;  %5852 = vmatprep.subr.bf16.mxu1 %v5851_v6  ;;  %v5883_v15 = vpack.c.bf16 %v7313_v14, %v7316_v48 }
 0x2a8   : > { %2277 = vst [vmem:[#allocation4 + $0xd8] sm:$0xff] %v2003_v7  ;;  %v6247_v56 = vadd.f32 %v5599_v33, %v7082_v23  ;;  %v1918_v57 = vpop.f32.mrb[29].mxu0  ;;  %5854 = vmatpush3.bf16.msra.mxu1 %v7998_v35  ;;  %v2152_v18 = vmul.f32 %v2003_v7, %v2003_v7  ;;  %v2014_v33 = vld [vmem:[%s6701_s30 + $0x10] sm:$0xff] }
 0x2a9   : > { %2276 = vst [vmem:[#allocation4 + $0xd0] sm:$0xff] %v2002_v2  ;;  %v6248_v42 = vadd.f32 %v1918_v57, %v7087_v26  ;;  %v5855_v3 = vpack.c.bf16 %v2003_v7, %v2002_v2  ;;  %v2151_v4 = vmul.f32 %v2002_v2, %v2002_v2  ;;  %v8001_v2 = vpack.c.bf16 %v7235_v32, %v7238_v1  ;;  %v2017_v1 = vld [vmem:[%s6701_s30 + $0x28] sm:$0xff] }
 0x2aa   : > { %v2005_v20 = vadd.f32 %v6247_v56, %v7075_v17  ;;  %v8003_v32 = vpack.c.bf16 %v7115_v39, %v7122_v43  ;;  %v8005_v39 = vpack.c.bf16 %v7156_v16, %v7164_v21  ;;  %v8006_v43 = vpack.c.bf16 %v7178_v36, %v7186_v44  ;;  %v2008_v16 = vld [vmem:[#allocation5] sm:$0xff] }
 0x2ab   : > { %v2004_v59 = vadd.f32 %v6248_v42, %v7075_v17  ;;  %v5602_v22 = vpop.f32.mrb[30].mxu0  ;;  %5856 = vmatprep.subr.bf16.mxu1 %v5855_v3  ;;  %v5887_v45 = vpack.c.bf16 %v2152_v18, %v2151_v4  ;;  %v2114_v18 = vld [vmem:[#allocation6 + $0x8] sm:$0xff] }
 0x2ac   : > { %2279 = vst [vmem:[#allocation4 + $0xe8] sm:$0xff] %v2005_v20  ;;  %v6249_v23 = vadd.f32 %v5602_v22, %v7104_v34  ;;  %v1928_v46 = vpop.f32.mrb[31].mxu0  ;;  %5858 = vmatpush3.bf16.msra.mxu1 %v7999_v28  ;;  %v2154_v29 = vmul.f32 %v2005_v20, %v2005_v20  ;;  %v8000_v34 = vpack.c.bf16 %v7213_v40, %v7216_v41  ;;  %v2015_v40 = vld [vmem:[%s6701_s30 + $0x18] sm:$0xff] }
 0x2ad   : > { %2278 = vst [vmem:[#allocation4 + $0xe0] sm:$0xff] %v2004_v59  ;;  %v6250_v26 = vadd.f32 %v1928_v46, %v7109_v37  ;;  %v5859_v24 = vpack.c.bf16 %v2005_v20, %v2004_v59  ;;  %v2153_v14 = vmul.f32 %v2004_v59, %v2004_v59  ;;  %v8002_v41 = vpack.c.bf16 %v7091_v27, %v7098_v31  ;;  %v2019_v27 = vld [vmem:[%s6701_s30 + $0x38] sm:$0xff]  ;;  %v2115_v59 = vld [vmem:[#allocation6 + $0x10] sm:$0xff] }
 0x2ae   : > { %v2007_v30 = vadd.f32 %v6249_v23, %v7075_v17  ;;  %v8004_v31 = vpack.c.bf16 %v7135_v49, %v7142_v54  ;;  %v8007_v49 = vpack.c.bf16 %v7200_v58, %v7208_v25  ;;  %v8008_v54 = vpack.c.bf16 %v7222_v55, %v7230_v19  ;;  %v2009_v25 = vld [vmem:[#allocation5 + $0x8] sm:$0xff]  ;;  %v2116_v28 = vld [vmem:[#allocation6 + $0x18] sm:$0xff] }
 0x2af   : > { %v2006_v6 = vadd.f32 %v6250_v26, %v7075_v17  ;;  %5860 = vmatprep.subr.bf16.mxu1 %v5859_v24  ;;  %v5891_v48 = vpack.c.bf16 %v2154_v29, %v2153_v14  ;;  %v2012_v17 = vld [vmem:[%s6701_s30] sm:$0xff]  ;;  %s7386_s30 = smov 0  }
 0x2b0   : > { %2281 = vst [vmem:[#allocation4 + $0xf8] sm:$0xff] %v2007_v30  ;;  %5862 = vmatpush3.bf16.msra.mxu1 %v8000_v34  ;;  %v2156_v50 = vmul.f32 %v2007_v30, %v2007_v30 }
 0x2b1   : > { %2280 = vst [vmem:[#allocation4 + $0xf0] sm:$0xff] %v2006_v6  ;;  %v5863_v37 = vpack.c.bf16 %v2007_v30, %v2006_v6  ;;  %v2155_v51 = vmul.f32 %v2006_v6, %v2006_v6 }
 0x2b3   : > { %5864 = vmatprep.subr.bf16.mxu1 %v5863_v37  ;;  %v5895_v7 = vpack.c.bf16 %v2156_v50, %v2155_v51 }
 0x2b4   : > { %5866 = vmatpush3.bf16.msra.mxu1 %v8001_v2 }
 0x2b5   : > { %5868 = vmatprep.subr.bf16.mxu1 %v5867_v63 }
 0x2b7   : > { %2085 = vmatmul.mubr.f32.vlgmr.msra.gmra.mrb[32].mxu1 %v2012_v17 }
 0x2b8   : > { %5870 = vmatpush3.bf16.msra.mxu1 %v8002_v41  ;;  %2089 = vmatprep.mubr.f32.mxu1 %v2015_v40 }
 0x2b9   : > { %5872 = vmatprep.subr.bf16.mxu1 %v5871_v9 }
 0x2bb   : > { %2090 = vmatmul.mubr.f32.gmra.mrb[34].mxu1 %v2014_v33 }
 0x2bc   : > { %5874 = vmatpush3.bf16.msra.mxu1 %v8003_v32  ;;  %2094 = vmatprep.mubr.f32.mxu1 %v2017_v1 }
 0x2bd   : > { %5876 = vmatprep.subr.bf16.mxu1 %v5875_v11 }
 0x2bf   : > { %2095 = vmatmul.mubr.f32.gmra.mrb[36].mxu1 %v2016_v53 }
 0x2c0   : > { %5878 = vmatpush3.bf16.msra.mxu1 %v8004_v31  ;;  %2099 = vmatprep.mubr.f32.mxu1 %v2019_v27 }
 0x2c1   : > { %5880 = vmatprep.subr.bf16.mxu1 %v5879_v13  ;;  %v2113_v13 = vld [vmem:[#allocation6] sm:$0xff] }
 0x2c3   : > { %2100 = vmatmul.mubr.f32.gmra.mrb[38].mxu1 %v2018_v0 }
 0x2c4   : > { %5882 = vmatpush3.bf16.msra.mxu1 %v8005_v39  ;;  %2221 = vmatprep.mubr.f32.mxu1 %v7029_v52 }
 0x2c5   : > { %5884 = vmatprep.subr.bf16.mxu1 %v5883_v15 }
 0x2c8   : > { %5886 = vmatpush3.bf16.msra.mxu1 %v8006_v43 }
 0x2c9   : > { %5888 = vmatprep.subr.bf16.mxu1 %v5887_v45 }
 0x2cc   : > { %5890 = vmatpush3.bf16.msra.mxu1 %v8007_v49 }
 0x2cd   : > { %5892 = vmatprep.subr.bf16.mxu1 %v5891_v48 }
 0x2d0   : > { %5894 = vmatpush3.bf16.msra.mxu1 %v8008_v54 }
 0x2d1   : > { %5896 = vmatprep.subr.bf16.mxu1 %v5895_v7 }
 0x2d4   : > { %5898 = vmatpush3.bf16.msra.mxu1 %v5897_v5 }
 0x2d7   : > { %2222 = vmatmul.mubr.f32.vlgmr.msra.gmra.mrb[40].mxu1 %v2012_v17 }
 0x2d8   : > { %2226 = vmatprep.mubr.f32.mxu1 %v2015_v40 }
 0x2db   : > { %2227 = vmatmul.mubr.f32.gmra.mrb[42].mxu1 %v2014_v33 }
 0x2dc   : > { %2231 = vmatprep.mubr.f32.mxu1 %v2017_v1 }
 0x2df   : > { %2232 = vmatmul.mubr.f32.gmra.mrb[44].mxu1 %v2016_v53 }
 0x2e0   : > { %2236 = vmatprep.mubr.f32.mxu1 %v2019_v27 }
 0x2e3   : > { %2237 = vmatmul.mubr.f32.gmra.mrb[46].mxu1 %v2018_v0 }
 0x38a   : > { %v4965_v52 = vpop.f32.mrb[32].mxu1 }
 0x38b   : > { %v4966_v21 = vpop.f32.mrb[33].mxu1 }
 0x38c   : > { %v4967_v36 = vadd.f32 %v4966_v21, %v4965_v52 }
 0x38e   : > { %v2105_v44 = vadd.f32 %v4967_v36, %v2008_v16  ;;  %v4968_v58 = vpop.f32.mrb[34].mxu1 }
 0x38f   : > { %v4969_v55 = vpop.f32.mrb[35].mxu1 }
 0x390   : > { %2109 = vst [vmem:[#allocation5] sm:$0xff] %v2105_v44  ;;  %v4970_v19 = vadd.f32 %v4969_v55, %v4968_v58 }
 0x392   : > { %v2106_v63 = vadd.f32 %v4970_v19, %v2009_v25  ;;  %v4971_v47 = vpop.f32.mrb[36].mxu1 }
 0x393   : > { %v4972_v5 = vpop.f32.mrb[37].mxu1 }
 0x394   : > { %2110 = vst [vmem:[#allocation5 + $0x8] sm:$0xff] %v2106_v63  ;;  %v4973_v8 = vadd.f32 %v4972_v5, %v4971_v47 }
 0x396   : > { %v2107_v62 = vadd.f32 %v4973_v8, %v2010_v61  ;;  %v4974_v9 = vpop.f32.mrb[38].mxu1 }
 0x397   : > { %v4975_v38 = vpop.f32.mrb[39].mxu1 }
 0x398   : > { %2111 = vst [vmem:[#allocation5 + $0x10] sm:$0xff] %v2107_v62  ;;  %v4976_v11 = vadd.f32 %v4975_v38, %v4974_v9 }
 0x39a   : > { %v2108_v12 = vadd.f32 %v4976_v11, %v2011_v10 }
 0x39c   : > { %2112 = vst [vmem:[#allocation5 + $0x18] sm:$0xff] %v2108_v12 }
 0x3aa   : > { %v5009_v60 = vpop.f32.mrb[40].mxu1 }
 0x3ab   : > { %v5010_v15 = vpop.f32.mrb[41].mxu1 }
 0x3ac   : > { %v5011_v56 = vadd.f32 %v5010_v15, %v5009_v60 }
 0x3ae   : > { %v2242_v57 = vadd.f32 %v5011_v56, %v2113_v13  ;;  %v5012_v35 = vpop.f32.mrb[42].mxu1 }
 0x3af   : > { %v5013_v42 = vpop.f32.mrb[43].mxu1 }
 0x3b0   : > { %2246 = vst [vmem:[#allocation6] sm:$0xff] %v2242_v57  ;;  %v5014_v3 = vadd.f32 %v5013_v42, %v5012_v35 }
 0x3b2   : > { %v2243_v4 = vadd.f32 %v5014_v3, %v2114_v18  ;;  %v5015_v20 = vpop.f32.mrb[44].mxu1 }
 0x3b3   : > { %v5016_v22 = vpop.f32.mrb[45].mxu1 }
 0x3b4   : > { %2247 = vst [vmem:[#allocation6 + $0x8] sm:$0xff] %v2243_v4  ;;  %v5017_v45 = vadd.f32 %v5016_v22, %v5015_v20 }
 0x3b6   : > { %v2244_v23 = vadd.f32 %v5017_v45, %v2115_v59  ;;  %v5018_v46 = vpop.f32.mrb[46].mxu1 }
 0x3b7   : > { %v5019_v29 = vpop.f32.mrb[47].mxu1 }
 0x3b8   : > { %2248 = vst [vmem:[#allocation6 + $0x10] sm:$0xff] %v2244_v23  ;;  %v5020_v26 = vadd.f32 %v5019_v29, %v5018_v46 }
 0x3ba   : > { %v2245_v24 = vadd.f32 %v5020_v26, %v2116_v28 }
 0x3bc   : > { %2249 = vst [vmem:[#allocation6 + $0x18] sm:$0xff] %v2245_v24 }
 0x3bd LB: >> { %s4762_s22 = sshll.u32 %s6640_s25, 8  ;;  %s4761_s15 = sshll.u32 %s6520_s30, 3  ;;  %s6520_s30 = sphi %s7386_s30, %s2287_s30  }
 0x3be   : >> { %s7393_s0 = sadd.s32 %s4762_s22, %s4761_s15  ;;  %s2289_s14 = scalar_lea.vmem [#allocation4], %s4761_s15 }
 0x3bf   : >> { %v7395_v14 = vld [vmem:[%s2289_s14] sm:$0xff]  ;;  %p4763_p3 = scmp.ge.s32.totalorder %s7393_s0, 512 }
 0x3c0   : >> { %s2297_s20 = sld [smem:[#allocation11 + %s7393_s0]] (!%p4763_p3) }
 0x3c1   : >> { %2296 = sbr.rel (%p4763_p3) target bundleno = 972 (0x3cc), region = 118 }
 0x3c6   : >> { %s2298_s21 = scalar_lea.vmem (!%p4763_p3), [#allocation7], %s2297_s20  ;;  %s2302_s27 = scalar_lea.vmem (!%p4763_p3), [#allocation8], %s2297_s20 }
 0x3c7   : >> { %v2299_v30 = vld [vmem:[%s2298_s21] sm:$0x1] (!%p4763_p3) }
 0x3c8   : >> { %v2303_v6 = vld [vmem:[%s2302_s27] sm:$0x1]  ;;  %v2300_v48 = vmin.f32 %v2299_v30, %v7395_v14 }
 0x3c9   : >> { %v2304_v34 = vmax.f32 %v2303_v6, %v7395_v14 }
 0x3ca   : >> { %2301 = vst [vmem:[%s2298_s21] sm:$0x1] %v2300_v48 }
 0x3cb   : >> { %2305 = vst [vmem:[%s2302_s27] sm:$0x1] %v2304_v34 }
 0x3cc PF: >> { %s2306_s18 = sadd.s32 1, %s7393_s0 }
 0x3cd   : >> { %p4764_p5 = scmp.ge.s32.totalorder %s2306_s18, 512 }
 0x3ce   : >> { %s2311_s23 = sld [smem:[#allocation11 + %s2306_s18]] (!%p4764_p5)  ;;  %v2318_v50 = vlaneseq (!%p4764_p5)  ;;  %v6529_v37 = vmov (!%p4764_p5), 1966171168  }
 0x3cf   : >> { %2310 = sbr.rel (%p4764_p5) target bundleno = 990 (0x3de), region = 122  ;;  %v2316_v51 = vunpack.c.l.s4 (!%p4764_p5), %v6529_v37 }
 0x3d0   : >> { %v2319_v7 = vshrl.u32 (!%p4764_p5), %v2318_v50, 7 }
 0x3d1   : >> { %v2317_v2 = vunpack.c.0.s8 (!%p4764_p5), %v2316_v51 }
 0x3d3   : >> { %v2320_v17 = vsub.s32 (!%p4764_p5), %v2317_v2, %v2319_v7 }
 0x3d4   : >> { %s2312_s26 = scalar_lea.vmem (!%p4764_p5), [#allocation7], %s2311_s23  ;;  %s2333_s29 = scalar_lea.vmem (!%p4764_p5), [#allocation8], %s2311_s23 }
 0x3d5   : >> { %v2321_v40 = vrot.slane (!%p4764_p5), %v7395_v14, %v2320_v17  ;;  %v2313_v33 = vld [vmem:[%s2312_s26] sm:$0x1] (!%p4764_p5) }
 0x3d6   : >> { %v2334_v1 = vld [vmem:[%s2333_s29] sm:$0x1] }
 0x3d7   : >> { %v2322_v41 = vcombine.high %v2321_v40, %v2321_v40 }
 0x3d9   : >> { %v2329_v32 = vrot.slane %v2322_v41, %v2320_v17 }
 0x3db   : >> { %v2331_v53 = vmin.f32 %v2313_v33, %v2329_v32  ;;  %v2335_v27 = vmax.f32 %v2334_v1, %v2329_v32 }
 0x3dd   : >> { %2332 = vst [vmem:[%s2312_s26] sm:$0x1] %v2331_v53  ;;  %2336 = vst [vmem:[%s2333_s29] sm:$0x1] %v2335_v27 }
 0x3de PF: >> { %s2337_s17 = sadd.s32 2, %s7393_s0 }
 0x3df   : >> { %p4765_p6 = scmp.ge.s32.totalorder %s2337_s17, 512 }
 0x3e0   : >> { %s2342_s19 = sld [smem:[#allocation11 + %s2337_s17]] (!%p4765_p6)  ;;  %v2349_v31 = vlaneseq (!%p4765_p6)  ;;  %v6530_v0 = vmov (!%p4765_p6), 1966171168  }
 0x3e1   : >> { %2341 = sbr.rel (%p4765_p6) target bundleno = 1008 (0x3f0), region = 126  ;;  %v2347_v39 = vunpack.c.l.s4 (!%p4765_p6), %v6530_v0 }
 0x3e2   : >> { %v2350_v43 = vshrl.u32 (!%p4765_p6), %v2349_v31, 7 }
 0x3e3   : >> { %v2348_v49 = vunpack.c.0.s8 (!%p4765_p6), %v2347_v39 }
 0x3e5   : >> { %v2351_v54 = vsub.s32 (!%p4765_p6), %v2348_v49, %v2350_v43 }
 0x3e6   : >> { %s2343_s16 = scalar_lea.vmem (!%p4765_p6), [#allocation7], %s2342_s19  ;;  %s2364_s28 = scalar_lea.vmem (!%p4765_p6), [#allocation8], %s2342_s19 }
 0x3e7   : >> { %v2352_v52 = vrot.slane (!%p4765_p6), %v7395_v14, %v2351_v54  ;;  %v2344_v21 = vld [vmem:[%s2343_s16] sm:$0x1] (!%p4765_p6) }
 0x3e8   : >> { %v2365_v36 = vld [vmem:[%s2364_s28] sm:$0x1] }
 0x3e9   : >> { %v2359_v16 = vrot.slane %v2352_v52, %v2351_v54 }
 0x3eb   : >> { %v2360_v44 = vcombine.high %v2359_v16, %v2359_v16 }
 0x3ed   : >> { %v2362_v58 = vmin.f32 %v2344_v21, %v2360_v44  ;;  %v2366_v25 = vmax.f32 %v2365_v36, %v2360_v44 }
 0x3ef   : >> { %2363 = vst [vmem:[%s2343_s16] sm:$0x1] %v2362_v58  ;;  %2367 = vst [vmem:[%s2364_s28] sm:$0x1] %v2366_v25 }
 0x3f0 PF: >> { %s2368_s22 = sadd.s32 3, %s7393_s0 }
 0x3f1   : >> { %p4766_p7 = scmp.ge.s32.totalorder %s2368_s22, 512 }
 0x3f2   : >> { %v2380_v55 = vlaneseq (!%p4766_p7)  ;;  %s2373_s15 = sld [smem:[#allocation11 + %s2368_s22]] (!%p4766_p7)  ;;  %v6531_v19 = vmov (!%p4766_p7), 1966171168  }
 0x3f3   : >> { %2372 = sbr.rel (%p4766_p7) target bundleno = 1028 (0x404), region = 130  ;;  %v2378_v63 = vunpack.c.l.s4 (!%p4766_p7), %v6531_v19 }
 0x3f4   : >> { %v2381_v47 = vshrl.u32 (!%p4766_p7), %v2380_v55, 7 }
 0x3f5   : >> { %v2379_v61 = vunpack.c.0.s8 (!%p4766_p7), %v2378_v63 }
 0x3f7   : >> { %v2382_v5 = vsub.s32 (!%p4766_p7), %v2379_v61, %v2381_v47 }
 0x3f8   : >> { %s2374_s14 = scalar_lea.vmem (!%p4766_p7), [#allocation7], %s2373_s15  ;;  %s2396_s20 = scalar_lea.vmem (!%p4766_p7), [#allocation8], %s2373_s15 }
 0x3f9   : >> { %v2383_v8 = vrot.slane (!%p4766_p7), %v7395_v14, %v2382_v5  ;;  %v2375_v10 = vld [vmem:[%s2374_s14] sm:$0x1] (!%p4766_p7) }
 0x3fa   : >> { %v2397_v38 = vld [vmem:[%s2396_s20] sm:$0x1] }
 0x3fb   : >> { %v2384_v62 = vcombine.high %v2383_v8, %v2383_v8 }
 0x3fd   : >> { %v2391_v9 = vrot.slane %v2384_v62, %v2382_v5 }
 0x3ff   : >> { %v2392_v11 = vcombine.high %v2391_v9, %v2391_v9 }
 0x401   : >> { %v2394_v12 = vmin.f32 %v2375_v10, %v2392_v11  ;;  %v2398_v60 = vmax.f32 %v2397_v38, %v2392_v11 }
 0x403   : >> { %2395 = vst [vmem:[%s2374_s14] sm:$0x1] %v2394_v12  ;;  %2399 = vst [vmem:[%s2396_s20] sm:$0x1] %v2398_v60 }
 0x404 PF: >> { %s2400_s21 = sadd.s32 4, %s7393_s0 }
 0x405   : >> { %p4767_p8 = scmp.ge.s32.totalorder %s2400_s21, 512 }
 0x406   : >> { %s2405_s27 = sld [smem:[#allocation11 + %s2400_s21]] (!%p4767_p8)  ;;  %v2413_v13 = vlaneseq (!%p4767_p8)  ;;  %v6532_v15 = vmov (!%p4767_p8), 1966171168   ;;  %v2409_v35 = vcombine.high (!%p4767_p8), %v7395_v14, %v7395_v14 }
 0x407   : >> { %2404 = sbr.rel (%p4767_p8) target bundleno = 1044 (0x414), region = 134  ;;  %v2411_v56 = vunpack.c.l.s4 (!%p4767_p8), %v6532_v15 }
 0x408   : >> { %v2414_v57 = vshrl.u32 (!%p4767_p8), %v2413_v13, 7 }
 0x409   : >> { %v2412_v18 = vunpack.c.0.s8 (!%p4767_p8), %v2411_v56 }
 0x40b   : >> { %v2415_v42 = vsub.s32 (!%p4767_p8), %v2412_v18, %v2414_v57 }
 0x40c   : >> { %s2406_s18 = scalar_lea.vmem (!%p4767_p8), [#allocation7], %s2405_s27  ;;  %s2427_s23 = scalar_lea.vmem (!%p4767_p8), [#allocation8], %s2405_s27 }
 0x40d   : >> { %v2416_v3 = vrot.slane (!%p4767_p8), %v2409_v35, %v2415_v42  ;;  %v2407_v4 = vld [vmem:[%s2406_s18] sm:$0x1] (!%p4767_p8) }
 0x40e   : >> { %v2428_v20 = vld [vmem:[%s2427_s23] sm:$0x1] }
 0x40f   : >> { %v2423_v59 = vrot.slane %v2416_v3, %v2415_v42 }
 0x411   : >> { %v2425_v22 = vmin.f32 %v2407_v4, %v2423_v59  ;;  %v2429_v45 = vmax.f32 %v2428_v20, %v2423_v59 }
 0x413   : >> { %2426 = vst [vmem:[%s2406_s18] sm:$0x1] %v2425_v22  ;;  %2430 = vst [vmem:[%s2427_s23] sm:$0x1] %v2429_v45 }
 0x414 PF: >> { %s2431_s26 = sadd.s32 5, %s7393_s0 }
 0x415   : >> { %p4768_p10 = scmp.ge.s32.totalorder %s2431_s26, 512 }
 0x416   : >> { %s2436_s29 = sld [smem:[#allocation11 + %s2431_s26]] (!%p4768_p10)  ;;  %v2444_v23 = vlaneseq (!%p4768_p10)  ;;  %v6533_v46 = vmov (!%p4768_p10), 1966171168   ;;  %v2440_v26 = vcombine.high (!%p4768_p10), %v7395_v14, %v7395_v14 }
 0x417   : >> { %2435 = sbr.rel (%p4768_p10) target bundleno = 1062 (0x426), region = 138  ;;  %v2442_v28 = vunpack.c.l.s4 (!%p4768_p10), %v6533_v46 }
 0x418   : >> { %v2445_v29 = vshrl.u32 (!%p4768_p10), %v2444_v23, 7 }
 0x419   : >> { %v2443_v24 = vunpack.c.0.s8 (!%p4768_p10), %v2442_v28 }
 0x41b   : >> { %v2446_v30 = vsub.s32 (!%p4768_p10), %v2443_v24, %v2445_v29 }
 0x41c   : >> { %s2437_s17 = scalar_lea.vmem (!%p4768_p10), [#allocation7], %s2436_s29  ;;  %s2459_s19 = scalar_lea.vmem (!%p4768_p10), [#allocation8], %s2436_s29 }
 0x41d   : >> { %v2447_v6 = vrot.slane (!%p4768_p10), %v2440_v26, %v2446_v30  ;;  %v2438_v34 = vld [vmem:[%s2437_s17] sm:$0x1] (!%p4768_p10) }
 0x41e   : >> { %v2460_v50 = vld [vmem:[%s2459_s19] sm:$0x1] }
 0x41f   : >> { %v2448_v48 = vcombine.high %v2447_v6, %v2447_v6 }
 0x421   : >> { %v2455_v37 = vrot.slane %v2448_v48, %v2446_v30 }
 0x423   : >> { %v2457_v51 = vmin.f32 %v2438_v34, %v2455_v37  ;;  %v2461_v7 = vmax.f32 %v2460_v50, %v2455_v37 }
 0x425   : >> { %2458 = vst [vmem:[%s2437_s17] sm:$0x1] %v2457_v51  ;;  %2462 = vst [vmem:[%s2459_s19] sm:$0x1] %v2461_v7 }
 0x426 PF: >> { %s2463_s16 = sadd.s32 6, %s7393_s0 }
 0x427   : >> { %p4769_p0 = scmp.ge.s32.totalorder %s2463_s16, 512 }
 0x428   : >> { %s2468_s28 = sld [smem:[#allocation11 + %s2463_s16]] (!%p4769_p0)  ;;  %v2476_v2 = vlaneseq (!%p4769_p0)  ;;  %v6534_v17 = vmov (!%p4769_p0), 1966171168   ;;  %v2472_v33 = vcombine.high (!%p4769_p0), %v7395_v14, %v7395_v14 }
 0x429   : >> { %2467 = sbr.rel (%p4769_p0) target bundleno = 1080 (0x438), region = 142  ;;  %v2474_v40 = vunpack.c.l.s4 (!%p4769_p0), %v6534_v17 }
 0x42a   : >> { %v2477_v41 = vshrl.u32 (!%p4769_p0), %v2476_v2, 7 }
 0x42b   : >> { %v2475_v1 = vunpack.c.0.s8 (!%p4769_p0), %v2474_v40 }
 0x42d   : >> { %v2478_v32 = vsub.s32 (!%p4769_p0), %v2475_v1, %v2477_v41 }
 0x42e   : >> { %s2469_s22 = scalar_lea.vmem (!%p4769_p0), [#allocation7], %s2468_s28  ;;  %s2491_s15 = scalar_lea.vmem (!%p4769_p0), [#allocation8], %s2468_s28 }
 0x42f   : >> { %v2479_v53 = vrot.slane (!%p4769_p0), %v2472_v33, %v2478_v32  ;;  %v2470_v31 = vld [vmem:[%s2469_s22] sm:$0x1] (!%p4769_p0) }
 0x430   : >> { %v2492_v0 = vld [vmem:[%s2491_s15] sm:$0x1] }
 0x431   : >> { %v2486_v27 = vrot.slane %v2479_v53, %v2478_v32 }
 0x433   : >> { %v2487_v39 = vcombine.high %v2486_v27, %v2486_v27 }
 0x435   : >> { %v2489_v43 = vmin.f32 %v2470_v31, %v2487_v39  ;;  %v2493_v49 = vmax.f32 %v2492_v0, %v2487_v39 }
 0x437   : >> { %2490 = vst [vmem:[%s2469_s22] sm:$0x1] %v2489_v43  ;;  %2494 = vst [vmem:[%s2491_s15] sm:$0x1] %v2493_v49 }
 0x438 PF: >> { %s2495_s14 = sadd.s32 7, %s7393_s0 }
 0x439   : >> { %p4770_p2 = scmp.ge.s32.totalorder %s2495_s14, 512 }
 0x43a   : >> { %v2508_v54 = vlaneseq (!%p4770_p2)  ;;  %s2500_s20 = sld [smem:[#allocation11 + %s2495_s14]] (!%p4770_p2)  ;;  %v6535_v52 = vmov (!%p4770_p2), 1966171168   ;;  %v2504_v36 = vcombine.high (!%p4770_p2), %v7395_v14, %v7395_v14 }
 0x43b   : >> { %2499 = sbr.rel (%p4770_p2) target bundleno = 1100 (0x44c), region = 146  ;;  %v2506_v16 = vunpack.c.l.s4 (!%p4770_p2), %v6535_v52 }
 0x43c   : >> { %v2509_v21 = vshrl.u32 (!%p4770_p2), %v2508_v54, 7 }
 0x43d   : >> { %v2507_v44 = vunpack.c.0.s8 (!%p4770_p2), %v2506_v16 }
 0x43f   : >> { %v2510_v58 = vsub.s32 (!%p4770_p2), %v2507_v44, %v2509_v21 }
 0x440   : >> { %s2501_s21 = scalar_lea.vmem (!%p4770_p2), [#allocation7], %s2500_s20  ;;  %s2524_s27 = scalar_lea.vmem (!%p4770_p2), [#allocation8], %s2500_s20 }
 0x441   : >> { %v2511_v25 = vrot.slane (!%p4770_p2), %v2504_v36, %v2510_v58  ;;  %v2502_v63 = vld [vmem:[%s2501_s21] sm:$0x1] (!%p4770_p2) }
 0x442   : >> { %v2525_v47 = vld [vmem:[%s2524_s27] sm:$0x1] }
 0x443   : >> { %v2512_v55 = vcombine.high %v2511_v25, %v2511_v25 }
 0x445   : >> { %v2519_v19 = vrot.slane %v2512_v55, %v2510_v58 }
 0x447   : >> { %v2520_v61 = vcombine.high %v2519_v19, %v2519_v19 }
 0x449   : >> { %v2522_v5 = vmin.f32 %v2502_v63, %v2520_v61  ;;  %v2526_v8 = vmax.f32 %v2525_v47, %v2520_v61 }
 0x44b   : >> { %2523 = vst [vmem:[%s2501_s21] sm:$0x1] %v2522_v5  ;;  %2527 = vst [vmem:[%s2524_s27] sm:$0x1] %v2526_v8 }
 0x44c PF: >> { %s2287_s30 = sadd.s32 1, %s6520_s30  }
 0x44d   : >> { %p2284_p4 = scmp.ge.s32.totalorder %s2287_s30, 32  }
 0x44e   : > { %p4771_p9 = scmp.ne.s32.totalorder (%p2284_p4), %s6640_s25, 1 }
 0x44f   : > { %2286 = sbr.rel (!%p2284_p4) target bundleno = 957 (0x3bd), region = 209 }
 0x456   : > { %2531 = sbr.rel (%p4771_p9) target bundleno = 1693 (0x69d), region = 150 }
 0x45d   : > { %v2533_v14 = vld [vmem:[%s7965_s6 + $0x8] sm:$0xff]  ;;  %v7429_v62 = vld [vmem:[%s7965_s6] sm:$0xff]  ;;  %v7434_v9 = vld [vmem:[%s7965_s6 + $0x10] sm:$0xff]  ;;  %v6536_v10 = vmov 0   ;;  %s8038_s30 = sld [smem:[#allocation33_spill]] }
 0x45e   : > { %6375 = vset.pattern.permute.xlu1 %v6536_v10  ;;  %vm2537_vm2 = vcmp.gt.f32.partialorder %v2533_v14, 0.0  ;;  %v2541_v38 = vmax.f32 %v2533_v14, 1.0  ;;  %6374 = vset.pattern.permute.xlu0 %v6536_v10  ;;  %v2540_v11 = vmax.f32 %v7429_v62, 1.0  ;;  %v7442_v12 = vld [vmem:[%s7965_s6 + $0x18] sm:$0xff]  ;;  %v2542_v13 = vmax.f32 %v7434_v9, 1.0  ;;  %v3332_v15 = vld [vmem:[#allocation13 + $0x280] sm:$0xff] }
 0x45f   : > { %v2661_v60 = vsel %vm2537_vm2, 1, %v6536_v10  ;;  %v3333_v56 = vld [vmem:[#allocation13 + $0x288] sm:$0xff]  ;;  %v3334_v57 = vld [vmem:[#allocation13 + $0x290] sm:$0xff]  ;;  %v3335_v18 = vld [vmem:[#allocation13 + $0x298] sm:$0xff]  ;;  %v2543_v3 = vmax.f32 %v7442_v12, 1.0  ;;  %vm2538_vm3 = vcmp.gt.f32.partialorder %v7434_v9, 0.0 }
 0x460   : > { %6376 = vrcp.f32 %v2541_v38  ;;  %v3205_v35 = vadd.f32 1.0, %v2541_v38  ;;  %2668 = vperm.xlu1 %6375, %v2661_v60   ;;  %v3206_v42 = vadd.f32 1.0, %v2542_v13  ;;  %v5963_v4 = vpack.c.bf16 %v3333_v56, %v3332_v15  ;;  %v3336_v45 = vld [vmem:[#allocation13 + $0x2a0] sm:$0xff]  ;;  %v3337_v23 = vld [vmem:[#allocation13 + $0x2a8] sm:$0xff]  ;;  %v3338_v29 = vld [vmem:[#allocation13 + $0x2b0] sm:$0xff] }
 0x461   : > { %6378 = vrcp.f32 %v2540_v11  ;;  %v5967_v20 = vpack.c.bf16 %v3335_v18, %v3334_v57  ;;  %v3207_v59 = vadd.f32 1.0, %v2543_v3  ;;  %v3204_v22 = vadd.f32 1.0, %v2540_v11  ;;  %v7447_v46 = vld [vmem:[#allocation5] sm:$0xff]  ;;  %v3339_v26 = vld [vmem:[#allocation13 + $0x2b8] sm:$0xff]  ;;  %v3285_v30 = vld [vmem:[#allocation13 + $0x108] sm:$0xff] }
 0x462   : > { %6380 = vlog2.f32 %v3205_v35  ;;  %5964 = vmatprep.subr.bf16.mxu0 %v5963_v4  ;;  %5635 = vmatprep.mubr.f32.mxu0 %v7447_v46  ;;  %v5971_v28 = vpack.c.bf16 %v3337_v23, %v3336_v45  ;;  %v3284_v24 = vld [vmem:[#allocation13 + $0x100] sm:$0xff]  ;;  %v3269_v34 = vld [vmem:[#allocation13 + $0x88] sm:$0xff]  ;;  %vm2536_vm4 = vcmp.gt.f32.partialorder %v7429_v62, 0.0  ;;  %v5975_v37 = vpack.c.bf16 %v3339_v26, %v3338_v29  ;;  %v3286_v2 = vld [vmem:[#allocation13 + $0x110] sm:$0xff] }
 0x463   : > { %6382 = vrcp.f32 %v2542_v13  ;;  %5966 = vmatpush3.bf16.msra.mxu0 %v5963_v4  ;;  %v5899_v6 = vpack.c.bf16 %v3285_v30, %v3284_v24  ;;  %v3268_v48 = vld [vmem:[#allocation13 + $0x80] sm:$0xff]  ;;  %v3287_v17 = vld [vmem:[#allocation13 + $0x118] sm:$0xff]  ;;  %v3341_v41 = vld [vmem:[#allocation13 + $0x2c8] sm:$0xff]  ;;  %v2662_v27 = vsel %vm2538_vm3, 1, %v6536_v10  ;;  %v2660_v43 = vsel %vm2536_vm4, 1, %v6536_v10 }
 0x464   : > { %6384 = vlog2.f32 %v3206_v42  ;;  %5968 = vmatprep.subr.bf16.mxu0 %v5967_v20  ;;  %v3340_v51 = vld [vmem:[#allocation13 + $0x2c0] sm:$0xff]  ;;  %v5901_v7 = vpack.c.bf16 %v3269_v34, %v3268_v48  ;;  %v5903_v33 = vpack.c.bf16 %v3287_v17, %v3286_v2  ;;  %v3270_v1 = vld [vmem:[#allocation13 + $0x90] sm:$0xff]  ;;  %v3271_v32 = vld [vmem:[#allocation13 + $0x98] sm:$0xff]  ;;  %vm2539_vm5 = vcmp.gt.f32.partialorder %v7442_v12, 0.0 }
 0x465   : > { %6386 = vlog2.f32 %v3207_v59  ;;  %5900 = vmatprep.subr.bf16.mxu1 %v5899_v6  ;;  %v5905_v31 = vpack.c.bf16 %v3271_v32, %v3270_v1  ;;  %v3288_v0 = vld [vmem:[#allocation13 + $0x120] sm:$0xff]  ;;  %v3289_v39 = vld [vmem:[#allocation13 + $0x128] sm:$0xff]  ;;  %v5979_v36 = vpack.c.bf16 %v3341_v41, %v3340_v51  ;;  %v3342_v44 = vld [vmem:[#allocation13 + $0x2d0] sm:$0xff]  ;;  %v2663_v47 = vsel %vm2539_vm5, 1, %v6536_v10 }
 0x466   : > { %6388 = vlog2.f32 %v3204_v22  ;;  %5902 = vmatpush3.bf16.msra.mxu1 %v5901_v7  ;;  %v5907_v54 = vpack.c.bf16 %v3289_v39, %v3288_v0  ;;  %v3272_v52 = vld [vmem:[#allocation13 + $0xa0] sm:$0xff]  ;;  %v3273_v16 = vld [vmem:[#allocation13 + $0xa8] sm:$0xff]  ;;  %v3343_v25 = vld [vmem:[#allocation13 + $0x2d8] sm:$0xff] }
 0x467   : > { %5970 = vmatpush3.bf16.msra.mxu0 %v5967_v20  ;;  %6390 = vrcp.f32 %v2543_v3  ;;  %5904 = vmatprep.subr.bf16.mxu1 %v5903_v33  ;;  %v3290_v55 = vld [vmem:[#allocation13 + $0x130] sm:$0xff]  ;;  %v3291_v19 = vld [vmem:[#allocation13 + $0x138] sm:$0xff]  ;;  %v5909_v61 = vpack.c.bf16 %v3273_v16, %v3272_v52  ;;  %v5983_v11 = vpack.c.bf16 %v3343_v25, %v3342_v44  ;;  %v3292_v60 = vld [vmem:[#allocation13 + $0x140] sm:$0xff] }
 0x468   : > { %5972 = vmatprep.subr.bf16.mxu0 %v5971_v28  ;;  %v5911_v14 = vpack.c.bf16 %v3291_v19, %v3290_v55  ;;  %v3274_v62 = vld [vmem:[#allocation13 + $0xb0] sm:$0xff]  ;;  %v3275_v9 = vld [vmem:[#allocation13 + $0xb8] sm:$0xff]  ;;  %v3293_v13 = vld [vmem:[#allocation13 + $0x148] sm:$0xff] }
 0x469   : > { %v3344_v12 = vld [vmem:[#allocation13 + $0x2e0] sm:$0xff]  ;;  %v3345_v10 = vld [vmem:[#allocation13 + $0x2e8] sm:$0xff]  ;;  %v5913_v57 = vpack.c.bf16 %v3275_v9, %v3274_v62  ;;  %v5915_v18 = vpack.c.bf16 %v3293_v13, %v3292_v60  ;;  %v3294_v20 = vld [vmem:[#allocation13 + $0x150] sm:$0xff] }
 0x46a   : > { %v6377_v50 = vpop.eup %6376  ;;  %5906 = vmatpush3.bf16.msra.mxu1 %v5905_v31  ;;  %v3276_v42 = vld [vmem:[#allocation13 + $0xc0] sm:$0xff]  ;;  %v3277_v3 = vld [vmem:[#allocation13 + $0xc8] sm:$0xff]  ;;  %v5987_v4 = vpack.c.bf16 %v3345_v10, %v3344_v12  ;;  %v3295_v59 = vld [vmem:[#allocation13 + $0x158] sm:$0xff] }
 0x46b   : > { %v6379_v40 = vpop.eup %6378  ;;  %2559 = vperm.xlu1 %6375, %v6377_v50   ;;  %5974 = vmatpush3.bf16.msra.mxu0 %v5971_v28  ;;  %v3346_v45 = vld [vmem:[#allocation13 + $0x2f0] sm:$0xff]  ;;  %v3347_v23 = vld [vmem:[#allocation13 + $0x2f8] sm:$0xff]  ;;  %v5917_v29 = vpack.c.bf16 %v3277_v3, %v3276_v42  ;;  %v5919_v24 = vpack.c.bf16 %v3295_v59, %v3294_v20  ;;  %v3252_v50 = vld [vmem:[#allocation13] sm:$0xff] }
 0x46c   : > { %v6381_v53 = vpop.eup %6380  ;;  %2554 = vperm.xlu0 %6374, %v6379_v40   ;;  %5976 = vmatprep.subr.bf16.mxu0 %v5975_v37  ;;  %v3278_v30 = vld [vmem:[#allocation13 + $0xd0] sm:$0xff]  ;;  %v3279_v6 = vld [vmem:[#allocation13 + $0xd8] sm:$0xff]  ;;  %v5991_v48 = vpack.c.bf16 %v3347_v23, %v3346_v45  ;;  %v3296_v2 = vld [vmem:[#allocation13 + $0x160] sm:$0xff] }
 0x46d   : > { %v3211_v49 = vmul.f32 0.6931472, %v6381_v53  ;;  %v6383_v21 = vpop.eup %6382  ;;  %5908 = vmatprep.subr.bf16.mxu1 %v5907_v54  ;;  %v5921_v7 = vpack.c.bf16 %v3279_v6, %v3278_v30  ;;  %v3297_v17 = vld [vmem:[#allocation13 + $0x168] sm:$0xff]  ;;  %v3254_v1 = vld [vmem:[#allocation13 + $0x10] sm:$0xff]  ;;  %v3255_v53 = vld [vmem:[#allocation13 + $0x18] sm:$0xff] }
 0x46e   : > { %v6385_v58 = vpop.eup %6384  ;;  %5910 = vmatpush3.bf16.msra.mxu1 %v5909_v61  ;;  %v3280_v31 = vld [vmem:[#allocation13 + $0xe0] sm:$0xff]  ;;  %v3281_v0 = vld [vmem:[#allocation13 + $0xe8] sm:$0xff]  ;;  %v5999_v16 = vpack.c.bf16 %v3255_v53, %v3254_v1  ;;  %v3282_v55 = vld [vmem:[#allocation13 + $0xf0] sm:$0xff] }
 0x46f   : > { %2671 = vperm.xlu1 %6375, %v2662_v27   ;;  %6392 = vrcp.f32 %v3211_v49  ;;  %v6387_v63 = vpop.eup %6386  ;;  %5978 = vmatpush3.bf16.msra.mxu0 %v5975_v37  ;;  %v3217_v15 = vmul.f32 0.3559506, %v3211_v49  ;;  %v3213_v56 = vmul.f32 0.6931472, %v6385_v58  ;;  %v3253_v37 = vld [vmem:[#allocation13 + $0x8] sm:$0xff]  ;;  %v5923_v27 = vpack.c.bf16 %v3297_v17, %v3296_v2  ;;  %v3299_v49 = vld [vmem:[#allocation13 + $0x178] sm:$0xff] }
 0x470   : > { %2665 = vperm.xlu0 %6374, %v2660_v43   ;;  %v6389_v5 = vpop.eup %6388  ;;  %v3215_v8 = vmul.f32 0.6931472, %v6387_v63  ;;  %5980 = vmatprep.subr.bf16.mxu0 %v5979_v36  ;;  %v5995_v33 = vpack.c.bf16 %v3253_v37, %v3252_v50  ;;  %v3298_v43 = vld [vmem:[#allocation13 + $0x170] sm:$0xff]  ;;  %v7462_v52 = vld [vmem:[#allocation5 + $0x8] sm:$0xff]  ;;  %v5925_v44 = vpack.c.bf16 %v3281_v0, %v3280_v31  ;;  %v3283_v19 = vld [vmem:[#allocation13 + $0xf8] sm:$0xff] }
 0x471   : > { %v3209_v38 = vmul.f32 0.6931472, %v6389_v5  ;;  %v6391_v35 = vpop.eup %6390  ;;  %5912 = vmatprep.subr.bf16.mxu1 %v5911_v14  ;;  %v3218_v51 = vmul.f32 0.3559506, %v3213_v56  ;;  %v3257_v58 = vld [vmem:[#allocation13 + $0x28] sm:$0xff]  ;;  %v5927_v25 = vpack.c.bf16 %v3299_v49, %v3298_v43  ;;  %v3248_v5 = vld [vmem:[%s7960_s1] sm:$0xff] }
 0x472   : > { %6394 = vrcp.f32 %v3215_v8  ;;  %v3219_v22 = vmul.f32 0.3559506, %v3215_v8  ;;  %5914 = vmatpush3.bf16.msra.mxu1 %v5913_v57  ;;  %v5929_v8 = vpack.c.bf16 %v3283_v19, %v3282_v55  ;;  %v3258_v14 = vld [vmem:[#allocation13 + $0x30] sm:$0xff]  ;;  %v3259_v62 = vld [vmem:[#allocation13 + $0x38] sm:$0xff]  ;;  %v3316_v60 = vld [vmem:[#allocation13 + $0x200] sm:$0xff] }
 0x473   : > { %2674 = vperm.xlu1 %6375, %v2663_v47   ;;  %6396 = vrcp.f32 %v3209_v38  ;;  %5982 = vmatpush3.bf16.msra.mxu0 %v5979_v36  ;;  %v3216_v28 = vmul.f32 0.3559506, %v3209_v38  ;;  %v7464_v36 = vld [vmem:[#allocation5 + $0x10] sm:$0xff]  ;;  %v7468_v47 = vld [vmem:[#allocation5 + $0x18] sm:$0xff]  ;;  %v6007_v9 = vpack.c.bf16 %v3259_v62, %v3258_v14  ;;  %v3260_v38 = vld [vmem:[#allocation13 + $0x40] sm:$0xff] }
 0x474   : > { %2564 = vperm.xlu0 %6374, %v6383_v21   ;;  %5984 = vmatprep.subr.bf16.mxu0 %v5983_v11  ;;  %6398 = vrcp.f32 %v3213_v56  ;;  %v3256_v21 = vld [vmem:[#allocation13 + $0x20] sm:$0xff]  ;;  %v3317_v13 = vld [vmem:[#allocation13 + $0x208] sm:$0xff]  ;;  %v3262_v12 = vld [vmem:[#allocation13 + $0x50] sm:$0xff] }
 0x475   : > { %5916 = vmatprep.subr.bf16.mxu1 %v5915_v18  ;;  %v6003_v61 = vpack.c.bf16 %v3257_v58, %v3256_v21  ;;  %v5931_v56 = vpack.c.bf16 %v3317_v13, %v3316_v60  ;;  %v3263_v10 = vld [vmem:[#allocation13 + $0x58] sm:$0xff]  ;;  %v3265_v18 = vld [vmem:[#allocation13 + $0x68] sm:$0xff]  ;;  %v3266_v3 = vld [vmem:[#allocation13 + $0x70] sm:$0xff]  ;;  %v2719_v21 = vlaneseq }
 0x476   : > { %5918 = vmatpush3.bf16.msra.mxu1 %v5917_v29  ;;  %v6015_v57 = vpack.c.bf16 %v3263_v10, %v3262_v12  ;;  %v3792_v59 = vld [vmem:[#allocation13 + $0x500] sm:$0xff]  ;;  %v3794_v23 = vld [vmem:[#allocation13 + $0x510] sm:$0xff]  ;;  %v3249_v29 = vld [vmem:[%s7960_s1 + $0x8] sm:$0xff] }
 0x477   : > { %3695 = vperm.xlu1 %6375, %v3217_v15   ;;  %5986 = vmatpush3.bf16.msra.mxu0 %v5983_v11  ;;  %v3261_v11 = vld [vmem:[#allocation13 + $0x48] sm:$0xff]  ;;  %v3796_v30 = vld [vmem:[#allocation13 + $0x520] sm:$0xff]  ;;  %v3798_v50 = vld [vmem:[#allocation13 + $0x530] sm:$0xff]  ;;  %v2720_v58 = vshrl.u32 %v2719_v21, 7 }
 0x478   : > { %2569 = vperm.xlu0 %6374, %v6391_v35   ;;  %5988 = vmatprep.subr.bf16.mxu0 %v5987_v4  ;;  %v6011_v15 = vpack.c.bf16 %v3261_v11, %v3260_v38  ;;  %v3264_v35 = vld [vmem:[#allocation13 + $0x60] sm:$0xff]  ;;  %v3797_v6 = vld [vmem:[#allocation13 + $0x528] sm:$0xff]  ;;  %v3799_v37 = vld [vmem:[#allocation13 + $0x538] sm:$0xff] }
 0x479   : > { %v6393_v26 = vpop.eup %6392  ;;  %5920 = vmatprep.subr.bf16.mxu1 %v5919_v24  ;;  %v6019_v42 = vpack.c.bf16 %v3265_v18, %v3264_v35  ;;  %v3250_v24 = vld [vmem:[%s7960_s1 + $0x10] sm:$0xff]  ;;  %v3801_v2 = vld [vmem:[#allocation13 + $0x548] sm:$0xff]  ;;  %v3804_v1 = vld [vmem:[#allocation13 + $0x560] sm:$0xff] }
 0x47a   : > { %v3225_v34 = vmul.f32 2.8093786, %v6393_v26  ;;  %5922 = vmatpush3.bf16.msra.mxu1 %v5921_v7  ;;  %v3800_v7 = vld [vmem:[#allocation13 + $0x540] sm:$0xff]  ;;  %v3807_v31 = vld [vmem:[#allocation13 + $0x578] sm:$0xff]  ;;  %v4156_v43 = vld [vmem:[#allocation13 + $0x708] sm:$0xff] }
 0x47b   : > { %3705 = vperm.xlu1 %6375, %v3219_v22   ;;  %5990 = vmatpush3.bf16.msra.mxu0 %v5987_v4  ;;  %v3267_v4 = vld [vmem:[#allocation13 + $0x78] sm:$0xff]  ;;  %v3793_v22 = vld [vmem:[#allocation13 + $0x508] sm:$0xff]  ;;  %v6107_v17 = vpack.c.bf16 %v3801_v2, %v3800_v7  ;;  %v2629_v55 = vld [vmem:[#allocation7 + $0x1] sm:$0x1] }
 0x47c   : > { %3690 = vperm.xlu0 %6374, %v3216_v28   ;;  %v6395_v40 = vpop.eup %6394  ;;  %5992 = vmatprep.subr.bf16.mxu0 %v5991_v48  ;;  %v6023_v20 = vpack.c.bf16 %v3267_v4, %v3266_v3  ;;  %v6091_v45 = vpack.c.bf16 %v3793_v22, %v3792_v59  ;;  %v3795_v28 = vld [vmem:[#allocation13 + $0x518] sm:$0xff]  ;;  %v2636_v19 = vld [vmem:[#allocation7 + $0x8] sm:$0x1]  ;;  %v2641_v14 = vld [vmem:[#allocation7 + $0xd] sm:$0x1] }
 0x47d   : > { %v6397_v41 = vpop.eup %6396  ;;  %v3227_v32 = vmul.f32 2.8093786, %v6395_v40  ;;  %5924 = vmatprep.subr.bf16.mxu1 %v5923_v27  ;;  %v6095_v26 = vpack.c.bf16 %v3795_v28, %v3794_v23  ;;  %v3802_v40 = vld [vmem:[#allocation13 + $0x550] sm:$0xff]  ;;  %v2642_v62 = vld [vmem:[#allocation7 + $0xe] sm:$0x1] }
 0x47e   : > { %v3224_v39 = vmul.f32 2.8093786, %v6397_v41  ;;  %v6399_v54 = vpop.eup %6398  ;;  %5926 = vmatpush3.bf16.msra.mxu1 %v5925_v44  ;;  %v3803_v41 = vld [vmem:[#allocation13 + $0x558] sm:$0xff]  ;;  %v3806_v27 = vld [vmem:[#allocation13 + $0x570] sm:$0xff]  ;;  %v2631_v38 = vld [vmem:[#allocation7 + $0x3] sm:$0x1] }
 0x47f   : > { %4074 = vperm.xlu1 %6375, %v3225_v34   ;;  %5994 = vmatpush3.bf16.msra.mxu0 %v5991_v48  ;;  %v3226_v63 = vmul.f32 2.8093786, %v6399_v54  ;;  %v3251_v48 = vld [vmem:[%s7960_s1 + $0x18] sm:$0xff]  ;;  %v6099_v34 = vpack.c.bf16 %v3797_v6, %v3796_v30  ;;  %v6119_v0 = vpack.c.bf16 %v3807_v31, %v3806_v27  ;;  %v6537_v54 = vmov 1966171168  }
 0x480   : > { %3700 = vperm.xlu0 %6374, %v3218_v51   ;;  %5996 = vmatprep.subr.bf16.mxu0 %v5995_v33  ;;  %v6103_v51 = vpack.c.bf16 %v3799_v37, %v3798_v50  ;;  %v2632_v11 = vld [vmem:[#allocation7 + $0x4] sm:$0x1]  ;;  %v2633_v60 = vld [vmem:[#allocation7 + $0x5] sm:$0x1]  ;;  %v2634_v13 = vld [vmem:[#allocation7 + $0x6] sm:$0x1] }
 0x481   : > { %5928 = vmatprep.subr.bf16.mxu1 %v5927_v25  ;;  %v2628_v25 = vld [vmem:[#allocation7] sm:$0x1]  ;;  %v2644_v12 = vld [vmem:[#allocation7 + $0x10] sm:$0x1]  ;;  %v2645_v10 = vld [vmem:[#allocation7 + $0x11] sm:$0x1] }
 0x482   : > { %5636 = vmatmul.mubr.f32.vlgmr.msra.gmra.mrb[0].mxu0 %v7462_v52  ;;  %5930 = vmatpush3.bf16.msra.mxu1 %v5929_v8  ;;  %v2640_v8 = vld [vmem:[#allocation7 + $0xc] sm:$0x1]  ;;  %v2646_v35 = vld [vmem:[#allocation7 + $0x12] sm:$0x1]  ;;  %v2647_v18 = vld [vmem:[#allocation7 + $0x13] sm:$0x1]  ;;  %v2712_v59 = vcombine.low %v2628_v25, %v2629_v55  ;;  %v2810_v30 = vcombine.low %v2644_v12, %v2645_v10 }
 0x483   : > { %4084 = vperm.xlu1 %6375, %v3227_v32   ;;  %5998 = vmatpush3.bf16.msra.mxu0 %v5995_v33  ;;  %v6111_v33 = vpack.c.bf16 %v3803_v41, %v3802_v40  ;;  %v3805_v32 = vld [vmem:[#allocation13 + $0x568] sm:$0xff]  ;;  %v2649_v3 = vld [vmem:[#allocation7 + $0x15] sm:$0x1]  ;;  %v2650_v4 = vld [vmem:[#allocation7 + $0x16] sm:$0x1]  ;;  %v2811_v6 = vcombine.low %v2646_v35, %v2647_v18 }
 0x484   : > { %4069 = vperm.xlu0 %6374, %v3224_v39   ;;  %5638 = vmatprep.mubr.f32.mxu0 %v7464_v36  ;;  %v6115_v53 = vpack.c.bf16 %v3805_v32, %v3804_v1  ;;  %v4155_v39 = vld [vmem:[#allocation13 + $0x700] sm:$0xff]  ;;  %v2653_v1 = vld [vmem:[#allocation7 + $0x19] sm:$0x1]  ;;  %v2654_v32 = vld [vmem:[#allocation7 + $0x1a] sm:$0x1] }
 0x485   : > { %6000 = vmatprep.subr.bf16.mxu0 %v5999_v16  ;;  %5932 = vmatprep.subr.bf16.mxu1 %v5931_v56  ;;  %v6155_v49 = vpack.c.bf16 %v4156_v43, %v4155_v39  ;;  %v2643_v56 = vld [vmem:[#allocation7 + $0xf] sm:$0x1]  ;;  %v2656_v27 = vld [vmem:[#allocation7 + $0x1c] sm:$0x1]  ;;  %v2657_v43 = vld [vmem:[#allocation7 + $0x1d] sm:$0x1] }
 0x486   : > { %5639 = vmatmul.mubr.f32.gmra.mrb[2].mxu0 %v7468_v47  ;;  %v2930_v35 = vld [vmem:[#allocation8 + $0xe] sm:$0x1]  ;;  %v2931_v18 = vld [vmem:[#allocation8 + $0xf] sm:$0x1] }
 0x487   : > { %6002 = vmatpush3.bf16.msra.mxu0 %v5999_v16  ;;  %5673 = vmatprep.mubr.f32.mxu0 %v3248_v5  ;;  %v2717_v16 = vunpack.c.l.s4 %v6537_v54  ;;  %v2639_v5 = vld [vmem:[#allocation7 + $0xb] sm:$0x1]  ;;  %v2659_v54 = vld [vmem:[#allocation7 + $0x1f] sm:$0x1] }
 0x488   : > { %4079 = vperm.xlu0 %6374, %v3226_v63   ;;  %6004 = vmatprep.subr.bf16.mxu0 %v6003_v61  ;;  %v2637_v63 = vld [vmem:[#allocation7 + $0x9] sm:$0x1] }
 0x489   : > { %v2718_v44 = vunpack.c.0.s8 %v2717_v16  ;;  %v2761_v28 = vcombine.low %v2636_v19, %v2637_v63 }
 0x48b   : > { %6006 = vmatpush3.bf16.msra.mxu0 %v6003_v61  ;;  %v2638_v61 = vld [vmem:[#allocation7 + $0xa] sm:$0x1] }
 0x48c   : > { %6008 = vmatprep.subr.bf16.mxu0 %v6007_v9 }
 0x48f   : > { %6010 = vmatpush3.bf16.msra.mxu0 %v6007_v9  ;;  %v2630_v9 = vld [vmem:[#allocation7 + $0x2] sm:$0x1] }
 0x490   : > { %6012 = vmatprep.subr.bf16.mxu0 %v6011_v15  ;;  %v2713_v22 = vcombine.low %v2630_v9, %v2631_v38  ;;  %v2927_v9 = vld [vmem:[#allocation8 + $0xb] sm:$0x1]  ;;  %v2928_v38 = vld [vmem:[#allocation8 + $0xc] sm:$0x1] }
 0x493   : > { %6014 = vmatpush3.bf16.msra.mxu0 %v6011_v15  ;;  %v2635_v15 = vld [vmem:[#allocation7 + $0x7] sm:$0x1] }
 0x494   : > { %6016 = vmatprep.subr.bf16.mxu0 %v6015_v57  ;;  %v2715_v23 = vcombine.low %v2634_v13, %v2635_v15 }
 0x497   : > { %6018 = vmatpush3.bf16.msra.mxu0 %v6015_v57  ;;  %v7483_v57 = vsub.s32 %v2718_v44, %v2720_v58 }
 0x498   : > { %6020 = vmatprep.subr.bf16.mxu0 %v6019_v42 }
 0x499   : > { %v2722_v50 = vrot.slane %v2712_v59, %v7483_v57  ;;  %v2729_v37 = vrot.slane %v2713_v22, %v7483_v57  ;;  %v2743_v7 = vrot.slane %v2715_v23, %v7483_v57  ;;  %v2771_v2 = vrot.slane %v2761_v28, %v7483_v57  ;;  %v2576_v59 = vld [vmem:[#allocation6] sm:$0xff] }
 0x49a   : > { %v2827_v39 = vrot.slane %v2811_v6, %v7483_v57  ;;  %v3300_v6 = vld [vmem:[#allocation13 + $0x180] sm:$0xff] }
 0x49b   : > { %6022 = vmatpush3.bf16.msra.mxu0 %v6019_v42  ;;  %v2648_v42 = vld [vmem:[#allocation7 + $0x14] sm:$0x1]  ;;  %v2744_v44 = vcombine.low %v2722_v50, %v2729_v37 }
 0x49c   : > { %6024 = vmatprep.subr.bf16.mxu0 %v6023_v20 }
 0x49d   : > { %v2752_v15 = vrot.slane %v2744_v44, %v7483_v57 }
 0x49f   : > { %6026 = vmatpush3.bf16.msra.mxu0 %v6023_v20  ;;  %v2651_v20 = vld [vmem:[#allocation7 + $0x17] sm:$0x1] }
 0x4a0   : > { %6092 = vmatprep.subr.bf16.mxu0 %v6091_v45 }
 0x4a2   : > { %5674 = vmatmul.mubr.f32.vlgmr.msra.gmra.mrb[0].mxu0 %v3249_v29  ;;  %v2762_v29 = vcombine.low %v2638_v61, %v2639_v5  ;;  %v2861_v61 = vcombine.low %v2656_v27, %v2657_v43 }
 0x4a3   : > { %6094 = vmatpush3.bf16.msra.mxu0 %v6091_v45  ;;  %5676 = vmatprep.mubr.f32.mxu0 %v3250_v24  ;;  %v2714_v45 = vcombine.low %v2632_v11, %v2633_v60  ;;  %v2764_v24 = vcombine.low %v2642_v62, %v2643_v56  ;;  %v2926_v62 = vld [vmem:[#allocation8 + $0xa] sm:$0x1]  ;;  %v2929_v11 = vld [vmem:[#allocation8 + $0xd] sm:$0x1] }
 0x4a4   : > { %6096 = vmatprep.subr.bf16.mxu0 %v6095_v26  ;;  %v2883_v23 = vrot.slane %v2861_v61, %v7483_v57  ;;  %v3321_v61 = vld [vmem:[#allocation13 + $0x228] sm:$0xff] }
 0x4a5   : > { %v2792_v41 = vrot.slane %v2764_v24, %v7483_v57  ;;  %v3031_v24 = vcombine.low %v2928_v38, %v2929_v11  ;;  %v7557_v11 = vld [vmem:[#allocation8] sm:$0x1] }
 0x4a6   : > { %5677 = vmatmul.mubr.f32.gmra.mrb[2].mxu0 %v3251_v48  ;;  %v2812_v48 = vcombine.low %v2648_v42, %v2649_v3 }
 0x4a7   : > { %6098 = vmatpush3.bf16.msra.mxu0 %v6095_v26  ;;  %v2763_v26 = vcombine.low %v2640_v8, %v2641_v14  ;;  %v2924_v8 = vld [vmem:[#allocation8 + $0x8] sm:$0x1]  ;;  %v2925_v14 = vld [vmem:[#allocation8 + $0x9] sm:$0x1] }
 0x4a8   : > { %6100 = vmatprep.subr.bf16.mxu0 %v6099_v34  ;;  %v2834_v16 = vrot.slane %v2812_v48, %v7483_v57  ;;  %v3301_v48 = vld [vmem:[#allocation13 + $0x188] sm:$0xff] }
 0x4a9   : > { %v2785_v40 = vrot.slane %v2763_v26, %v7483_v57  ;;  %v3030_v26 = vcombine.low %v2926_v62, %v2927_v9  ;;  %v5933_v27 = vpack.c.bf16 %v3301_v48, %v3300_v6  ;;  %v7550_v62 = vld [vmem:[#allocation8 + $0x12] sm:$0x1]  ;;  %v7552_v9 = vld [vmem:[#allocation8 + $0x13] sm:$0x1]  ;;  %v2919_v48 = vld [vmem:[#allocation8 + $0x3] sm:$0x1] }
 0x4aa   : > { %v3329_v6 = vld [vmem:[#allocation13 + $0x268] sm:$0xff] }
 0x4ab   : > { %6102 = vmatpush3.bf16.msra.mxu0 %v6099_v34  ;;  %v2813_v34 = vcombine.low %v2650_v4, %v2651_v20  ;;  %v2794_v55 = vcombine.low %v2785_v40, %v2792_v41  ;;  %v2577_v4 = vld [vmem:[#allocation6 + $0x8] sm:$0xff] }
 0x4ac   : > { %6104 = vmatprep.subr.bf16.mxu0 %v6103_v51 }
 0x4ad   : > { %v2841_v21 = vrot.slane %v2813_v34, %v7483_v57  ;;  %v2808_v10 = vrot.slane %v2794_v55, %v7483_v57  ;;  %v3032_v34 = vcombine.low %v2930_v35, %v2931_v18  ;;  %v7568_v18 = vld [vmem:[#allocation8 + $0x14] sm:$0x1] }
 0x4af   : > { %6106 = vmatpush3.bf16.msra.mxu0 %v6103_v51  ;;  %v2736_v51 = vrot.slane %v2714_v45, %v7483_v57  ;;  %v2843_v13 = vcombine.low %v2834_v16, %v2841_v21  ;;  %v3302_v16 = vld [vmem:[#allocation13 + $0x190] sm:$0xff]  ;;  %v3303_v21 = vld [vmem:[#allocation13 + $0x198] sm:$0xff]  ;;  %v7541_v55 = vrot.slane %v3032_v34, %v7483_v57 }
 0x4b0   : > { %6108 = vmatprep.subr.bf16.mxu0 %v6107_v17  ;;  %v3322_v34 = vld [vmem:[#allocation13 + $0x230] sm:$0xff] }
 0x4b1   : > { %v2745_v58 = vcombine.low %v2736_v51, %v2743_v7  ;;  %v2857_v37 = vrot.slane %v2843_v13, %v7483_v57  ;;  %v3318_v7 = vld [vmem:[#allocation13 + $0x210] sm:$0xff] }
 0x4b3   : > { %6110 = vmatpush3.bf16.msra.mxu0 %v6107_v17  ;;  %v2778_v17 = vrot.slane %v2762_v29, %v7483_v57  ;;  %v2759_v56 = vrot.slane %v2745_v58, %v7483_v57  ;;  %v3029_v29 = vcombine.low %v2924_v8, %v2925_v14  ;;  %v7535_v58 = vrot.slane %v3030_v26, %v7483_v57 }
 0x4b4   : > { %6112 = vmatprep.subr.bf16.mxu0 %v6111_v33 }
 0x4b5   : > { %v2793_v25 = vcombine.low %v2771_v2, %v2778_v17  ;;  %v7515_v51 = vcombine.low %v2752_v15, %v2759_v56  ;;  %v3319_v2 = vld [vmem:[#allocation13 + $0x218] sm:$0xff]  ;;  %v7532_v44 = vrot.slane %v3029_v29, %v7483_v57  ;;  %v2578_v56 = vld [vmem:[#allocation6 + $0x10] sm:$0xff] }
 0x4b6   : > { %v3326_v29 = vld [vmem:[#allocation13 + $0x250] sm:$0xff] }
 0x4b7   : > { %6114 = vmatpush3.bf16.msra.mxu0 %v6111_v33  ;;  %v2652_v33 = vld [vmem:[#allocation7 + $0x18] sm:$0x1]  ;;  %v2801_v12 = vrot.slane %v2793_v25, %v7483_v57  ;;  %v7538_v25 = vrot.slane %v3031_v24, %v7483_v57  ;;  %v7718_v24 = vld [vmem:[#allocation8 + $0x1c] sm:$0x1] }
 0x4b8   : > { %6116 = vmatprep.subr.bf16.mxu0 %v6115_v53  ;;  %v2859_v19 = vcombine.low %v2652_v33, %v2653_v1 }
 0x4ba   : > { %v2869_v3 = vrot.slane %v2859_v19, %v7483_v57  ;;  %v7543_v19 = vld [vmem:[#allocation8 + $0x11] sm:$0x1] }
 0x4bb   : > { %6118 = vmatpush3.bf16.msra.mxu0 %v6115_v53  ;;  %v2655_v53 = vld [vmem:[#allocation7 + $0x1b] sm:$0x1] }
 0x4bc   : > { %6120 = vmatprep.subr.bf16.mxu0 %v6119_v0  ;;  %v2860_v63 = vcombine.low %v2654_v32, %v2655_v53  ;;  %v7523_v32 = vcombine.low %v2801_v12, %v2808_v10  ;;  %v5937_v10 = vpack.c.bf16 %v3303_v21, %v3302_v16  ;;  %v2923_v16 = vld [vmem:[#allocation8 + $0x7] sm:$0x1] }
 0x4be   : > { %v2876_v45 = vrot.slane %v2860_v63, %v7483_v57  ;;  %v3320_v63 = vld [vmem:[#allocation13 + $0x220] sm:$0xff] }
 0x4bf   : > { %6122 = vmatpush3.bf16.msra.mxu0 %v6119_v0  ;;  %v2820_v0 = vrot.slane %v2810_v30, %v7483_v57 }
 0x4c0   : > { %6156 = vmatprep.subr.bf16.mxu0 %v6155_v49  ;;  %v2658_v49 = vld [vmem:[#allocation7 + $0x1e] sm:$0x1] }
 0x4c1   : > { %v2862_v5 = vcombine.low %v2658_v49, %v2659_v54  ;;  %v2842_v60 = vcombine.low %v2820_v0, %v2827_v39  ;;  %v2891_v0 = vcombine.low %v2869_v3, %v2876_v45  ;;  %v7528_v49 = vld [vmem:[#allocation8 + $0x10] sm:$0x1]  ;;  %v5935_v54 = vpack.c.bf16 %v3319_v2, %v3318_v7  ;;  %v7572_v3 = vld [vmem:[#allocation8 + $0x16] sm:$0x1]  ;;  %v2920_v7 = vld [vmem:[#allocation8 + $0x4] sm:$0x1] }
 0x4c2   : > { %v5939_v45 = vpack.c.bf16 %v3321_v61, %v3320_v63  ;;  %v2921_v2 = vld [vmem:[#allocation8 + $0x5] sm:$0x1] }
 0x4c3   : > { %v2890_v28 = vrot.slane %v2862_v5, %v7483_v57  ;;  %v2850_v50 = vrot.slane %v2842_v60, %v7483_v57  ;;  %v7559_v60 = vld [vmem:[#allocation8 + $0x1] sm:$0x1]  ;;  %v2899_v13 = vrot.slane %v2891_v0, %v7483_v57 }
 0x4c5   : > { %v2892_v39 = vcombine.low %v2883_v23, %v2890_v28  ;;  %v7548_v14 = vcombine.low %v2850_v50, %v2857_v37  ;;  %v3304_v23 = vld [vmem:[#allocation13 + $0x1a0] sm:$0xff]  ;;  %v3305_v28 = vld [vmem:[#allocation13 + $0x1a8] sm:$0xff]  ;;  %v3323_v50 = vld [vmem:[#allocation13 + $0x238] sm:$0xff] }
 0x4c6   : > { %v5943_v61 = vpack.c.bf16 %v3323_v50, %v3322_v34  ;;  %v4139_v50 = vld [vmem:[#allocation13 + $0x680] sm:$0xff] }
 0x4c7   : > { %v2906_v15 = vrot.slane %v2892_v39, %v7483_v57  ;;  %v2579_v39 = vld [vmem:[#allocation6 + $0x18] sm:$0xff] }
 0x4c9   : > { %v7598_v0 = vcombine.low %v2899_v13, %v2906_v15  ;;  %v2982_v15 = vcombine.low %v2920_v7, %v2921_v2  ;;  %v4158_v7 = vld [vmem:[#allocation13 + $0x718] sm:$0xff] }
 0x4df   : > { %v7493_v31 = vpop.permute.xlu1 %2668 }
 0x4e0   : > { %vm2677_vm6 = vcmp.eq.s32.totalorder %v7493_v31, 1 }
 0x4e1   : > { %v7630_v2 = vsel %vm2677_vm6, %v7523_v32, 0.0 }
 0x4ea   : > { %v2560_v42 = vpop.permute.xlu1 %2559 }
 0x4eb   : > { %v7505_v20 = vmul.f32 %v2560_v42, %v7462_v52  ;;  %v2555_v22 = vpop.permute.xlu0 %2554  ;;  %v2581_v17 = vmul.f32 %v2577_v4, %v2560_v42  ;;  %v7570_v42 = vld [vmem:[#allocation8 + $0x15] sm:$0x1]  ;;  %v7574_v4 = vld [vmem:[#allocation8 + $0x17] sm:$0x1] }
 0x4ec   : > { %v7511_v30 = vmul.f32 %v2555_v22, %v7447_v46  ;;  %v2580_v41 = vmul.f32 %v2576_v59, %v2555_v22  ;;  %v7577_v59 = vld [vmem:[#allocation8 + $0x2] sm:$0x1] }
 0x4ed   : > { %v2585_v40 = vmul.f32 %v7505_v20, %v7505_v20  ;;  %v2981_v13 = vcombine.low %v7577_v59, %v2919_v48 }
 0x4ee   : > { %v2584_v33 = vmul.f32 %v7511_v30, %v7511_v30  ;;  %v7521_v1 = vpop.permute.xlu1 %2671 }
 0x4ef   : > { %v7525_v53 = vpop.permute.xlu0 %2665  ;;  %v2589_v5 = vsub.f32 %v2581_v17, %v2585_v40  ;;  %vm2678_vm8 = vcmp.eq.s32.totalorder %v7521_v1, 1 }
 0x4f0   : > { %v2588_v43 = vsub.f32 %v2580_v41, %v2584_v33  ;;  %vm2676_vm7 = vcmp.eq.s32.totalorder %v7525_v53, 1  ;;  %v2922_v33 = vld [vmem:[#allocation8 + $0x6] sm:$0x1] }
 0x4f1   : > { %4780 = vmatprep.mubr.msk.f32.mxu1 %vm2676_vm7, %v7515_v51  ;;  %v2593_v37 = vmax.f32 %v2589_v5, 0.0  ;;  %v3306_v5 = vld [vmem:[#allocation13 + $0x1b0] sm:$0xff] }
 0x4f2   : > { %v2592_v8 = vmax.f32 %v2588_v43, 0.0  ;;  %3413 = vmatmul.mubr.f32.vlgmr.msra.gmra.mrb[0].mxu1 %v7511_v30  ;;  %v7555_v38 = vpop.permute.xlu1 %2674 }
 0x4f3   : > { %5934 = vmatpush3.bf16.msra.mxu1 %v5933_v27  ;;  %v2565_v12 = vpop.permute.xlu0 %2564  ;;  %4781 = vmatprep.mubr.msk.f32.mxu1 %vm2677_vm6, %v7523_v32  ;;  %v2980_v27 = vcombine.low %v7557_v11, %v7559_v60  ;;  %vm2679_vm9 = vcmp.eq.s32.totalorder %v7555_v38, 1  ;;  %v4141_v32 = vld [vmem:[#allocation13 + $0x690] sm:$0xff]  ;;  %v3327_v60 = vld [vmem:[#allocation13 + $0x258] sm:$0xff] }
 0x4f4   : > { %v7566_v35 = vadd.f32 1e-05, %v2592_v8  ;;  %v7580_v22 = vmul.f32 %v2565_v12, %v7464_v36  ;;  %5936 = vmatprep.subr.bf16.mxu1 %v5935_v54  ;;  %v2582_v17 = vmul.f32 %v2578_v56, %v2565_v12  ;;  %v5941_v54 = vpack.c.bf16 %v3305_v28, %v3304_v23  ;;  %v3307_v8 = vld [vmem:[#allocation13 + $0x1b8] sm:$0xff]  ;;  %v3324_v56 = vld [vmem:[#allocation13 + $0x240] sm:$0xff]  ;;  %v3325_v12 = vld [vmem:[#allocation13 + $0x248] sm:$0xff] }
 0x4f5   : > { %v7620_v26 = vrot.slane %v2980_v27, %v7483_v57  ;;  %v5945_v48 = vpack.c.bf16 %v3307_v8, %v3306_v5 }
 0x4f6   : > { %v2586_v40 = vmul.f32 %v7580_v22, %v7580_v22  ;;  %3418 = vmatmul.mubr.f32.gmra.mrb[2].mxu1 %v7505_v20  ;;  %v7593_v41 = vpop.permute.xlu1 %3695  ;;  %6400 = vrsqrt.f32 %v7566_v35  ;;  %vm2602_vm10 = vcmp.eq.f32.partialorder %v7566_v35, inf  ;;  %vm2604_vm11 = vcmp.eq.f32.partialorder %v7566_v35, 0.0 }
 0x4f7   : > { %5938 = vmatpush3.bf16.msra.mxu1 %v5937_v10  ;;  %v2570_v43 = vpop.permute.xlu0 %2569  ;;  %4782 = vmatprep.mubr.msk.f32.mxu1 %vm2678_vm8, %v7548_v14  ;;  %v7612_v10 = vadd.f32 1e-05, %v2593_v37  ;;  %v4157_v37 = vld [vmem:[#allocation13 + $0x710] sm:$0xff] }
 0x4f8   : > { %v2590_v21 = vsub.f32 %v2582_v17, %v2586_v40  ;;  %v7605_v63 = vmul.f32 %v2570_v43, %v7468_v47  ;;  %5940 = vmatprep.subr.bf16.mxu1 %v5939_v45  ;;  %v2583_v28 = vmul.f32 %v2579_v39, %v2570_v43  ;;  %v4140_v17 = vld [vmem:[#allocation13 + $0x688] sm:$0xff]  ;;  %v2983_v40 = vcombine.low %v2922_v33, %v2923_v16  ;;  %v3308_v43 = vld [vmem:[#allocation13 + $0x1c0] sm:$0xff] }
 0x4f9   : > { %v3717_v33 = vmul.f32 %v7593_v41, %v7462_v52  ;;  %v5947_v39 = vpack.c.bf16 %v3325_v12, %v3324_v56  ;;  %v7635_v16 = vrot.slane %v2981_v13, %v7483_v57  ;;  %v6157_v8 = vpack.c.bf16 %v4140_v17, %v4139_v50  ;;  %v4142_v13 = vld [vmem:[#allocation13 + $0x698] sm:$0xff]  ;;  %v4159_v12 = vld [vmem:[#allocation13 + $0x720] sm:$0xff] }
 0x4fa   : > { %8009 = vst [vmem:[#allocation22_spill] sm:$0xff] %v7605_v63  ;;  %v2594_v23 = vmax.f32 %v2590_v21, 0.0  ;;  %v2587_v45 = vmul.f32 %v7605_v63, %v7605_v63  ;;  %3423 = vmatmul.mubr.f32.gmra.mrb[4].mxu1 %v7580_v22  ;;  %v7617_v34 = vpop.permute.xlu1 %3705  ;;  %v7638_v21 = vrot.slane %v2982_v15, %v7483_v57  ;;  %v6159_v56 = vpack.c.bf16 %v4158_v7, %v4157_v37  ;;  %v3310_v7 = vld [vmem:[#allocation13 + $0x1d0] sm:$0xff] }
 0x4fb   : > { %8010 = vst [vmem:[#allocation23_spill] sm:$0xff] %v7617_v34  ;;  %5942 = vmatpush3.bf16.msra.mxu1 %v5941_v54  ;;  %v7622_v59 = vpop.permute.xlu0 %3690  ;;  %4783 = vmatprep.mubr.msk.f32.mxu1 %vm2679_vm9, %v7598_v0  ;;  %v3309_v54 = vld [vmem:[#allocation13 + $0x1c8] sm:$0xff]  ;;  %6402 = vrsqrt.f32 %v7612_v10  ;;  %v7649_v15 = vrot.slane %v2983_v40, %v7483_v57  ;;  %v3727_v37 = vmul.f32 %v7617_v34, %v7468_v47  ;;  %v4143_v47 = vld [vmem:[#allocation13 + $0x6a0] sm:$0xff]  ;;  %vm2609_vm12 = vcmp.eq.f32.partialorder %v7612_v10, inf }
 0x4fc   : > { %v2591_v27 = vsub.f32 %v2583_v28, %v2587_v45  ;;  %5944 = vmatprep.subr.bf16.mxu1 %v5943_v61  ;;  %v3712_v5 = vmul.f32 %v7622_v59, %v7447_v46  ;;  %v7642_v11 = vadd.f32 1e-05, %v2594_v23  ;;  %v4160_v28 = vld [vmem:[#allocation13 + $0x728] sm:$0xff]  ;;  %v5949_v23 = vpack.c.bf16 %v3309_v54, %v3308_v43 }
 0x4fd   : > { %v5951_v40 = vpack.c.bf16 %v3327_v60, %v3326_v29  ;;  %v6163_v54 = vpack.c.bf16 %v4160_v28, %v4159_v12  ;;  %v4144_v29 = vld [vmem:[#allocation13 + $0x6a8] sm:$0xff]  ;;  %vm2611_vm13 = vcmp.eq.f32.partialorder %v7612_v10, 0.0 }
 0x4fe   : > { %v2595_v52 = vmax.f32 %v2591_v27, 0.0  ;;  %3428 = vmatmul.mubr.f32.gmra.mrb[6].mxu1 %v7605_v63  ;;  %v7645_v61 = vpop.permute.xlu1 %4074  ;;  %5711 = vmatprep.mubr.f32.mxu0 %v3712_v5  ;;  %v6161_v27 = vpack.c.bf16 %v4142_v13, %v4141_v32  ;;  %v3328_v5 = vld [vmem:[#allocation13 + $0x260] sm:$0xff]  ;;  %6404 = vrsqrt.f32 %v7642_v11  ;;  %v4162_v13 = vld [vmem:[#allocation13 + $0x738] sm:$0xff]  ;;  %v3313_v60 = vld [vmem:[#allocation13 + $0x1e8] sm:$0xff]  ;;  %vm2616_vm14 = vcmp.eq.f32.partialorder %v7642_v11, inf }
 0x4ff   : > { %5946 = vmatpush3.bf16.msra.mxu1 %v5945_v48  ;;  %v7651_v46 = vpop.permute.xlu0 %3700  ;;  %v7655_v45 = vmul.f32 %v7645_v61, %v7630_v2  ;;  %5712 = vmatmul.mubr.f32.vlgmr.msra.gmra.mrb[0].mxu0 %v3717_v33  ;;  %v3311_v48 = vld [vmem:[#allocation13 + $0x1d8] sm:$0xff]  ;;  %v7664_v33 = vmul.f32 %v7645_v61, %v7505_v20  ;;  %vm2618_vm15 = vcmp.eq.f32.partialorder %v7642_v11, 0.0 }
 0x500   : > { %v6401_v50 = vpop.eup %6400  ;;  %5948 = vmatprep.subr.bf16.mxu1 %v5947_v39  ;;  %v3722_v17 = vmul.f32 %v7651_v46, %v7464_v36  ;;  %6158 = vmatpush3.bf16.msra.mxu0 %v6157_v8  ;;  %v7666_v39 = vadd.f32 1e-05, %v2595_v52  ;;  %v2605_v36 = vand.u32 2147483648, %v7566_v35  ;;  %v5953_v52 = vpack.c.bf16 %v3311_v48, %v3310_v7  ;;  %v7692_v7 = vld [vmem:[#allocation8 + $0x18] sm:$0x1]  ;;  %v3330_v48 = vld [vmem:[#allocation13 + $0x270] sm:$0xff] }
 0x501   : > { %8011 = vst [vmem:[#allocation24_spill] sm:$0xff] %v7655_v45  ;;  %v2601_v43 = vmul.f32 %v6401_v50, %v7566_v35  ;;  %8012 = vst [vmem:[#allocation25_spill] sm:$0xff] %v7664_v33  ;;  %6160 = vmatprep.subr.bf16.mxu0 %v6159_v56  ;;  %v4161_v56 = vld [vmem:[#allocation13 + $0x730] sm:$0xff]  ;;  %v7720_v33 = vld [vmem:[#allocation8 + $0x1d] sm:$0x1] }
 0x502   : > { %5714 = vmatprep.mubr.f32.mxu0 %v3722_v17  ;;  %v7677_v12 = vpop.permute.xlu1 %4084  ;;  %v3312_v17 = vld [vmem:[#allocation13 + $0x1e0] sm:$0xff]  ;;  %6406 = vrsqrt.f32 %v7666_v39  ;;  %vm2623_vm0 = vcmp.eq.f32.partialorder %v7666_v39, inf  ;;  %vm2625_vm1 = vcmp.eq.f32.partialorder %v7666_v39, 0.0 }
 0x503   : > { %5950 = vmatpush3.bf16.msra.mxu1 %v5949_v23  ;;  %v7673_v8 = vpop.permute.xlu0 %4069  ;;  %v2603_v32 = vsel %vm2602_vm10, %v7566_v35, %v2601_v43  ;;  %5715 = vmatmul.mubr.f32.gmra.mrb[2].mxu0 %v3727_v37  ;;  %v5955_v23 = vpack.c.bf16 %v3329_v6, %v3328_v5  ;;  %v3013_v43 = vcombine.low %v7638_v21, %v7649_v15  ;;  %v7690_v35 = vsel %vm2676_vm7, %v7515_v51, 0.0  ;;  %v7694_v37 = vld [vmem:[#allocation8 + $0x19] sm:$0x1]  ;;  %v7701_v21 = vld [vmem:[#allocation8 + $0x1b] sm:$0x1] }
 0x504   : > { %v7681_v28 = vmul.f32 %v7673_v8, %v7511_v30  ;;  %5952 = vmatprep.subr.bf16.mxu1 %v5951_v40  ;;  %v7683_v50 = vsel %vm2604_vm11, %v2605_v36, %v2603_v32  ;;  %6162 = vmatpush3.bf16.msra.mxu0 %v6161_v27  ;;  %v6165_v40 = vpack.c.bf16 %v4144_v29, %v4143_v47  ;;  %v3331_v5 = vld [vmem:[#allocation13 + $0x278] sm:$0xff]  ;;  %v7706_v51 = vsel %vm2679_vm9, %v7598_v0, 0.0  ;;  %v4145_v27 = vld [vmem:[#allocation13 + $0x6b0] sm:$0xff] }
 0x505   : > { %8014 = vst [vmem:[#allocation27_spill] sm:$0xff] %v7683_v50  ;;  %3497 = vmatprep.mubr.f32.mxu1 %v7683_v50  ;;  %v4090_v6 = vmul.f32 %v7673_v8, %v7683_v50  ;;  %v7699_v36 = vld [vmem:[#allocation8 + $0x1a] sm:$0x1]  ;;  %6164 = vmatprep.subr.bf16.mxu0 %v6163_v54  ;;  %v6167_v15 = vpack.c.bf16 %v4162_v13, %v4161_v56  ;;  %v7716_v29 = vsel %vm2678_vm8, %v7548_v14, 0.0  ;;  %v4163_v56 = vld [vmem:[#allocation13 + $0x740] sm:$0xff]  ;;  %v4164_v13 = vld [vmem:[#allocation13 + $0x748] sm:$0xff]  ;;  %v6403_v14 = vpop.eup %6402 }
 0x506   : > { %8013 = vst [vmem:[#allocation26_spill] sm:$0xff] %v7681_v28  ;;  %v4146_v32 = vld [vmem:[#allocation13 + $0x6b8] sm:$0xff]  ;;  %v7711_v47 = vmul.f32 %v7673_v8, %v7690_v35  ;;  %v5957_v54 = vpack.c.bf16 %v3313_v60, %v3312_v17  ;;  %v7726_v45 = vmul.f32 %v7677_v12, %v7706_v51  ;;  %v7730_v28 = vmul.f32 %v7677_v12, %v7605_v63  ;;  %v3314_v17 = vld [vmem:[#allocation13 + $0x1f0] sm:$0xff]  ;;  %v3745_v63 = vld [vmem:[#allocation13 + $0x388] sm:$0xff] }
 0x507   : > { %5954 = vmatpush3.bf16.msra.mxu1 %v5953_v52  ;;  %4336 = vmatprep.mubr.f32.mxu0 %v4090_v6  ;;  %v7722_v0 = vpop.permute.xlu0 %4079  ;;  %v2946_v6 = vld [vmem:[#allocation8 + $0x1e] sm:$0x1]  ;;  %v5959_v60 = vpack.c.bf16 %v3331_v5, %v3330_v48  ;;  %v8023_v48 = vcombine.low %v7572_v3, %v7574_v4  ;;  %v4147_v3 = vld [vmem:[#allocation13 + $0x6c0] sm:$0xff]  ;;  %v4148_v4 = vld [vmem:[#allocation13 + $0x6c8] sm:$0xff] }
 0x508   : > { %8015 = vst [vmem:[#allocation28_spill] sm:$0xff] %v7711_v47  ;;  %8016 = vst [vmem:[#allocation29_spill] sm:$0xff] %v7726_v45  ;;  %v8018_v47 = vcombine.low %v7528_v49, %v7543_v19  ;;  %5956 = vmatprep.subr.bf16.mxu1 %v5955_v23  ;;  %v3315_v50 = vld [vmem:[#allocation13 + $0x1f8] sm:$0xff]  ;;  %v7740_v34 = vmul.f32 %v7722_v0, %v7716_v29  ;;  %v7744_v45 = vmul.f32 %v7722_v0, %v7580_v22 }
 0x509   : > { %8017 = vst [vmem:[#allocation30_spill] sm:$0xff] %v7730_v28  ;;  %v8021_v28 = vcombine.low %v7550_v62, %v7552_v9  ;;  %v8022_v19 = vcombine.low %v7568_v18, %v7570_v42  ;;  %v7760_v5 = vrot.slane %v8023_v48, %v7483_v57  ;;  %6166 = vmatpush3.bf16.msra.mxu0 %v6165_v40  ;;  %v6405_v48 = vpop.eup %6404 }
 0x50a   : > { %v7736_v52 = vrot.slane %v8018_v47, %v7483_v57  ;;  %8019 = vst [vmem:[#allocation31_spill] sm:$0xff] %v7740_v34  ;;  %8020 = vst [vmem:[#allocation32_spill] sm:$0xff] %v7744_v45  ;;  %v2947_v47 = vld [vmem:[#allocation8 + $0x1f] sm:$0x1]  ;;  %v6169_v45 = vpack.c.bf16 %v4146_v32, %v4145_v27  ;;  %v3744_v34 = vld [vmem:[#allocation13 + $0x380] sm:$0xff]  ;;  %v8024_v62 = vcombine.low %v7620_v26, %v7635_v16  ;;  %6168 = vmatprep.subr.bf16.mxu0 %v6167_v15 }
 0x50b   : > { %v3095_v49 = vrot.slane %v8021_v28, %v7483_v57  ;;  %v7754_v23 = vrot.slane %v8022_v19, %v7483_v57  ;;  %v3027_v18 = vrot.slane %v3013_v43, %v7483_v57  ;;  %v3127_v42 = vcombine.low %v7692_v7, %v7694_v37  ;;  %5958 = vmatpush3.bf16.msra.mxu1 %v5957_v54  ;;  %v4165_v43 = vld [vmem:[#allocation13 + $0x750] sm:$0xff]  ;;  %v4166_v19 = vld [vmem:[#allocation13 + $0x758] sm:$0xff] }
 0x50c   : > { %v3020_v9 = vrot.slane %v8024_v62, %v7483_v57  ;;  %v6171_v28 = vpack.c.bf16 %v4164_v13, %v4163_v56  ;;  %v8025_v40 = vcombine.low %v7532_v44, %v7535_v58  ;;  %v3128_v32 = vcombine.low %v7699_v36, %v7701_v21  ;;  %5960 = vmatprep.subr.bf16.mxu1 %v5959_v60  ;;  %v3728_v44 = vld [vmem:[#allocation13 + $0x300] sm:$0xff]  ;;  %v3729_v58 = vld [vmem:[#allocation13 + $0x308] sm:$0xff] }
 0x50d   : > { %v5961_v26 = vpack.c.bf16 %v3315_v50, %v3314_v17  ;;  %v2608_v16 = vmul.f32 %v6403_v14, %v7612_v10  ;;  %v3129_v7 = vcombine.low %v7718_v24, %v7720_v33  ;;  %v3130_v37 = vcombine.low %v2946_v6, %v2947_v47  ;;  %6170 = vmatpush3.bf16.msra.mxu0 %v6169_v45  ;;  %v3746_v24 = vld [vmem:[#allocation13 + $0x390] sm:$0xff]  ;;  %v3747_v33 = vld [vmem:[#allocation13 + $0x398] sm:$0xff]  ;;  %v4167_v60 = vld [vmem:[#allocation13 + $0x760] sm:$0xff] }
 0x50e   : > { %v3069_v27 = vrot.slane %v8025_v40, %v7483_v57  ;;  %v6027_v15 = vpack.c.bf16 %v3745_v63, %v3744_v34  ;;  %v8026_v36 = vcombine.low %v7538_v25, %v7541_v55  ;;  %v3110_v21 = vcombine.low %v7736_v52, %v3095_v49  ;;  %6172 = vmatprep.subr.bf16.mxu0 %v6171_v28  ;;  %v4149_v25 = vld [vmem:[#allocation13 + $0x6d0] sm:$0xff]  ;;  %v4150_v55 = vld [vmem:[#allocation13 + $0x6d8] sm:$0xff]  ;;  %v4168_v17 = vld [vmem:[#allocation13 + $0x768] sm:$0xff]  ;;  %v6407_v49 = vpop.eup %6406 }
 0x50f   : > { %v3111_v54 = vcombine.low %v7754_v23, %v7760_v5  ;;  %v6173_v56 = vpack.c.bf16 %v4148_v4, %v4147_v3  ;;  %v7786_v13 = vcombine.low %v3020_v9, %v3027_v18  ;;  %v7789_v63 = vrot.slane %v3127_v42, %v7483_v57  ;;  %5962 = vmatpush3.bf16.msra.mxu1 %v5961_v26  ;;  %v3730_v9 = vld [vmem:[#allocation13 + $0x310] sm:$0xff]  ;;  %v3731_v18 = vld [vmem:[#allocation13 + $0x318] sm:$0xff]  ;;  %v3748_v4 = vld [vmem:[#allocation13 + $0x3a0] sm:$0xff] }
 0x510   : > { %v3076_v50 = vrot.slane %v8026_v36, %v7483_v57  ;;  %v2612_v34 = vand.u32 2147483648, %v7612_v10  ;;  %v6175_v14 = vpack.c.bf16 %v4166_v19, %v4165_v43  ;;  %v2610_v52 = vsel %vm2609_vm12, %v7612_v10, %v2608_v16  ;;  %6028 = vmatprep.subr.bf16.mxu1 %v6027_v15  ;;  %v3749_v40 = vld [vmem:[#allocation13 + $0x3a8] sm:$0xff]  ;;  %v4151_v16 = vld [vmem:[#allocation13 + $0x6e0] sm:$0xff]  ;;  %v4170_v15 = vld [vmem:[#allocation13 + $0x778] sm:$0xff] }
 0x511   : > { %v6029_v45 = vpack.c.bf16 %v3729_v58, %v3728_v44  ;;  %v2615_v6 = vmul.f32 %v6405_v48, %v7642_v11  ;;  %v3144_v23 = vrot.slane %v3128_v32, %v7483_v57  ;;  %v3151_v5 = vrot.slane %v3129_v7, %v7483_v57  ;;  %6174 = vmatpush3.bf16.msra.mxu0 %v6173_v56  ;;  %v4152_v43 = vld [vmem:[#allocation13 + $0x6e8] sm:$0xff]  ;;  %v3750_v56 = vld [vmem:[#allocation13 + $0x3b0] sm:$0xff] }
 0x512   : > { %v3158_v47 = vrot.slane %v3130_v37, %v7483_v57  ;;  %v6031_v62 = vpack.c.bf16 %v3747_v33, %v3746_v24  ;;  %v7800_v42 = vcombine.low %v3069_v27, %v3076_v50  ;;  %v3118_v28 = vrot.slane %v3110_v21, %v7483_v57  ;;  %4784 = vmatmul.mubr.msk.f32.vlgmr.msra.gmra.mrb[8].mxu1 %vm2676_vm7, %v7786_v13  ;;  %v4169_v37 = vld [vmem:[#allocation13 + $0x770] sm:$0xff]  ;;  %v3732_v50 = vld [vmem:[#allocation13 + $0x320] sm:$0xff]  ;;  %v3733_v21 = vld [vmem:[#allocation13 + $0x328] sm:$0xff] }
 0x513   : > { %v6177_v3 = vpack.c.bf16 %v4150_v55, %v4149_v25  ;;  %v3125_v26 = vrot.slane %v3111_v54, %v7483_v57  ;;  %v7809_v32 = vsel %vm2611_vm13, %v2612_v34, %v2610_v52  ;;  %6176 = vmatprep.subr.bf16.mxu0 %v6175_v14  ;;  %v6179_v27 = vpack.c.bf16 %v4168_v17, %v4167_v60  ;;  %v3751_v24 = vld [vmem:[#allocation13 + $0x3b8] sm:$0xff]  ;;  %v4153_v34 = vld [vmem:[#allocation13 + $0x6f0] sm:$0xff]  ;;  %v4171_v52 = vld [vmem:[#allocation13 + $0x780] sm:$0xff] }
 0x514   : > { %3502 = vmatprep.mubr.f32.mxu1 %v7809_v32  ;;  %6030 = vmatpush3.bf16.msra.mxu1 %v6029_v45  ;;  %v2617_v19 = vsel %vm2616_vm14, %v7642_v11, %v2615_v6  ;;  %v6033_v48 = vpack.c.bf16 %v3731_v18, %v3730_v9  ;;  %v2622_v7 = vmul.f32 %v6407_v49, %v7666_v39  ;;  %v2619_v58 = vand.u32 2147483648, %v7642_v11  ;;  %v4154_v14 = vld [vmem:[#allocation13 + $0x6f8] sm:$0xff]  ;;  %v4172_v45 = vld [vmem:[#allocation13 + $0x788] sm:$0xff] }
 0x515   : > { %v3159_v10 = vcombine.low %v7789_v63, %v3144_v23  ;;  %v3160_v44 = vcombine.low %v3151_v5, %v3158_v47  ;;  %6032 = vmatprep.subr.bf16.mxu1 %v6031_v62  ;;  %v6035_v36 = vpack.c.bf16 %v3749_v40, %v3748_v4  ;;  %6178 = vmatpush3.bf16.msra.mxu0 %v6177_v3  ;;  %v2626_v17 = vand.u32 2147483648, %v7666_v39  ;;  %v3734_v23 = vld [vmem:[#allocation13 + $0x330] sm:$0xff]  ;;  %v3735_v5 = vld [vmem:[#allocation13 + $0x338] sm:$0xff]  ;;  %v3752_v62 = vld [vmem:[#allocation13 + $0x3c0] sm:$0xff] }
 0x516   : > { %v6181_v54 = vpack.c.bf16 %v4152_v43, %v4151_v16  ;;  %4785 = vmatmul.mubr.msk.f32.gmra.mrb[10].mxu1 %vm2677_vm6, %v7800_v42  ;;  %v7821_v33 = vsel %vm2618_vm15, %v2619_v58, %v2617_v19  ;;  %6180 = vmatprep.subr.bf16.mxu0 %v6179_v27  ;;  %v6183_v63 = vpack.c.bf16 %v4170_v15, %v4169_v37  ;;  %v3753_v9 = vld [vmem:[#allocation13 + $0x3c8] sm:$0xff]  ;;  %v4173_v3 = vld [vmem:[#allocation13 + $0x790] sm:$0xff]  ;;  %v4174_v4 = vld [vmem:[#allocation13 + $0x798] sm:$0xff]  ;;  %v7841_v16 = vsel %vm2676_vm7, %v7786_v13, 0.0 }
 0x517   : > { %v7824_v25 = vcombine.low %v3118_v28, %v3125_v26  ;;  %3507 = vmatprep.mubr.f32.mxu1 %v7821_v33  ;;  %v2624_v11 = vsel %vm2623_vm0, %v7666_v39, %v2622_v7  ;;  %v6037_v55 = vpack.c.bf16 %v3733_v21, %v3732_v50  ;;  %v3167_v6 = vrot.slane %v3159_v10, %v7483_v57  ;;  %v3736_v26 = vld [vmem:[#allocation13 + $0x340] sm:$0xff]  ;;  %v3737_v27 = vld [vmem:[#allocation13 + $0x348] sm:$0xff]  ;;  %v3754_v19 = vld [vmem:[#allocation13 + $0x3d0] sm:$0xff] }
 0x518   : > { %6034 = vmatpush3.bf16.msra.mxu1 %v6033_v48  ;;  %v3174_v60 = vrot.slane %v3160_v44, %v7483_v57  ;;  %v6039_v49 = vpack.c.bf16 %v3751_v24, %v3750_v56  ;;  %v6185_v47 = vpack.c.bf16 %v4154_v14, %v4153_v34  ;;  %v7835_v18 = vsel %vm2625_vm1, %v2626_v17, %v2624_v11  ;;  %v3755_v48 = vld [vmem:[#allocation13 + $0x3d8] sm:$0xff]  ;;  %v4175_v15 = vld [vmem:[#allocation13 + $0x7a0] sm:$0xff]  ;;  %v4176_v10 = vld [vmem:[#allocation13 + $0x7a8] sm:$0xff] }
 0x519   : > { %6036 = vmatprep.subr.bf16.mxu1 %v6035_v36  ;;  %6182 = vmatpush3.bf16.msra.mxu0 %v6181_v54  ;;  %v6187_v57 = vpack.c.bf16 %v4172_v45, %v4171_v52  ;;  %v6041_v28 = vpack.c.bf16 %v3735_v5, %v3734_v23  ;;  %v6043_v39 = vpack.c.bf16 %v3753_v9, %v3752_v62  ;;  %v7852_v53 = vsel %vm2677_vm6, %v7800_v42, 0.0  ;;  %v3738_v58 = vld [vmem:[#allocation13 + $0x350] sm:$0xff]  ;;  %v3739_v36 = vld [vmem:[#allocation13 + $0x358] sm:$0xff]  ;;  %v3756_v50 = vld [vmem:[#allocation13 + $0x3e0] sm:$0xff] }
 0x51a   : > { %4786 = vmatmul.mubr.msk.f32.gmra.mrb[12].mxu1 %vm2678_vm8, %v7824_v25  ;;  %6184 = vmatprep.subr.bf16.mxu0 %v6183_v63  ;;  %v3175_v40 = vcombine.low %v3167_v6, %v3174_v60  ;;  %v3709_v43 = vmul.f32 %v7622_v59, %v7690_v35  ;;  %v4089_v7 = vmul.f32 %v7673_v8, %v7841_v16  ;;  %v3757_v21 = vld [vmem:[#allocation13 + $0x3e8] sm:$0xff]  ;;  %v4177_v24 = vld [vmem:[#allocation13 + $0x7b0] sm:$0xff]  ;;  %v4178_v63 = vld [vmem:[#allocation13 + $0x7b8] sm:$0xff] }
 0x51b   : > { %3512 = vmatprep.mubr.f32.mxu1 %v7835_v18  ;;  %v6191_v37 = vpack.c.bf16 %v4174_v4, %v4173_v3  ;;  %v4095_v35 = vmul.f32 %v7645_v61, %v7809_v32  ;;  %v6045_v13 = vpack.c.bf16 %v3737_v27, %v3736_v26  ;;  %v6047_v44 = vpack.c.bf16 %v3755_v48, %v3754_v19  ;;  %v3740_v14 = vld [vmem:[#allocation13 + $0x360] sm:$0xff]  ;;  %v3741_v11 = vld [vmem:[#allocation13 + $0x368] sm:$0xff]  ;;  %v3758_v52 = vld [vmem:[#allocation13 + $0x3f0] sm:$0xff] }
 0x51c   : > { %6038 = vmatpush3.bf16.msra.mxu1 %v6037_v55  ;;  %v4094_v31 = vmul.f32 %v7645_v61, %v7852_v53  ;;  %v6195_v42 = vpack.c.bf16 %v4176_v10, %v4175_v15  ;;  %v4100_v54 = vmul.f32 %v7722_v0, %v7821_v33  ;;  %v6049_v56 = vpack.c.bf16 %v3739_v36, %v3738_v58  ;;  %v3759_v45 = vld [vmem:[#allocation13 + $0x3f8] sm:$0xff]  ;;  %v4179_v23 = vld [vmem:[#allocation13 + $0x7c0] sm:$0xff]  ;;  %v4180_v5 = vld [vmem:[#allocation13 + $0x7c8] sm:$0xff] }
 0x51d   : > { %6040 = vmatprep.subr.bf16.mxu1 %v6039_v49  ;;  %6186 = vmatpush3.bf16.msra.mxu0 %v6185_v47  ;;  %v6051_v34 = vpack.c.bf16 %v3757_v21, %v3756_v50  ;;  %v7863_v55 = vsel %vm2678_vm8, %v7824_v25, 0.0  ;;  %v6199_v60 = vpack.c.bf16 %v4178_v63, %v4177_v24  ;;  %v4105_v17 = vmul.f32 %v7677_v12, %v7835_v18  ;;  %v3742_v25 = vld [vmem:[#allocation13 + $0x370] sm:$0xff]  ;;  %v3743_v47 = vld [vmem:[#allocation13 + $0x378] sm:$0xff]  ;;  %v3776_v9 = vld [vmem:[#allocation13 + $0x480] sm:$0xff] }
 0x51e   : > { %4787 = vmatmul.mubr.msk.f32.gmra.mrb[14].mxu1 %vm2679_vm9, %v3175_v40  ;;  %6188 = vmatprep.subr.bf16.mxu0 %v6187_v57  ;;  %v4099_v6 = vmul.f32 %v7722_v0, %v7863_v55  ;;  %v6053_v49 = vpack.c.bf16 %v3741_v11, %v3740_v14  ;;  %v6055_v1 = vpack.c.bf16 %v3759_v45, %v3758_v52  ;;  %v7871_v62 = vsel %vm2679_vm9, %v3175_v40, 0.0  ;;  %v6410_v4 = vld [vmem:[#allocation5] sm:$0xff]  ;;  %v4181_v27 = vld [vmem:[#allocation13 + $0x7d0] sm:$0xff]  ;;  %v3761_v19 = vld [vmem:[#allocation13 + $0x408] sm:$0xff] }
 0x51f   : > { %3872 = vmatprep.mubr.f32.mxu1 %v3709_v43  ;;  %v6203_v3 = vpack.c.bf16 %v4180_v5, %v4179_v23  ;;  %v6057_v26 = vpack.c.bf16 %v3743_v47, %v3742_v25  ;;  %v4182_v43 = vld [vmem:[#allocation13 + $0x7d8] sm:$0xff]  ;;  %v3760_v40 = vld [vmem:[#allocation13 + $0x400] sm:$0xff]  ;;  %v3778_v48 = vld [vmem:[#allocation13 + $0x490] sm:$0xff]  ;;  %v3714_v36 = vmul.f32 %v7593_v41, %v7630_v2  ;;  %v3719_v2 = vmul.f32 %v7651_v46, %v7716_v29 }
 0x520   : > { %6042 = vmatpush3.bf16.msra.mxu1 %v6041_v28  ;;  %4337 = vmatmul.mubr.f32.vlgmr.msra.gmra.mrb[4].mxu0 %v4089_v7  ;;  %v4104_v28 = vmul.f32 %v7677_v12, %v7871_v62  ;;  %v3779_v7 = vld [vmem:[#allocation13 + $0x498] sm:$0xff]  ;;  %v4184_v15 = vld [vmem:[#allocation13 + $0x7e8] sm:$0xff]  ;;  %v3780_v50 = vld [vmem:[#allocation13 + $0x4a0] sm:$0xff] }
 0x521   : > { %6044 = vmatprep.subr.bf16.mxu1 %v6043_v39  ;;  %4341 = vmatprep.mubr.f32.mxu0 %v4095_v35  ;;  %v4091_v39 = vmul.f32 %v6410_v4, %v7673_v8  ;;  %v6061_v35 = vpack.c.bf16 %v3761_v19, %v3760_v40  ;;  %v3708_v8 = vmul.f32 %v7622_v59, %v7511_v30  ;;  %v3763_v58 = vld [vmem:[#allocation13 + $0x418] sm:$0xff]  ;;  %v3781_v21 = vld [vmem:[#allocation13 + $0x4a8] sm:$0xff]  ;;  %v3764_v63 = vld [vmem:[#allocation13 + $0x420] sm:$0xff] }
 0x522   : > { %6190 = vmatpush3.bf16.msra.mxu0 %v6187_v57  ;;  %v3777_v57 = vld [vmem:[#allocation13 + $0x488] sm:$0xff]  ;;  %v6063_v10 = vpack.c.bf16 %v3779_v7, %v3778_v48  ;;  %v3713_v30 = vmul.f32 %v7593_v41, %v7505_v20  ;;  %v6067_v24 = vpack.c.bf16 %v3781_v21, %v3780_v50  ;;  %v3782_v14 = vld [vmem:[#allocation13 + $0x4b0] sm:$0xff]  ;;  %v3783_v11 = vld [vmem:[#allocation13 + $0x4b8] sm:$0xff] }
 0x523   : > { %6192 = vmatprep.subr.bf16.mxu0 %v6191_v37  ;;  %v6059_v38 = vpack.c.bf16 %v3777_v57, %v3776_v9  ;;  %v6071_v20 = vpack.c.bf16 %v3783_v11, %v3782_v14  ;;  %v3784_v29 = vld [vmem:[#allocation13 + $0x4c0] sm:$0xff]  ;;  %v3785_v5 = vld [vmem:[#allocation13 + $0x4c8] sm:$0xff]  ;;  %v3786_v4 = vld [vmem:[#allocation13 + $0x4d0] sm:$0xff] }
 0x524   : > { %6046 = vmatpush3.bf16.msra.mxu1 %v6045_v13  ;;  %4342 = vmatmul.mubr.f32.gmra.mrb[6].mxu0 %v4094_v31  ;;  %v4183_v13 = vld [vmem:[#allocation13 + $0x7e0] sm:$0xff]  ;;  %v3769_v57 = vld [vmem:[#allocation13 + $0x448] sm:$0xff]  ;;  %v3770_v19 = vld [vmem:[#allocation13 + $0x450] sm:$0xff] }
 0x525   : > { %6048 = vmatprep.subr.bf16.mxu1 %v6047_v44  ;;  %4346 = vmatprep.mubr.f32.mxu0 %v4100_v54  ;;  %v3762_v44 = vld [vmem:[#allocation13 + $0x410] sm:$0xff]  ;;  %v6211_v31 = vpack.c.bf16 %v4184_v15, %v4183_v13  ;;  %v8028_v25 = vld [vmem:[#allocation22_spill] sm:$0xff]  ;;  %v3771_v48 = vld [vmem:[#allocation13 + $0x458] sm:$0xff] }
 0x526   : > { %6194 = vmatpush3.bf16.msra.mxu0 %v6191_v37  ;;  %v6207_v37 = vpack.c.bf16 %v4182_v43, %v4181_v27  ;;  %v4185_v54 = vld [vmem:[#allocation13 + $0x7f0] sm:$0xff]  ;;  %v3768_v9 = vld [vmem:[#allocation13 + $0x440] sm:$0xff]  ;;  %v3775_v21 = vld [vmem:[#allocation13 + $0x478] sm:$0xff] }
 0x527   : > { %6196 = vmatprep.subr.bf16.mxu0 %v6195_v42  ;;  %v6412_v27 = vld [vmem:[#allocation5 + $0x10] sm:$0xff]  ;;  %v3788_v7 = vld [vmem:[#allocation13 + $0x4e0] sm:$0xff] }
 0x528   : > { %6050 = vmatpush3.bf16.msra.mxu1 %v6049_v56  ;;  %4347 = vmatmul.mubr.f32.gmra.mrb[8].mxu0 %v4099_v6  ;;  %v4186_v56 = vld [vmem:[#allocation13 + $0x7f8] sm:$0xff]  ;;  %v3718_v6 = vmul.f32 %v7651_v46, %v7580_v22  ;;  %v6075_v22 = vpack.c.bf16 %v3785_v5, %v3784_v29  ;;  %v4101_v43 = vmul.f32 %v6412_v27, %v7722_v0  ;;  %v3790_v0 = vld [vmem:[#allocation13 + $0x4f0] sm:$0xff]  ;;  %v4111_v29 = vld [vmem:[#allocation13 + $0x5a0] sm:$0xff] }
 0x529   : > { %6052 = vmatprep.subr.bf16.mxu1 %v6051_v34  ;;  %4351 = vmatprep.mubr.f32.mxu0 %v4105_v17  ;;  %v3765_v34 = vld [vmem:[#allocation13 + $0x428] sm:$0xff]  ;;  %v6215_v52 = vpack.c.bf16 %v4186_v56, %v4185_v54  ;;  %v3767_v17 = vld [vmem:[#allocation13 + $0x438] sm:$0xff]  ;;  %v3774_v50 = vld [vmem:[#allocation13 + $0x470] sm:$0xff] }
 0x52a   : > { %6198 = vmatpush3.bf16.msra.mxu0 %v6195_v42  ;;  %v6065_v42 = vpack.c.bf16 %v3763_v58, %v3762_v44  ;;  %v6069_v45 = vpack.c.bf16 %v3765_v34, %v3764_v63  ;;  %v3791_v44 = vld [vmem:[#allocation13 + $0x4f8] sm:$0xff]  ;;  %v6089_v54 = vpack.c.bf16 %v3775_v21, %v3774_v50  ;;  %v4107_v56 = vld [vmem:[#allocation13 + $0x580] sm:$0xff]  ;;  %v4109_v11 = vld [vmem:[#allocation13 + $0x590] sm:$0xff] }
 0x52b   : > { %6200 = vmatprep.subr.bf16.mxu0 %v6199_v60  ;;  %v4126_v63 = vld [vmem:[#allocation13 + $0x618] sm:$0xff]  ;;  %v4129_v5 = vld [vmem:[#allocation13 + $0x630] sm:$0xff]  ;;  %v8037_v21 = vld [vmem:[#allocation30_spill] sm:$0xff] }
 0x52c   : > { %6054 = vmatpush3.bf16.msra.mxu1 %v6053_v49  ;;  %4352 = vmatmul.mubr.f32.gmra.mrb[10].mxu0 %v4104_v28  ;;  %v8027_v49 = vld [vmem:[#allocation23_spill] sm:$0xff]  ;;  %v4117_v27 = vld [vmem:[#allocation13 + $0x5d0] sm:$0xff]  ;;  %v8036_v50 = vld [vmem:[#allocation29_spill] sm:$0xff] }
 0x52d   : > { %6056 = vmatprep.subr.bf16.mxu1 %v6055_v1  ;;  %5749 = vmatprep.mubr.f32.mxu0 %v4091_v39  ;;  %v3724_v23 = vmul.f32 %v8027_v49, %v7706_v51  ;;  %v3723_v47 = vmul.f32 %v8027_v49, %v8028_v25  ;;  %v8029_v28 = vld [vmem:[#allocation27_spill] sm:$0xff]  ;;  %v3787_v51 = vld [vmem:[#allocation13 + $0x4d8] sm:$0xff]  ;;  %v3720_v25 = vmul.f32 %v7651_v46, %v7863_v55  ;;  %v4133_v55 = vld [vmem:[#allocation13 + $0x650] sm:$0xff] }
 0x52e   : > { %6202 = vmatpush3.bf16.msra.mxu0 %v6199_v60  ;;  %v3766_v60 = vld [vmem:[#allocation13 + $0x430] sm:$0xff]  ;;  %v6411_v39 = vld [vmem:[#allocation5 + $0x8] sm:$0xff]  ;;  %v6079_v40 = vpack.c.bf16 %v3787_v51, %v3786_v4  ;;  %v4115_v4 = vld [vmem:[#allocation13 + $0x5c0] sm:$0xff] }
 0x52f   : > { %6204 = vmatprep.subr.bf16.mxu0 %v6203_v3  ;;  %v6073_v1 = vpack.c.bf16 %v3767_v17, %v3766_v60  ;;  %v3715_v17 = vmul.f32 %v7593_v41, %v7852_v53  ;;  %v3726_v53 = vmul.f32 %v8027_v49, %v7835_v18  ;;  %v4134_v51 = vld [vmem:[#allocation13 + $0x658] sm:$0xff] }
 0x530   : > { %6058 = vmatpush3.bf16.msra.mxu1 %v6057_v26  ;;  %v4096_v26 = vmul.f32 %v6411_v39, %v7645_v61  ;;  %v6081_v61 = vpack.c.bf16 %v3771_v48, %v3770_v19  ;;  %v8030_v39 = vld [vmem:[#allocation28_spill] sm:$0xff]  ;;  %v4120_v48 = vld [vmem:[#allocation13 + $0x5e8] sm:$0xff] }
 0x531   : > { %6060 = vmatprep.subr.bf16.mxu1 %v6059_v38  ;;  %v6077_v38 = vpack.c.bf16 %v3769_v57, %v3768_v9  ;;  %v4131_v9 = vld [vmem:[#allocation13 + $0x640] sm:$0xff]  ;;  %v4132_v57 = vld [vmem:[#allocation13 + $0x648] sm:$0xff] }
 0x532   : > { %6206 = vmatpush3.bf16.msra.mxu0 %v6203_v3  ;;  %v3711_v3 = vmul.f32 %v7622_v59, %v8029_v28  ;;  %v3725_v28 = vmul.f32 %v8027_v49, %v7871_v62  ;;  %v4119_v49 = vld [vmem:[#allocation13 + $0x5e0] sm:$0xff] }
 0x533   : > { %3873 = vmatmul.mubr.f32.vlgmr.msra.gmra.mrb[16].mxu1 %v3708_v8  ;;  %6208 = vmatprep.subr.bf16.mxu0 %v6207_v37  ;;  %v3772_v8 = vld [vmem:[#allocation13 + $0x460] sm:$0xff] }
 0x534   : > { %3877 = vmatprep.mubr.f32.mxu1 %v3714_v36  ;;  %6062 = vmatpush3.bf16.msra.mxu1 %v6061_v35  ;;  %v6413_v35 = vld [vmem:[#allocation5 + $0x18] sm:$0xff]  ;;  %v6087_v36 = vpack.c.bf16 %v3791_v44, %v3790_v0  ;;  %v8032_v0 = vld [vmem:[#allocation24_spill] sm:$0xff] }
 0x535   : > { %6064 = vmatprep.subr.bf16.mxu1 %v6063_v10  ;;  %v4106_v13 = vmul.f32 %v6413_v35, %v7677_v12  ;;  %v3773_v10 = vld [vmem:[#allocation13 + $0x468] sm:$0xff]  ;;  %v6149_v35 = vpack.c.bf16 %v4120_v48, %v4119_v49  ;;  %v8033_v44 = vld [vmem:[#allocation25_spill] sm:$0xff] }
 0x536   : > { %6210 = vmatpush3.bf16.msra.mxu0 %v6207_v37  ;;  %v3789_v37 = vld [vmem:[#allocation13 + $0x4e8] sm:$0xff]  ;;  %v6085_v58 = vpack.c.bf16 %v3773_v10, %v3772_v8  ;;  %v8031_v10 = vld [vmem:[#allocation26_spill] sm:$0xff] }
 0x537   : > { %3878 = vmatmul.mubr.f32.gmra.mrb[18].mxu1 %v3713_v30  ;;  %6212 = vmatprep.subr.bf16.mxu0 %v6211_v31  ;;  %v6083_v15 = vpack.c.bf16 %v3789_v37, %v3788_v7  ;;  %v4108_v30 = vld [vmem:[#allocation13 + $0x588] sm:$0xff]  ;;  %v4137_v7 = vld [vmem:[#allocation13 + $0x670] sm:$0xff]  ;;  %v4138_v37 = vld [vmem:[#allocation13 + $0x678] sm:$0xff] }
 0x538   : > { %3882 = vmatprep.mubr.f32.mxu1 %v3719_v2  ;;  %6066 = vmatpush3.bf16.msra.mxu1 %v6065_v42  ;;  %v4124_v42 = vld [vmem:[#allocation13 + $0x608] sm:$0xff]  ;;  %v6125_v34 = vpack.c.bf16 %v4108_v30, %v4107_v56  ;;  %v3710_v2 = vmul.f32 %v7622_v59, %v7841_v16  ;;  %v3721_v16 = vmul.f32 %v7651_v46, %v7821_v33 }
 0x539   : > { %6068 = vmatprep.subr.bf16.mxu1 %v6067_v24  ;;  %v4125_v24 = vld [vmem:[#allocation13 + $0x610] sm:$0xff]  ;;  %v4112_v59 = vld [vmem:[#allocation13 + $0x5a8] sm:$0xff] }
 0x53a   : > { %6214 = vmatpush3.bf16.msra.mxu0 %v6211_v31  ;;  %v4123_v31 = vld [vmem:[#allocation13 + $0x600] sm:$0xff]  ;;  %v6127_v14 = vpack.c.bf16 %v4126_v63, %v4125_v24  ;;  %v4116_v46 = vld [vmem:[#allocation13 + $0x5c8] sm:$0xff] }
 0x53b   : > { %3883 = vmatmul.mubr.f32.gmra.mrb[20].mxu1 %v3718_v6  ;;  %6216 = vmatprep.subr.bf16.mxu0 %v6215_v52  ;;  %v6123_v12 = vpack.c.bf16 %v4124_v42, %v4123_v31  ;;  %v4127_v6 = vld [vmem:[#allocation13 + $0x620] sm:$0xff]  ;;  %v6141_v18 = vpack.c.bf16 %v4116_v46, %v4115_v4 }
 0x53c   : > { %3887 = vmatprep.mubr.f32.mxu1 %v3724_v23  ;;  %6070 = vmatpush3.bf16.msra.mxu1 %v6069_v45  ;;  %v3716_v45 = vmul.f32 %v7593_v41, %v7809_v32  ;;  %v6133_v32 = vpack.c.bf16 %v4112_v59, %v4111_v29  ;;  %v4114_v41 = vld [vmem:[#allocation13 + $0x5b8] sm:$0xff] }
 0x53d   : > { %6072 = vmatprep.subr.bf16.mxu1 %v6071_v20  ;;  %v4128_v20 = vld [vmem:[#allocation13 + $0x628] sm:$0xff] }
 0x53e   : > { %6218 = vmatpush3.bf16.msra.mxu0 %v6215_v52  ;;  %v4110_v52 = vld [vmem:[#allocation13 + $0x598] sm:$0xff]  ;;  %v6131_v23 = vpack.c.bf16 %v4128_v20, %v4127_v6 }
 0x53f   : > { %3888 = vmatmul.mubr.f32.gmra.mrb[22].mxu1 %v3723_v47  ;;  %v6129_v60 = vpack.c.bf16 %v4110_v52, %v4109_v11 }
 0x540   : > { %6074 = vmatpush3.bf16.msra.mxu1 %v6073_v1  ;;  %3957 = vmatprep.mubr.f32.mxu1 %v3711_v3  ;;  %v4130_v1 = vld [vmem:[#allocation13 + $0x638] sm:$0xff]  ;;  %v6139_v3 = vpack.c.bf16 %v4132_v57, %v4131_v9 }
 0x541   : > { %5750 = vmatmul.mubr.f32.vlgmr.msra.gmra.mrb[0].mxu0 %v4096_v26  ;;  %6076 = vmatprep.subr.bf16.mxu1 %v6075_v22  ;;  %v6135_v47 = vpack.c.bf16 %v4130_v1, %v4129_v5  ;;  %v4113_v22 = vld [vmem:[#allocation13 + $0x5b0] sm:$0xff]  ;;  %v6143_v26 = vpack.c.bf16 %v4134_v51, %v4133_v55 }
 0x542   : > { %5752 = vmatprep.mubr.f32.mxu0 %v4101_v43  ;;  %v6137_v33 = vpack.c.bf16 %v4114_v41, %v4113_v22  ;;  %v4118_v43 = vld [vmem:[#allocation13 + $0x5d8] sm:$0xff] }
 0x543   : > { %v6145_v19 = vpack.c.bf16 %v4118_v43, %v4117_v27 }
 0x544   : > { %6078 = vmatpush3.bf16.msra.mxu1 %v6077_v38  ;;  %v4135_v38 = vld [vmem:[#allocation13 + $0x660] sm:$0xff] }
 0x545   : > { %5753 = vmatmul.mubr.f32.gmra.mrb[2].mxu0 %v4106_v13  ;;  %6080 = vmatprep.subr.bf16.mxu1 %v6079_v40  ;;  %v4136_v40 = vld [vmem:[#allocation13 + $0x668] sm:$0xff]  ;;  %v6151_v13 = vpack.c.bf16 %v4138_v37, %v4137_v7 }
 0x546   : > { %v6147_v62 = vpack.c.bf16 %v4136_v40, %v4135_v38 }
 0x548   : > { %6082 = vmatpush3.bf16.msra.mxu1 %v6081_v61  ;;  %v4121_v61 = vld [vmem:[#allocation13 + $0x5f0] sm:$0xff] }
 0x549   : > { %6084 = vmatprep.subr.bf16.mxu1 %v6083_v15  ;;  %v4122_v15 = vld [vmem:[#allocation13 + $0x5f8] sm:$0xff] }
 0x54a   : > { %v6153_v8 = vpack.c.bf16 %v4122_v15, %v4121_v61 }
 0x54c   : > { %6086 = vmatpush3.bf16.msra.mxu1 %v6085_v58  ;;  %v8034_v58 = vld [vmem:[#allocation31_spill] sm:$0xff] }
 0x54d   : > { %6088 = vmatprep.subr.bf16.mxu1 %v6087_v36  ;;  %v8035_v36 = vld [vmem:[#allocation32_spill] sm:$0xff] }
 0x550   : > { %6090 = vmatpush3.bf16.msra.mxu1 %v6089_v54 }
 0x551   : > { %6124 = vmatprep.subr.bf16.mxu1 %v6123_v12 }
 0x553   : > { %3958 = vmatmul.mubr.f32.vlgmr.msra.gmra.mrb[24].mxu1 %v3710_v2 }
 0x554   : > { %3962 = vmatprep.mubr.f32.mxu1 %v3716_v45  ;;  %6126 = vmatpush3.bf16.msra.mxu1 %v6125_v34 }
 0x555   : > { %6128 = vmatprep.subr.bf16.mxu1 %v6127_v14 }
 0x557   : > { %3963 = vmatmul.mubr.f32.gmra.mrb[26].mxu1 %v3715_v17 }
 0x558   : > { %3967 = vmatprep.mubr.f32.mxu1 %v3721_v16  ;;  %6130 = vmatpush3.bf16.msra.mxu1 %v6129_v60 }
 0x559   : > { %6132 = vmatprep.subr.bf16.mxu1 %v6131_v23 }
 0x55b   : > { %3968 = vmatmul.mubr.f32.gmra.mrb[28].mxu1 %v3720_v25 }
 0x55c   : > { %3972 = vmatprep.mubr.f32.mxu1 %v3726_v53  ;;  %6134 = vmatpush3.bf16.msra.mxu1 %v6133_v32 }
 0x55d   : > { %6136 = vmatprep.subr.bf16.mxu1 %v6135_v47 }
 0x55f   : > { %3973 = vmatmul.mubr.f32.gmra.mrb[30].mxu1 %v3725_v28 }
 0x560   : > { %6138 = vmatpush3.bf16.msra.mxu1 %v6137_v33  ;;  %4251 = vmatprep.mubr.f32.mxu1 %v8030_v39 }
 0x561   : > { %6140 = vmatprep.subr.bf16.mxu1 %v6139_v3 }
 0x564   : > { %6142 = vmatpush3.bf16.msra.mxu1 %v6141_v18 }
 0x565   : > { %6144 = vmatprep.subr.bf16.mxu1 %v6143_v26 }
 0x568   : > { %6146 = vmatpush3.bf16.msra.mxu1 %v6145_v19 }
 0x569   : > { %6148 = vmatprep.subr.bf16.mxu1 %v6147_v62 }
 0x56c   : > { %6150 = vmatpush3.bf16.msra.mxu1 %v6149_v35 }
 0x56d   : > { %6152 = vmatprep.subr.bf16.mxu1 %v6151_v13 }
 0x570   : > { %6154 = vmatpush3.bf16.msra.mxu1 %v6153_v8 }
 0x573   : > { %4252 = vmatmul.mubr.f32.vlgmr.msra.gmra.mrb[32].mxu1 %v8031_v10 }
 0x574   : > { %4256 = vmatprep.mubr.f32.mxu1 %v8032_v0 }
 0x577   : > { %4257 = vmatmul.mubr.f32.gmra.mrb[34].mxu1 %v8033_v44 }
 0x578   : > { %4261 = vmatprep.mubr.f32.mxu1 %v8034_v58 }
 0x57b   : > { %4262 = vmatmul.mubr.f32.gmra.mrb[36].mxu1 %v8035_v36 }
 0x57c   : > { %4266 = vmatprep.mubr.f32.mxu1 %v8036_v50 }
 0x57f   : > { %4267 = vmatmul.mubr.f32.gmra.mrb[38].mxu1 %v8037_v21 }
 0x5c5   : > { %v5053_v31 = vpop.f32.mrb[0].mxu1 }
 0x5c6   : > { %v5054_v42 = vpop.f32.mrb[1].mxu1 }
 0x5c7   : > { %v5055_v54 = vadd.f32 %v5054_v42, %v5053_v31 }
 0x5c9   : > { %v5056_v12 = vpop.f32.mrb[2].mxu1 }
 0x5ca   : > { %v5057_v56 = vpop.f32.mrb[3].mxu1 }
 0x5cb   : > { %v5058_v30 = vadd.f32 %v5057_v56, %v5056_v12 }
 0x5cd   : > { %v5059_v24 = vpop.f32.mrb[4].mxu1 }
 0x5ce   : > { %v5060_v63 = vpop.f32.mrb[5].mxu1 }
 0x5cf   : > { %v5061_v34 = vadd.f32 %v5060_v63, %v5059_v24 }
 0x5d1   : > { %v5062_v2 = vpop.f32.mrb[6].mxu1 }
 0x5d2   : > { %v5063_v14 = vpop.f32.mrb[7].mxu1 }
 0x5d3   : > { %v5064_v11 = vadd.f32 %v5063_v14, %v5062_v2 }
 0x5e5   : > { %v5097_v52 = vpop.f32.mrb[8].mxu1 }
 0x5e6   : > { %v5098_v45 = vpop.f32.mrb[9].mxu1 }
 0x5e7   : > { %v5099_v6 = vadd.f32 %v5098_v45, %v5097_v52 }
 0x5e9   : > { %v3500_v20 = vadd.f32 %v5099_v6, %v5055_v54  ;;  %v5100_v60 = vpop.f32.mrb[10].mxu1 }
 0x5ea   : > { %v5101_v17 = vpop.f32.mrb[11].mxu1 }
 0x5eb   : > { %v5102_v23 = vadd.f32 %v5101_v17, %v5100_v60 }
 0x5ed   : > { %v3505_v29 = vadd.f32 %v5102_v23, %v5058_v30  ;;  %v5103_v59 = vpop.f32.mrb[12].mxu1 }
 0x5ee   : > { %v5104_v16 = vpop.f32.mrb[13].mxu1 }
 0x5ef   : > { %v5105_v5 = vadd.f32 %v5104_v16, %v5103_v59 }
 0x5f1   : > { %v3510_v1 = vadd.f32 %v5105_v5, %v5061_v34  ;;  %v5106_v32 = vpop.f32.mrb[14].mxu1 }
 0x5f2   : > { %v5107_v25 = vpop.f32.mrb[15].mxu1 }
 0x5f3   : > { %v5108_v47 = vadd.f32 %v5107_v25, %v5106_v32  ;;  %v5333_v22 = vpop.f32.mrb[4].mxu0 }
 0x5f4   : > { %v5334_v41 = vpop.f32.mrb[5].mxu0 }
 0x5f5   : > { %v3515_v53 = vadd.f32 %v5108_v47, %v5064_v11  ;;  %v5335_v9 = vadd.f32 %v5334_v41, %v5333_v22 }
 0x5f7   : > { %v5336_v57 = vpop.f32.mrb[6].mxu0 }
 0x5f8   : > { %v5337_v33 = vpop.f32.mrb[7].mxu0 }
 0x5f9   : > { %v5338_v28 = vadd.f32 %v5337_v33, %v5336_v57 }
 0x5fb   : > { %v5339_v3 = vpop.f32.mrb[8].mxu0 }
 0x5fc   : > { %v5340_v4 = vpop.f32.mrb[9].mxu0 }
 0x5fd   : > { %v5341_v46 = vadd.f32 %v5340_v4, %v5339_v3 }
 0x5ff   : > { %v5342_v55 = vpop.f32.mrb[10].mxu0 }
 0x600   : > { %v5343_v51 = vpop.f32.mrb[11].mxu0 }
 0x601   : > { %v5344_v39 = vadd.f32 %v5343_v51, %v5342_v55 }
 0x606   : > { %v5181_v18 = vpop.f32.mrb[16].mxu1 }
 0x607   : > { %v5182_v26 = vpop.f32.mrb[17].mxu1 }
 0x608   : > { %v5183_v27 = vadd.f32 %v5182_v26, %v5181_v18 }
 0x60a   : > { %v5184_v43 = vpop.f32.mrb[18].mxu1 }
 0x60b   : > { %v5185_v38 = vpop.f32.mrb[19].mxu1 }
 0x60c   : > { %v5186_v40 = vadd.f32 %v5185_v38, %v5184_v43 }
 0x60e   : > { %v5187_v19 = vpop.f32.mrb[20].mxu1 }
 0x60f   : > { %v5188_v62 = vpop.f32.mrb[21].mxu1 }
 0x610   : > { %v5189_v49 = vadd.f32 %v5188_v62, %v5187_v19 }
 0x612   : > { %v5190_v48 = vpop.f32.mrb[22].mxu1 }
 0x613   : > { %v5191_v7 = vpop.f32.mrb[23].mxu1 }
 0x614   : > { %v5192_v37 = vadd.f32 %v5191_v7, %v5190_v48  ;;  %v5751_v35 = vpop.f32.mrb[0].mxu0 }
 0x615   : > { %v4423_v13 = vpop.f32.mrb[1].mxu0 }
 0x618   : > { %v5754_v61 = vpop.f32.mrb[2].mxu0 }
 0x619   : > { %v4433_v15 = vpop.f32.mrb[3].mxu0 }
 0x626   : > { %v5225_v8 = vpop.f32.mrb[24].mxu1 }
 0x627   : > { %v5226_v10 = vpop.f32.mrb[25].mxu1 }
 0x628   : > { %v5227_v0 = vadd.f32 %v5226_v10, %v5225_v8 }
 0x62a   : > { %v3960_v44 = vadd.f32 %v5227_v0, %v5183_v27  ;;  %v5228_v58 = vpop.f32.mrb[26].mxu1 }
 0x62b   : > { %v5229_v36 = vpop.f32.mrb[27].mxu1 }
 0x62c   : > { %v6286_v50 = vadd.f32 %v3960_v44, %v3500_v20  ;;  %v5230_v21 = vadd.f32 %v5229_v36, %v5228_v58 }
 0x62e   : > { %v3965_v31 = vadd.f32 %v5230_v21, %v5186_v40  ;;  %v5231_v42 = vpop.f32.mrb[28].mxu1 }
 0x62f   : > { %v5232_v54 = vpop.f32.mrb[29].mxu1 }
 0x630   : > { %v6283_v12 = vadd.f32 %v3965_v31, %v3505_v29  ;;  %v5233_v56 = vadd.f32 %v5232_v54, %v5231_v42 }
 0x632   : > { %v3970_v30 = vadd.f32 %v5233_v56, %v5189_v49  ;;  %v5234_v24 = vpop.f32.mrb[30].mxu1 }
 0x633   : > { %v5235_v63 = vpop.f32.mrb[31].mxu1 }
 0x634   : > { %v6292_v34 = vadd.f32 %v3970_v30, %v3510_v1  ;;  %v5236_v2 = vadd.f32 %v5235_v63, %v5234_v24  ;;  %v4772_v1 = vld [vmem:[%s7971_s12] ss:$0 sm:$0xff] }
 0x635   : > { %v4773_v63 = vld [vmem:[%s7972_s13] ss:$0 sm:$0xff] }
 0x636   : > { %v3975_v14 = vadd.f32 %v5236_v2, %v5192_v37 }
 0x638   : > { %v6289_v11 = vadd.f32 %v3975_v14, %v3515_v53 }
 0x646   : > { %v5289_v52 = vpop.f32.mrb[32].mxu1 }
 0x647   : > { %v5290_v45 = vpop.f32.mrb[33].mxu1 }
 0x648   : > { %v5291_v6 = vadd.f32 %v5290_v45, %v5289_v52  ;;  %v4774_v52 = vld [vmem:[%s8038_s30] ss:$0 sm:$0xff] }
 0x64a   : > { %v4339_v60 = vadd.f32 %v5335_v9, %v5291_v6  ;;  %v5292_v17 = vpop.f32.mrb[34].mxu1 }
 0x64b   : > { %v5293_v23 = vpop.f32.mrb[35].mxu1 }
 0x64c   : > { %v6287_v20 = vadd.f32 %v6286_v50, %v4339_v60  ;;  %v5294_v59 = vadd.f32 %v5293_v23, %v5292_v17 }
 0x64e   : > { %v6288_v16 = vadd.f32 %v6287_v20, %v4423_v13  ;;  %v4344_v5 = vadd.f32 %v5338_v28, %v5294_v59  ;;  %v5295_v32 = vpop.f32.mrb[36].mxu1 }
 0x64f   : > { %v5296_v29 = vpop.f32.mrb[37].mxu1 }
 0x650   : > { %v6284_v25 = vadd.f32 %v6283_v12, %v4344_v5  ;;  %v5297_v47 = vadd.f32 %v5296_v29, %v5295_v32  ;;  %v4453_v33 = vadd.f32 %v6288_v16, %v4772_v1 }
 0x652   : > { %v6285_v22 = vadd.f32 %v6284_v25, %v5751_v35  ;;  %v4349_v41 = vadd.f32 %v5341_v46, %v5297_v47  ;;  %v5298_v53 = vpop.f32.mrb[38].mxu1 }
 0x653   : > { %v5299_v57 = vpop.f32.mrb[39].mxu1 }
 0x654   : > { %v4454_v9 = vadd.f32 %v6285_v22, %v4772_v1  ;;  %v6293_v3 = vadd.f32 %v6292_v34, %v4349_v41  ;;  %v5300_v4 = vadd.f32 %v5299_v57, %v5298_v53 }
 0x656   : > { %v4457_v55 = vadd.f32 %v4454_v9, %v4453_v33  ;;  %v6294_v51 = vadd.f32 %v6293_v3, %v4433_v15  ;;  %v4354_v18 = vadd.f32 %v5344_v39, %v5300_v4 }
 0x658   : > { %v4455_v28 = vadd.f32 %v6294_v51, %v4772_v1  ;;  %v6290_v26 = vadd.f32 %v6289_v11, %v4354_v18 }
 0x65a   : > { %v4458_v27 = vadd.f32 %v4457_v55, %v4455_v28  ;;  %v6291_v43 = vadd.f32 %v6290_v26, %v5754_v61 }
 0x65c   : > { %v4456_v38 = vadd.f32 %v6291_v43, %v4772_v1 }
 0x65e   : > { %v4459_v40 = vadd.f32 %v4458_v27, %v4456_v38 }
 0x660   : > { %v4460_v19 = vrot.slane %v4459_v40, 4 }
 0x662   : > { %v4461_v62 = vadd.f32 %v4460_v19, %v4459_v40 }
 0x664   : > { %v4462_v49 = vrot.slane %v4461_v62, 2 }
 0x666   : > { %v4463_v48 = vadd.f32 %v4462_v49, %v4461_v62 }
 0x668   : > { %v4464_v46 = vrot.slane %v4463_v48, 1 }
 0x66a   : > { %v4465_v7 = vadd.f32 %v4464_v46, %v4463_v48 }
 0x66c   : > { %v4467_v37 = vmul.f32 0.03125, %v4465_v7 }
 0x66e   : > { %v4468_v35 = vsub.f32 %v4453_v33, %v4467_v37  ;;  %v4469_v13 = vsub.f32 %v4454_v9, %v4467_v37  ;;  %v4470_v8 = vsub.f32 %v4455_v28, %v4467_v37  ;;  %v4471_v10 = vsub.f32 %v4456_v38, %v4467_v37 }
 0x670   : > { %v4472_v0 = vmul.f32 %v4468_v35, %v4468_v35  ;;  %v4473_v15 = vmul.f32 %v4469_v13, %v4469_v13  ;;  %v4474_v39 = vmul.f32 %v4470_v8, %v4470_v8  ;;  %v4475_v58 = vmul.f32 %v4471_v10, %v4471_v10 }
 0x672   : > { %v4476_v44 = vadd.f32 %v4473_v15, %v4472_v0 }
 0x674   : > { %v4477_v36 = vadd.f32 %v4476_v44, %v4474_v39 }
 0x676   : > { %v4478_v61 = vadd.f32 %v4477_v36, %v4475_v58 }
 0x678   : > { %v4479_v50 = vrot.slane %v4478_v61, 4 }
 0x67a   : > { %v4480_v21 = vadd.f32 %v4479_v50, %v4478_v61 }
 0x67c   : > { %v4481_v31 = vrot.slane %v4480_v21, 2 }
 0x67e   : > { %v4482_v42 = vadd.f32 %v4481_v31, %v4480_v21 }
 0x680   : > { %v4483_v54 = vrot.slane %v4482_v42, 1 }
 0x682   : > { %v4484_v12 = vadd.f32 %v4483_v54, %v4482_v42 }
 0x684   : > { %v4485_v56 = vmul.f32 0.03125, %v4484_v12 }
 0x686   : > { %v4486_v30 = vadd.f32 1e-05, %v4485_v56 }
 0x688   : > { %6408 = vrsqrt.f32 %v4486_v30 }
 0x692   : > { %v6409_v24 = vpop.eup %6408 }
 0x693   : > { %v4488_v34 = vmul.f32 %v6409_v24, %v4468_v35  ;;  %v4489_v2 = vmul.f32 %v6409_v24, %v4469_v13  ;;  %v4490_v14 = vmul.f32 %v6409_v24, %v4470_v8  ;;  %v4491_v11 = vmul.f32 %v6409_v24, %v4471_v10 }
 0x695   : > { %v4499_v45 = vmul.f32 %v4773_v63, %v4488_v34  ;;  %v4500_v6 = vmul.f32 %v4773_v63, %v4489_v2  ;;  %v4501_v60 = vmul.f32 %v4773_v63, %v4490_v14  ;;  %v4502_v17 = vmul.f32 %v4773_v63, %v4491_v11 }
 0x697   : > { %v4510_v23 = vadd.f32 %v4774_v52, %v4499_v45  ;;  %v4511_v20 = vadd.f32 %v4774_v52, %v4500_v6  ;;  %v4512_v59 = vadd.f32 %v4774_v52, %v4501_v60  ;;  %v4513_v16 = vadd.f32 %v4774_v52, %v4502_v17 }
 0x699   : > { %v4514_v5 = vmax.f32 %v4510_v23, 0.0  ;;  %v4515_v32 = vmax.f32 %v4511_v20, 0.0  ;;  %v4516_v29 = vmax.f32 %v4512_v59, 0.0  ;;  %v4517_v25 = vmax.f32 %v4513_v16, 0.0 }
 0x69b   : > { %4518 = vst [vmem:[#allocation16] sm:$0xff] %v4514_v5  ;;  %4519 = vst [vmem:[#allocation16 + $0x8] sm:$0xff] %v4515_v32 }
 0x69c   : > { %4520 = vst [vmem:[#allocation16 + $0x10] sm:$0xff] %v4516_v29  ;;  %4521 = vst [vmem:[#allocation16 + $0x18] sm:$0xff] %v4517_v25 }
 0x69d PF: > { %p6321_p11 = scmp.eq.s32.totalorder %s6640_s25, 1  ;;  %s6538_s19 = smov [#allocation16]  }
 0x69e   : > { %s4528_s16 = sshll.u32 %s6538_s19, 4  ;;  %s4529_s16 = int_to_ptr.vmem [resolvable:$true] %s4528_s16 }
 0x69f   : > { %s6454_s28 = scalar_lea.vmem %s4529_s16, 512  ;;  %p6461_p3 = scmp.lt.s32.totalorder %s4529_s16, %s4529_s16 }
 0x6a0   : > { %p6455_p12 = scmp.ne.s32.totalorder %s4529_s16, %s6454_s28  ;;  %p6462_p5 = scmp.lt.s32.totalorder %s6454_s28, %s6454_s28 }
 0x6a2   : > { %p6456_p13 = pnand %p6455_p12, %p6321_p11  ;;  %p6463_p6 = por %p6462_p5, %p6461_p3 }
 0x6a4   : > { %p6457_p1 = pneg %p6456_p13 }
 0x6a6   : > { %p6464_p7 = pnand %p6463_p6, %p6457_p1 }
 0x6a8   : > { %6467 = shalt.err (!%p6464_p7)
}
 0x6a9   : > { %s8039_s14 = sld [smem:[#allocation34_spill]] }
 0x6af   : > { %s6468_s20 = scalar_lea.hbm %s8039_s14, 512 }
 0x6b0   : > { %p6469_p8 = scmp.ne.s32.totalorder %s8039_s14, %s6468_s20  ;;  %p6474_p2 = scmp.lt.u32.totalorder %s6468_s20, %s8039_s14 }
 0x6b2   : > { %p6470_p10 = pnand %p6469_p8, %p6321_p11 }
 0x6b4   : > { %p6471_p0 = pneg %p6470_p10 }
 0x6b6   : > { %p6476_p4 = pnand %p6474_p2, %p6471_p0 }
 0x6b8   : > { %6479 = shalt.err (!%p6476_p4)
}
 0x6b9   : > { %s6539_s23 = smov 128   ;;  %s6540_s26 = smov 8  }
 0x6ba   : > { %6312 = dma.vmem_to_hbm [thread:$0]  (%p6321_p11), %s4529_s16, 512, %s8039_s14, [#allocation15], %s6539_s23, %s6539_s23, %s6540_s26  }
 0x6bb   : > { %6503 = dma.done.wait (%p6321_p11), [#allocation15], 512  }
 0x6bc   : > { %6505 = vsyncadd (%p6321_p11), [#allocation15], 4294966784 }
 0x6bd PF: > { %s8040_s0 = sld [smem:[#allocation20_spill]]  ;;  %s8041_s30 = sld [smem:[#allocation21_spill]] }
 0x6be   : > { %s8042_s23 = smov %s6512_s24 }
 0x6c3   : > { %p30_p9 = scmp.ge.s32.totalorder %s8040_s0, 4   ;;  %s8043_s24 = smov %s8041_s30 }
 0x6c5   :  { %32 = sbr.rel (!%p30_p9) target bundleno = 19 (0x13), region = 220 }
 0x6cc   :  { %4544 = vsyncpa [#allocation14], 1 }
 0x6cd   :  { %4546 = vsyncpa [#allocation14 + $0x1], 1 }
 0x6ce   :  { %4547 = vsyncpa [#allocation15], 1 }
 0x6cf   :  { %4549 = vsyncpa [#allocation15 + $0x1], 1 }

</bundles_post_ra>
